<compile_context>
chip_gen: v5e
topology: v5e:2x2
jax: 0.10.0
libtpu: 0.0.40
codegen_flags: <defaults>
</compile_context>

<pallas_src>
import functools
import math
from typing import NamedTuple

import numpy as np

import jax
import jax.numpy as jnp
from jax import lax
from jax.experimental import pallas as pl
from jax.experimental.pallas import tpu as pltpu

BSIZE = 16                    # MAD local-statistics window
STRIDE = 4                    # MAD local-statistics stride
GROUPS = BSIZE // STRIDE      # 4 group-rows per window

_LUM_K = 0.02874
_LUM_GAMMA = 2.2 / 3.0


def _default_vmem_limit():
    # v5e/v6e have 128 MiB physical VMEM -> allow large resident blocks;
    # v7x has 64 MiB -> stay well below it and rely on the row tiling.
    try:
        kind = jax.devices()[0].device_kind.lower()
    except Exception:
        kind = ""
    if "v5" in kind or "v6" in kind:
        return 100 * 1024 * 1024
    return 48 * 1024 * 1024


_VMEM_LIMIT = _default_vmem_limit()


class _Geom(NamedTuple):
    H: int; W: int            # original plane size
    Hp: int; Wp: int          # zero-padded plane size (Wp % 128 == 0, Hp = 4 * Hq)
    Hq: int                   # padded group-row count (= Hp // 4 = TQ * nT)
    TQ: int; nT: int          # row-tile size (group rows) and number of row tiles
    Hb: int; Wb: int          # valid block-position grid
    Hbp: int; Wbp: int        # padded block grid (sublane / lane dense)


def _make_geom(H, W):
    Hb = (H - BSIZE) // STRIDE + 1
    Wb = (W - BSIZE) // STRIDE + 1
    Hbp = -(-Hb // 8) * 8
    Wbp = -(-Wb // 128) * 128
    Wp = -(-W // 128) * 128
    Hq_valid = H // 4
    # Row-tile size: <= 64 group rows and <= ~4 MiB of f32 per plane tile.
    tq_cap = (4 << 20) // (16 * Wp)
    tq_cap = max(8, min(64, (tq_cap // 8) * 8))
    if Hq_valid <= tq_cap:
        TQ = -(-Hq_valid // 8) * 8
        nT = 1
    else:
        TQ = tq_cap
        nT = -(-Hq_valid // TQ)
    Hq = TQ * nT
    return _Geom(H, W, 4 * Hq, Wp, Hq, TQ, nT, Hb, Wb, Hbp, Wbp)


# ----------------------------------------------------------------------------- #
# Fused luma + MAD luminance non-linearity (ref and dist in one call, H-tiled)
# ----------------------------------------------------------------------------- #
def _luma_rgb_kernel(ref_ref, dst_ref, ry_ref, rl_ref, dy_ref, dl_ref):
    for img, y_ref, l_ref in ((ref_ref, ry_ref, rl_ref), (dst_ref, dy_ref, dl_ref)):
        r = img[0, 0]
        g = img[0, 1]
        b = img[0, 2]
        y = 65.481 * r + 128.553 * g + 24.966 * b + 16.0
        y_ref[0] = y
        l_ref[0] = _LUM_K * jnp.power(y + 1e-12, _LUM_GAMMA)


def _luma_gray_kernel(ref_ref, dst_ref, ry_ref, rl_ref, dy_ref, dl_ref):
    for img, y_ref, l_ref in ((ref_ref, ry_ref, rl_ref), (dst_ref, dy_ref, dl_ref)):
        y = img[0, 0] * 255.0
        y_ref[0] = y
        l_ref[0] = _LUM_K * jnp.power(y + 1e-12, _LUM_GAMMA)


def luma_and_lum(ref, dist):
    """ref/dist: (B, C, H, W) f32 in [0,1] ->
       (ref_y, ref_lum, dst_y, dst_lum), each (B, H, W) f32."""
    B, C, H, W = ref.shape
    TH = H
    for cand in (128, 64, 32, 16, 8):          # row tile (multiple of 8) dividing H
        if H % cand == 0:
            TH = cand
            break
    nH = H // TH
    kernel = _luma_rgb_kernel if C == 3 else _luma_gray_kernel
    img_spec = pl.BlockSpec((1, C, TH, W), lambda b, h: (b, 0, h, 0))
    out_spec = pl.BlockSpec((1, TH, W), lambda b, h: (b, h, 0))
    plane = jax.ShapeDtypeStruct((B, H, W), jnp.float32)
    # TODO(synk): on v5e (single vst slot) bf16 y/lum outputs would halve the write
    # traffic; kept f32 since both planes feed f32 FFT filtering immediately.
    return pl.pallas_call(
        kernel,
        out_shape=(plane, plane, plane, plane),
        grid=(B, nH),
        in_specs=[img_spec, img_spec],
        out_specs=(out_spec, out_spec, out_spec, out_spec),
        compiler_params=pltpu.CompilerParams(
            dimension_semantics=("parallel", "parallel"),
            vmem_limit_bytes=_VMEM_LIMIT),
    )(ref.astype(jnp.float32), dist.astype(jnp.float32))


# ----------------------------------------------------------------------------- #
# In-kernel helpers for the window statistics
# ----------------------------------------------------------------------------- #
def _row_group_pow_sum(v, Wp, power):
    """v: (TQ, 4*Wp) view of 4*TQ original rows (row 4g+k of group g lives in lanes
    [k*Wp, (k+1)*Wp)).  Returns the per-group sum of v**power, shape (TQ, Wp)."""
    acc = None
    for k in range(4):
        part = v[:, k * Wp:(k + 1) * Wp]
        term = part
        for _ in range(power - 1):
            term = term * part
        acc = term if acc is None else acc + term
    return acc


def _gen_col_pool(Wp, Wbp, Wb):
    # aw[r, j] = 1  iff  4*j <= r < 4*j + 16  and  j < Wb.  Generated on the VPU —
    # never shipped from HBM nor double-buffered in VMEM.
    r = lax.broadcasted_iota(jnp.int32, (Wp, Wbp), 0)
    j = lax.broadcasted_iota(jnp.int32, (Wp, Wbp), 1)
    start = j * STRIDE
    ok = (r >= start) & (r < start + BSIZE) & (j < Wb)
    return jnp.where(ok, 1.0, 0.0).astype(jnp.float32)


def _gen_row_pool_tile(Hbp, TQ, Hb, tile_idx):
    # ahtr[i, q_local] = 1  iff  i <= q_global < i + 4  and  i < Hb,
    # with q_global = tile_idx * TQ + q_local (row-tile slice of the full matrix).
    i = lax.broadcasted_iota(jnp.int32, (Hbp, TQ), 0)
    q = lax.broadcasted_iota(jnp.int32, (Hbp, TQ), 1) + tile_idx * TQ
    ok = (q >= i) & (q < i + GROUPS) & (i < Hb)
    return jnp.where(ok, 1.0, 0.0).astype(jnp.float32)


# ----------------------------------------------------------------------------- #
# Detection (hi) stage kernel: 2-moment window stats + contrast masking, row-tiled
# ----------------------------------------------------------------------------- #
def _hi_kernel(rl_ref, rf_ref, er_ref, mp_ref, rgst_ref, acc_ref, *, Hb, Wb, TQ, Wp):
    t = pl.program_id(1)
    nT = pl.num_programs(1)
    Hbp, Wbp = mp_ref.shape[1], mp_ref.shape[2]

    @pl.when(t == 0)
    def _init():
        acc_ref[...] = jnp.zeros_like(acc_ref)

    aw = _gen_col_pool(Wp, Wbp, Wb)
    ahtr = _gen_row_pool_tile(Hbp, TQ, Hb, t)

    rl = rl_ref[0]
    rf = rf_ref[0]
    er = er_ref[0]
    # Moment planes serialized into the shared scratch (plane k -> rows [k*TQ, (k+1)*TQ)).
    rgst_ref[0 * TQ:1 * TQ, :] = _row_group_pow_sum(rl, Wp, 1)   # lum
    rgst_ref[1 * TQ:2 * TQ, :] = _row_group_pow_sum(rf, Wp, 1)   # ref_f
    rgst_ref[2 * TQ:3 * TQ, :] = _row_group_pow_sum(rf, Wp, 2)   # ref_f^2
    rgst_ref[3 * TQ:4 * TQ, :] = _row_group_pow_sum(er, Wp, 1)   # err
    rgst_ref[4 * TQ:5 * TQ, :] = _row_group_pow_sum(er, Wp, 2)   # err^2

    # Column (window) pooling of all 5 moment planes in ONE MXU matmul, then the cheap
    # row pooling (K = TQ) accumulated across row tiles.
    # TODO(synk): the s1 planes would tolerate bf16 operands, but the s2 planes feed
    # var = E[x^2] - m^2 (cancellation), so the stacked matmul stays f32.
    tcol = jnp.dot(rgst_ref[...], aw, preferred_element_type=jnp.float32)
    for k in range(5):
        acc_ref[k] = acc_ref[k] + jnp.dot(
            ahtr, tcol[k * TQ:(k + 1) * TQ, :], preferred_element_type=jnp.float32)

    @pl.when(t == nT - 1)
    def _finish():
        inv_n = 1.0 / float(BSIZE * BSIZE)
        mu_lum = acc_ref[0] * inv_n
        mu_rf = acc_ref[1] * inv_n
        ex2_rf = acc_ref[2] * inv_n
        mu_er = acc_ref[3] * inv_n
        ex2_er = acc_ref[4] * inv_n
        std_rf = jnp.sqrt(jnp.maximum(ex2_rf - mu_rf * mu_rf, 0.0))
        std_er = jnp.sqrt(jnp.maximum(ex2_er - mu_er * mu_er, 0.0))
        lmse = ex2_er                      # E[err^2] == mu^2 + std^2, computed directly

        # Contrast-masking visibility map (per block position).
        C_slope, Ci_thrsh, Cd_thrsh, eps = 1.0, -5.0, -5.0, 1e-12
        mu_safe = jnp.maximum(mu_lum, 0.5)
        ci_ref = jnp.log(std_rf / mu_safe + eps)
        c_err = jnp.where(mu_lum > 0.5, std_er / mu_safe, 0.0)
        ci_err = jnp.log(c_err + eps)
        thr = C_slope * (ci_ref - Ci_thrsh) + Cd_thrsh
        msk = jnp.where((ci_err > Cd_thrsh) & (ci_ref <= Ci_thrsh), ci_err - Cd_thrsh, 0.0)
        msk = jnp.where((ci_err > thr) & (ci_ref > Ci_thrsh), ci_err - thr, msk)
        # Padded block rows/cols have all-zero pooling weights -> lmse == 0 -> mp == 0.
        mp_ref[0] = msk * lmse


def hi_block_maps(rl, rf, er, g):
    """rl/rf/er: (B, Hq, 4*Wp) padded plane views -> (B, Hbp, Wbp) masked-LMSE maps."""
    B = rl.shape[0]
    plane_spec = pl.BlockSpec((1, g.TQ, 4 * g.Wp), lambda b, t: (b, t, 0))
    return pl.pallas_call(
        functools.partial(_hi_kernel, Hb=g.Hb, Wb=g.Wb, TQ=g.TQ, Wp=g.Wp),
        out_shape=jax.ShapeDtypeStruct((B, g.Hbp, g.Wbp), jnp.float32),
        grid=(B, g.nT),
        in_specs=[plane_spec, plane_spec, plane_spec],
        out_specs=pl.BlockSpec((1, g.Hbp, g.Wbp), lambda b, t: (b, 0, 0)),
        scratch_shapes=[pltpu.VMEM((5 * g.TQ, g.Wp), jnp.float32),
                        pltpu.VMEM((5, g.Hbp, g.Wbp), jnp.float32)],
        compiler_params=pltpu.CompilerParams(
            dimension_semantics=("parallel", "arbitrary"),
            vmem_limit_bytes=_VMEM_LIMIT),
    )(rl, rf, er)


# ----------------------------------------------------------------------------- #
# Appearance (lo) stage kernel: std/skew/kurtosis difference map, row-tiled
# ----------------------------------------------------------------------------- #
def _lo_kernel(gr_ref, gd_ref, eta_ref, rgst_ref, acc_ref, *, Hb, Wb, TQ, Wp):
    t = pl.program_id(1)
    nT = pl.num_programs(1)
    Hbp, Wbp = eta_ref.shape[1], eta_ref.shape[2]

    @pl.when(t == 0)
    def _init():
        acc_ref[...] = jnp.zeros_like(acc_ref)

    aw = _gen_col_pool(Wp, Wbp, Wb)
    ahtr = _gen_row_pool_tile(Hbp, TQ, Hb, t)

    # Serialize the 4 moments of each (mean-shifted) plane through the shared scratch —
    # x^2/x^3/x^4 are never alive simultaneously at plane size.
    for base, src_ref in ((0, gr_ref), (4, gd_ref)):
        x = src_ref[0]
        for p in range(1, 5):
            k = base + p - 1
            rgst_ref[k * TQ:(k + 1) * TQ, :] = _row_group_pow_sum(x, Wp, p)

    # One stacked column-pooling matmul for all 8 moment planes, then the cheap row
    # pooling (K = TQ) accumulated across row tiles.
    tcol = jnp.dot(rgst_ref[...], aw, preferred_element_type=jnp.float32)
    for k in range(8):
        acc_ref[k] = acc_ref[k] + jnp.dot(
            ahtr, tcol[k * TQ:(k + 1) * TQ, :], preferred_element_type=jnp.float32)

    @pl.when(t == nT - 1)
    def _finish():
        inv_n = 1.0 / float(BSIZE * BSIZE)

        def stats(base):
            m = acc_ref[base] * inv_n
            ex2 = acc_ref[base + 1] * inv_n
            ex3 = acc_ref[base + 2] * inv_n
            ex4 = acc_ref[base + 3] * inv_n
            var = jnp.maximum(ex2 - m * m, 0.0)
            std = jnp.sqrt(var)
            m3 = ex3 - 3.0 * m * ex2 + 2.0 * m * m * m
            m4 = ex4 - 4.0 * m * ex3 + 6.0 * m * m * ex2 - 3.0 * m * m * m * m
            ok = var > 1e-12                            # guard near-constant blocks
            skew = jnp.where(ok, m3 / (var * std + 1e-12), 0.0)
            kurt = jnp.where(ok, m4 / (var * var + 1e-12), 0.0)
            return std, skew, kurt

        sr, kr, ur = stats(0)
        sd, kd, ud = stats(4)
        eta_ref[0] = jnp.abs(sr - sd) + 2.0 * jnp.abs(kr - kd) + jnp.abs(ur - ud)


def lo_eta_maps(gr, gd, g):
    """gr/gd: (N, Hq, 4*Wp) mean-shifted subband views -> (N, Hbp, Wbp) eta maps."""
    N = gr.shape[0]
    plane_spec = pl.BlockSpec((1, g.TQ, 4 * g.Wp), lambda n, t: (n, t, 0))
    return pl.pallas_call(
        functools.partial(_lo_kernel, Hb=g.Hb, Wb=g.Wb, TQ=g.TQ, Wp=g.Wp),
        out_shape=jax.ShapeDtypeStruct((N, g.Hbp, g.Wbp), jnp.float32),
        grid=(N, g.nT),
        in_specs=[plane_spec, plane_spec],
        out_specs=pl.BlockSpec((1, g.Hbp, g.Wbp), lambda n, t: (n, 0, 0)),
        scratch_shapes=[pltpu.VMEM((8 * g.TQ, g.Wp), jnp.float32),
                        pltpu.VMEM((8, g.Hbp, g.Wbp), jnp.float32)],
        compiler_params=pltpu.CompilerParams(
            dimension_semantics=("parallel", "arbitrary"),
            vmem_limit_bytes=_VMEM_LIMIT),
    )(gr, gd)


# ----------------------------------------------------------------------------- #
# Plain-JAX glue: CSF / log-Gabor filters and padded plane views
# ----------------------------------------------------------------------------- #
def make_csf(rows, cols, nfreq=32):
    xvals = np.arange(-(cols - 1) / 2.0, (cols + 1) / 2.0)
    yvals = np.arange(-(rows - 1) / 2.0, (rows + 1) / 2.0)
    xplane, yplane = np.meshgrid(xvals, yvals)
    plane = (xplane + 1j * yplane) / cols * 2 * nfreq
    radfreq = np.abs(plane)
    w = 0.7
    s = (1 - w) / 2 * np.cos(4 * np.angle(plane)) + (1 + w) / 2
    radfreq = radfreq / np.maximum(s, 1e-12)
    csf = 2.6 * (0.0192 + 0.114 * radfreq) * np.exp(-(0.114 * radfreq) ** 1.1)
    csf[radfreq < 7.8909] = 0.9809
    return jnp.asarray(csf, dtype=jnp.float32)


def make_log_gabor_bank(rows, cols, nscale=5, norient=4,
                        min_wavelength=3.0, mult=3.0, sigma_onf=0.55,
                        delta_theta_sigma=1.5):
    xr = (np.arange(cols) - cols // 2) / float(cols)
    yr = (np.arange(rows) - rows // 2) / float(rows)
    xx, yy = np.meshgrid(xr, yr)
    radius = np.sqrt(xx ** 2 + yy ** 2)
    radius[rows // 2, cols // 2] = 1.0
    theta = np.arctan2(-yy, xx)
    sintheta, costheta = np.sin(theta), np.cos(theta)
    theta_sigma = np.pi / norient / delta_theta_sigma
    filters = np.zeros((nscale, norient, rows, cols), np.float32)
    for o in range(norient):
        angl = o * np.pi / norient
        ds = sintheta * np.cos(angl) - costheta * np.sin(angl)
        dc = costheta * np.cos(angl) + sintheta * np.sin(angl)
        dtheta = np.abs(np.arctan2(ds, dc))
        spread = np.exp(-(dtheta ** 2) / (2 * theta_sigma ** 2))
        for s in range(nscale):
            wavelength = min_wavelength * (mult ** s)
            fo = 1.0 / wavelength
            log_gabor = np.exp(-(np.log(radius / fo)) ** 2 / (2 * np.log(sigma_onf) ** 2))
            log_gabor[rows // 2, cols // 2] = 0.0
            filters[s, o] = np.fft.ifftshift(log_gabor * spread)
    return jnp.asarray(filters)


def _pad_plane_view(x, g):
    """x: (N, H, W) -> zero-padded (N, Hq, 4*Wp) row-group view (free reshape after pad)."""
    x = jnp.pad(x, ((0, 0), (0, g.Hp - g.H), (0, g.Wp - g.W)))
    return x.reshape(x.shape[0], g.Hq, 4 * g.Wp)


# ----------------------------------------------------------------------------- #
# MAD stages
# ----------------------------------------------------------------------------- #
def hi_index(ref_lum, dst_lum, g):
    """Detection (high-quality) stage. ref_lum/dst_lum: (B, H, W) MAD-luminance planes."""
    # TODO(synk): CSF filtering needs a 2-D FFT, which has no Pallas/Mosaic equivalent;
    # done with jnp.fft in plain JAX.
    csf = jnp.fft.ifftshift(make_csf(g.H, g.W, 32))

    def csf_filt(x):
        return jnp.real(jnp.fft.ifft2(jnp.fft.fft2(x) * csf[None])).astype(jnp.float32)

    ref_f = csf_filt(ref_lum)
    dst_f = csf_filt(dst_lum)
    err = dst_f - ref_f

    mp = hi_block_maps(_pad_plane_view(ref_lum, g),
                       _pad_plane_view(ref_f, g),
                       _pad_plane_view(err, g), g)[:, :g.Hb, :g.Wb]

    # TODO(synk): pyiqa uses a per-pixel sliding LMSE with border cropping; approximated
    # here by the stride-4 block grid used for the statistics.
    nblk = float(g.Hb * g.Wb)
    return jnp.sqrt(jnp.sum(mp * mp, axis=(1, 2)) / nblk) * 200.0


def lo_index(ref_y, dst_y, gabor_filters, g):
    """Appearance (low-quality) stage. ref_y/dst_y: (B, H, W) luminance (0..255)."""
    B = ref_y.shape[0]
    S, O = gabor_filters.shape[0], gabor_filters.shape[1]

    # TODO(synk): log-Gabor filtering needs 2-D FFTs; done with jnp.fft in plain JAX.
    fref = jnp.fft.fft2(ref_y)          # (B, H, W) complex64
    fdst = jnp.fft.fft2(dst_y)

    wts = [0.5 / 13.25, 0.75 / 13.25, 1.0 / 13.25, 5.0 / 13.25, 6.0 / 13.25]
    mp = jnp.zeros((B, g.Hbp, g.Wbp), jnp.float32)

    # Stream the Gabor responses scale-by-scale: never materialize (B, S, O, H, W).
    for s in range(S):
        filt = gabor_filters[s][None]                                    # (1, O, H, W)
        gref = jnp.abs(jnp.fft.ifft2(fref[:, None] * filt)).astype(jnp.float32)
        gdst = jnp.abs(jnp.fft.ifft2(fdst[:, None] * filt)).astype(jnp.float32)
        gref = gref.reshape(B * O, g.H, g.W)
        gdst = gdst.reshape(B * O, g.H, g.W)
        # Mean-shift per plane (central moments are shift-invariant; improves the f32
        # raw-moment numerics inside the kernel).  Fuses with the zero-padding pass.
        gref = gref - jnp.mean(gref, axis=(1, 2), keepdims=True)
        gdst = gdst - jnp.mean(gdst, axis=(1, 2), keepdims=True)
        eta = lo_eta_maps(_pad_plane_view(gref, g), _pad_plane_view(gdst, g), g)
        mp = mp + wts[s] * eta.reshape(B, O, g.Hbp, g.Wbp).sum(axis=1)

    mp = mp[:, :g.Hb, :g.Wb]
    nblk = float(g.Hb * g.Wb)
    return jnp.sqrt(jnp.sum(mp * mp, axis=(1, 2)) / nblk)


def mad_forward(ref, dist):
    """ref, dist: NCHW float32 in [0,1]. Returns per-image MAD score, shape (B,)."""
    ref = ref.astype(jnp.float32)
    dist = dist.astype(jnp.float32)
    B, C, H, W = ref.shape
    assert H % 4 == 0 and W % 4 == 0 and H >= BSIZE and W >= BSIZE, \
        "MAD Pallas path expects H, W multiples of 4 and >= 16"

    g = _make_geom(H, W)

    # Fused luma + luminance-nonlinearity kernel (ref and dist in one H-tiled call).
    ref_y, ref_lum, dst_y, dst_lum = luma_and_lum(ref, dist)

    gabor = make_log_gabor_bank(H, W)

    hi = hi_index(ref_lum, dst_lum, g)
    lo = lo_index(ref_y, dst_y, gabor, g)

    thresh1, thresh2 = 2.55, 3.35
    b1 = math.exp(-thresh1 / thresh2)
    b2 = 1.0 / (math.log(10.0) * thresh2)
    eps = 1e-12
    sig = 1.0 / (1.0 + b1 * jnp.power(hi + eps, b2))
    return jnp.power(lo + eps, 1.0 - sig) * jnp.power(hi + eps, sig)


# ----------------------------------------------------------------------------- #
if __name__ == "__main__":
    key = jax.random.PRNGKey(0)
    k1, k2 = jax.random.split(key)
    B, C, H, W = 2, 3, 32, 32
    ref = jax.random.uniform(k1, (B, C, H, W), dtype=jnp.float32)
    dist = jnp.clip(ref + 0.05 * jax.random.normal(k2, (B, C, H, W), dtype=jnp.float32),
                    0.0, 1.0)

    score = jax.block_until_ready(jax.jit(mad_forward)(ref, dist))
    assert score.shape == (B,) and bool(jnp.all(jnp.isfinite(score)))
    print("KERNEL_OK")
</pallas_src>

<mosaic_0001>
module attributes {stable_mosaic.version = 11 : i64} {
  func.func @_luma_rgb_kernel(%arg0: i32, %arg1: i32, %arg2: memref<1x3x32x32xf32, #tpu.memory_space<vmem>>, %arg3: memref<1x3x32x32xf32, #tpu.memory_space<vmem>>, %arg4: memref<1x32x32xf32, #tpu.memory_space<vmem>>, %arg5: memref<1x32x32xf32, #tpu.memory_space<vmem>>, %arg6: memref<1x32x32xf32, #tpu.memory_space<vmem>>, %arg7: memref<1x32x32xf32, #tpu.memory_space<vmem>>) attributes {dimension_semantics = [#tpu.dimension_semantics<parallel>, #tpu.dimension_semantics<parallel>], iteration_bounds = array<i64: 2, 1>, scalar_prefetch = 0 : i64, scratch_operands = 0 : i64, tpu.core_type = #tpu.core_type<tc>, window_params = [{transform_indices = @transform_0, window_bounds = array<i64: 1, 3, 32, 32>}, {transform_indices = @transform_1, window_bounds = array<i64: 1, 3, 32, 32>}, {transform_indices = @transform_2, window_bounds = array<i64: 1, 32, 32>}, {transform_indices = @transform_3, window_bounds = array<i64: 1, 32, 32>}, {transform_indices = @transform_4, window_bounds = array<i64: 1, 32, 32>}, {transform_indices = @transform_5, window_bounds = array<i64: 1, 32, 32>}]} {
    %c0 = arith.constant 0 : index
    %c0_0 = arith.constant 0 : index
    %c0_1 = arith.constant 0 : index
    %c0_2 = arith.constant 0 : index
    %0 = vector.load %arg2[%c0, %c0_0, %c0_1, %c0_2] : memref<1x3x32x32xf32, #tpu.memory_space<vmem>>, vector<1x1x32x32xf32>
    %1 = vector.shape_cast %0 : vector<1x1x32x32xf32> to vector<32x32xf32>
    %c0_3 = arith.constant 0 : index
    %c1 = arith.constant 1 : index
    %c0_4 = arith.constant 0 : index
    %c0_5 = arith.constant 0 : index
    %2 = vector.load %arg2[%c0_3, %c1, %c0_4, %c0_5] : memref<1x3x32x32xf32, #tpu.memory_space<vmem>>, vector<1x1x32x32xf32>
    %3 = vector.shape_cast %2 : vector<1x1x32x32xf32> to vector<32x32xf32>
    %c0_6 = arith.constant 0 : index
    %c2 = arith.constant 2 : index
    %c0_7 = arith.constant 0 : index
    %c0_8 = arith.constant 0 : index
    %4 = vector.load %arg2[%c0_6, %c2, %c0_7, %c0_8] : memref<1x3x32x32xf32, #tpu.memory_space<vmem>>, vector<1x1x32x32xf32>
    %5 = vector.shape_cast %4 : vector<1x1x32x32xf32> to vector<32x32xf32>
    %cst = arith.constant 6.548100e+01 : f32
    %6 = vector.broadcast %cst : f32 to vector<32x32xf32>
    %7 = arith.mulf %6, %1 : vector<32x32xf32>
    %cst_9 = arith.constant 1.285530e+02 : f32
    %8 = vector.broadcast %cst_9 : f32 to vector<32x32xf32>
    %9 = arith.mulf %8, %3 : vector<32x32xf32>
    %10 = arith.addf %7, %9 : vector<32x32xf32>
    %cst_10 = arith.constant 2.496600e+01 : f32
    %11 = vector.broadcast %cst_10 : f32 to vector<32x32xf32>
    %12 = arith.mulf %11, %5 : vector<32x32xf32>
    %13 = arith.addf %10, %12 : vector<32x32xf32>
    %cst_11 = arith.constant 1.600000e+01 : f32
    %14 = vector.broadcast %cst_11 : f32 to vector<32x32xf32>
    %15 = arith.addf %13, %14 : vector<32x32xf32>
    %c0_12 = arith.constant 0 : index
    %c0_13 = arith.constant 0 : index
    %c0_14 = arith.constant 0 : index
    %16 = vector.load %arg4[%c0_12, %c0_13, %c0_14] : memref<1x32x32xf32, #tpu.memory_space<vmem>>, vector<1x32x32xf32>
    %17 = vector.shape_cast %16 : vector<1x32x32xf32> to vector<32x32xf32>
    %18 = vector.shape_cast %15 : vector<32x32xf32> to vector<1x32x32xf32>
    tpu.vector_store %arg4[%c0_12, %c0_13, %c0_14], %18 {strides = array<i32>} : memref<1x32x32xf32, #tpu.memory_space<vmem>>, vector<1x32x32xf32>,
    %cst_15 = arith.constant 9.99999996E-13 : f32
    %19 = vector.broadcast %cst_15 : f32 to vector<32x32xf32>
    %20 = arith.addf %15, %19 : vector<32x32xf32>
    %cst_16 = arith.constant 0.733333349 : f32
    %21 = vector.broadcast %cst_16 : f32 to vector<32x32xf32>
    %22 = math.powf %20, %21 : vector<32x32xf32>
    %cst_17 = arith.constant 2.874000e-02 : f32
    %23 = vector.broadcast %cst_17 : f32 to vector<32x32xf32>
    %24 = arith.mulf %23, %22 : vector<32x32xf32>
    %c0_18 = arith.constant 0 : index
    %c0_19 = arith.constant 0 : index
    %c0_20 = arith.constant 0 : index
    %25 = vector.load %arg5[%c0_18, %c0_19, %c0_20] : memref<1x32x32xf32, #tpu.memory_space<vmem>>, vector<1x32x32xf32>
    %26 = vector.shape_cast %25 : vector<1x32x32xf32> to vector<32x32xf32>
    %27 = vector.shape_cast %24 : vector<32x32xf32> to vector<1x32x32xf32>
    tpu.vector_store %arg5[%c0_18, %c0_19, %c0_20], %27 {strides = array<i32>} : memref<1x32x32xf32, #tpu.memory_space<vmem>>, vector<1x32x32xf32>,
    %c0_21 = arith.constant 0 : index
    %c0_22 = arith.constant 0 : index
    %c0_23 = arith.constant 0 : index
    %c0_24 = arith.constant 0 : index
    %28 = vector.load %arg3[%c0_21, %c0_22, %c0_23, %c0_24] : memref<1x3x32x32xf32, #tpu.memory_space<vmem>>, vector<1x1x32x32xf32>
    %29 = vector.shape_cast %28 : vector<1x1x32x32xf32> to vector<32x32xf32>
    %c0_25 = arith.constant 0 : index
    %c1_26 = arith.constant 1 : index
    %c0_27 = arith.constant 0 : index
    %c0_28 = arith.constant 0 : index
    %30 = vector.load %arg3[%c0_25, %c1_26, %c0_27, %c0_28] : memref<1x3x32x32xf32, #tpu.memory_space<vmem>>, vector<1x1x32x32xf32>
    %31 = vector.shape_cast %30 : vector<1x1x32x32xf32> to vector<32x32xf32>
    %c0_29 = arith.constant 0 : index
    %c2_30 = arith.constant 2 : index
    %c0_31 = arith.constant 0 : index
    %c0_32 = arith.constant 0 : index
    %32 = vector.load %arg3[%c0_29, %c2_30, %c0_31, %c0_32] : memref<1x3x32x32xf32, #tpu.memory_space<vmem>>, vector<1x1x32x32xf32>
    %33 = vector.shape_cast %32 : vector<1x1x32x32xf32> to vector<32x32xf32>
    %cst_33 = arith.constant 6.548100e+01 : f32
    %34 = vector.broadcast %cst_33 : f32 to vector<32x32xf32>
    %35 = arith.mulf %34, %29 : vector<32x32xf32>
    %cst_34 = arith.constant 1.285530e+02 : f32
    %36 = vector.broadcast %cst_34 : f32 to vector<32x32xf32>
    %37 = arith.mulf %36, %31 : vector<32x32xf32>
    %38 = arith.addf %35, %37 : vector<32x32xf32>
    %cst_35 = arith.constant 2.496600e+01 : f32
    %39 = vector.broadcast %cst_35 : f32 to vector<32x32xf32>
    %40 = arith.mulf %39, %33 : vector<32x32xf32>
    %41 = arith.addf %38, %40 : vector<32x32xf32>
    %cst_36 = arith.constant 1.600000e+01 : f32
    %42 = vector.broadcast %cst_36 : f32 to vector<32x32xf32>
    %43 = arith.addf %41, %42 : vector<32x32xf32>
    %c0_37 = arith.constant 0 : index
    %c0_38 = arith.constant 0 : index
    %c0_39 = arith.constant 0 : index
    %44 = vector.load %arg6[%c0_37, %c0_38, %c0_39] : memref<1x32x32xf32, #tpu.memory_space<vmem>>, vector<1x32x32xf32>
    %45 = vector.shape_cast %44 : vector<1x32x32xf32> to vector<32x32xf32>
    %46 = vector.shape_cast %43 : vector<32x32xf32> to vector<1x32x32xf32>
    tpu.vector_store %arg6[%c0_37, %c0_38, %c0_39], %46 {strides = array<i32>} : memref<1x32x32xf32, #tpu.memory_space<vmem>>, vector<1x32x32xf32>,
    %cst_40 = arith.constant 9.99999996E-13 : f32
    %47 = vector.broadcast %cst_40 : f32 to vector<32x32xf32>
    %48 = arith.addf %43, %47 : vector<32x32xf32>
    %cst_41 = arith.constant 0.733333349 : f32
    %49 = vector.broadcast %cst_41 : f32 to vector<32x32xf32>
    %50 = math.powf %48, %49 : vector<32x32xf32>
    %cst_42 = arith.constant 2.874000e-02 : f32
    %51 = vector.broadcast %cst_42 : f32 to vector<32x32xf32>
    %52 = arith.mulf %51, %50 : vector<32x32xf32>
    %c0_43 = arith.constant 0 : index
    %c0_44 = arith.constant 0 : index
    %c0_45 = arith.constant 0 : index
    %53 = vector.load %arg7[%c0_43, %c0_44, %c0_45] : memref<1x32x32xf32, #tpu.memory_space<vmem>>, vector<1x32x32xf32>
    %54 = vector.shape_cast %53 : vector<1x32x32xf32> to vector<32x32xf32>
    %55 = vector.shape_cast %52 : vector<32x32xf32> to vector<1x32x32xf32>
    tpu.vector_store %arg7[%c0_43, %c0_44, %c0_45], %55 {strides = array<i32>} : memref<1x32x32xf32, #tpu.memory_space<vmem>>, vector<1x32x32xf32>,
    return
  }
  func.func @transform_0(%arg0: i32, %arg1: i32) -> (i32, i32, i32, i32) {
    %c0_i32 = arith.constant 0 : i32
    %c0_i32_0 = arith.constant 0 : i32
    %c0_i32_1 = arith.constant 0 : i32
    return %arg0, %c0_i32, %arg1, %c0_i32_0 : i32, i32, i32, i32
  }
  func.func @transform_1(%arg0: i32, %arg1: i32) -> (i32, i32, i32, i32) {
    %c0_i32 = arith.constant 0 : i32
    %c0_i32_0 = arith.constant 0 : i32
    %c0_i32_1 = arith.constant 0 : i32
    return %arg0, %c0_i32, %arg1, %c0_i32_0 : i32, i32, i32, i32
  }
  func.func @transform_2(%arg0: i32, %arg1: i32) -> (i32, i32, i32) {
    %c0_i32 = arith.constant 0 : i32
    %c0_i32_0 = arith.constant 0 : i32
    return %arg0, %arg1, %c0_i32 : i32, i32, i32
  }
  func.func @transform_3(%arg0: i32, %arg1: i32) -> (i32, i32, i32) {
    %c0_i32 = arith.constant 0 : i32
    %c0_i32_0 = arith.constant 0 : i32
    return %arg0, %arg1, %c0_i32 : i32, i32, i32
  }
  func.func @transform_4(%arg0: i32, %arg1: i32) -> (i32, i32, i32) {
    %c0_i32 = arith.constant 0 : i32
    %c0_i32_0 = arith.constant 0 : i32
    return %arg0, %arg1, %c0_i32 : i32, i32, i32
  }
  func.func @transform_5(%arg0: i32, %arg1: i32) -> (i32, i32, i32) {
    %c0_i32 = arith.constant 0 : i32
    %c0_i32_0 = arith.constant 0 : i32
    return %arg0, %arg1, %c0_i32 : i32, i32, i32
  }
}

module attributes {stable_mosaic.version = 11 : i64} {
  func.func @_hi_kernel(%arg0: i32, %arg1: i32, %arg2: memref<1x8x512xf32, #tpu.memory_space<vmem>>, %arg3: memref<1x8x512xf32, #tpu.memory_space<vmem>>, %arg4: memref<1x8x512xf32, #tpu.memory_space<vmem>>, %arg5: memref<1x8x128xf32, #tpu.memory_space<vmem>>, %arg6: memref<40x128xf32, #tpu.memory_space<vmem>>, %arg7: memref<5x8x128xf32, #tpu.memory_space<vmem>>) attributes {dimension_semantics = [#tpu.dimension_semantics<parallel>, #tpu.dimension_semantics<arbitrary>], iteration_bounds = array<i64: 2, 1>, scalar_prefetch = 0 : i64, scratch_operands = 2 : i64, tpu.core_type = #tpu.core_type<tc>, window_params = [{transform_indices = @transform_0, window_bounds = array<i64: 1, 8, 512>}, {transform_indices = @transform_1, window_bounds = array<i64: 1, 8, 512>}, {transform_indices = @transform_2, window_bounds = array<i64: 1, 8, 512>}, {transform_indices = @transform_3, window_bounds = array<i64: 1, 8, 128>}]} {
    %c0_i32 = arith.constant 0 : i32
    %0 = arith.cmpi eq, %arg1, %c0_i32 : i32
    %1 = arith.extui %0 : i1 to i32
    %c0_i32_0 = arith.constant 0 : i32
    %2 = arith.cmpi ne, %1, %c0_i32_0 : i32
    scf.if %2 {
      %cst_56 = arith.constant 0.000000e+00 : f32
      %133 = vector.broadcast %cst_56 : f32 to vector<5x8x128xf32>
      %c0_57 = arith.constant 0 : index
      %c0_58 = arith.constant 0 : index
      %c0_59 = arith.constant 0 : index
      %134 = vector.load %arg7[%c0_57, %c0_58, %c0_59] : memref<5x8x128xf32, #tpu.memory_space<vmem>>, vector<5x8x128xf32>
      tpu.vector_store %arg7[%c0_57, %c0_58, %c0_59], %133 {strides = array<i32>} : memref<5x8x128xf32, #tpu.memory_space<vmem>>, vector<5x8x128xf32>,
    } else {
    }
    %3 = tpu.iota {dimensions = array<i32: 0>} : vector<128x128xi32>
    %4 = tpu.iota {dimensions = array<i32: 1>} : vector<128x128xi32>
    %c4_i32 = arith.constant 4 : i32
    %5 = vector.broadcast %c4_i32 : i32 to vector<128x128xi32>
    %6 = arith.muli %4, %5 : vector<128x128xi32>
    %7 = arith.cmpi sge, %3, %6 : vector<128x128xi32>
    %c16_i32 = arith.constant 16 : i32
    %8 = vector.broadcast %c16_i32 : i32 to vector<128x128xi32>
    %9 = arith.addi %6, %8 : vector<128x128xi32>
    %10 = arith.cmpi slt, %3, %9 : vector<128x128xi32>
    %11 = arith.andi %7, %10 : vector<128x128xi1>
    %c5_i32 = arith.constant 5 : i32
    %12 = vector.broadcast %c5_i32 : i32 to vector<128x128xi32>
    %13 = arith.cmpi slt, %4, %12 : vector<128x128xi32>
    %14 = arith.andi %11, %13 : vector<128x128xi1>
    %cst = arith.constant 1.000000e+00 : f32
    %cst_1 = arith.constant 0.000000e+00 : f32
    %15 = vector.broadcast %cst : f32 to vector<128x128xf32>
    %16 = vector.broadcast %cst_1 : f32 to vector<128x128xf32>
    %17 = arith.select %14, %15, %16 : vector<128x128xi1>, vector<128x128xf32>
    %18 = tpu.iota {dimensions = array<i32: 0>} : vector<8x8xi32>
    %19 = tpu.iota {dimensions = array<i32: 1>} : vector<8x8xi32>
    %c8_i32 = arith.constant 8 : i32
    %20 = arith.muli %arg1, %c8_i32 : i32
    %21 = vector.broadcast %20 : i32 to vector<8x8xi32>
    %22 = arith.addi %19, %21 : vector<8x8xi32>
    %23 = arith.cmpi sge, %22, %18 : vector<8x8xi32>
    %c4_i32_2 = arith.constant 4 : i32
    %24 = vector.broadcast %c4_i32_2 : i32 to vector<8x8xi32>
    %25 = arith.addi %18, %24 : vector<8x8xi32>
    %26 = arith.cmpi slt, %22, %25 : vector<8x8xi32>
    %27 = arith.andi %23, %26 : vector<8x8xi1>
    %c5_i32_3 = arith.constant 5 : i32
    %28 = vector.broadcast %c5_i32_3 : i32 to vector<8x8xi32>
    %29 = arith.cmpi slt, %18, %28 : vector<8x8xi32>
    %30 = arith.andi %27, %29 : vector<8x8xi1>
    %cst_4 = arith.constant 1.000000e+00 : f32
    %cst_5 = arith.constant 0.000000e+00 : f32
    %31 = vector.broadcast %cst_4 : f32 to vector<8x8xf32>
    %32 = vector.broadcast %cst_5 : f32 to vector<8x8xf32>
    %33 = arith.select %30, %31, %32 : vector<8x8xi1>, vector<8x8xf32>
    %c0 = arith.constant 0 : index
    %c0_6 = arith.constant 0 : index
    %c0_7 = arith.constant 0 : index
    %34 = vector.load %arg2[%c0, %c0_6, %c0_7] : memref<1x8x512xf32, #tpu.memory_space<vmem>>, vector<1x8x512xf32>
    %35 = vector.shape_cast %34 : vector<1x8x512xf32> to vector<8x512xf32>
    %c0_8 = arith.constant 0 : index
    %c0_9 = arith.constant 0 : index
    %c0_10 = arith.constant 0 : index
    %36 = vector.load %arg3[%c0_8, %c0_9, %c0_10] : memref<1x8x512xf32, #tpu.memory_space<vmem>>, vector<1x8x512xf32>
    %37 = vector.shape_cast %36 : vector<1x8x512xf32> to vector<8x512xf32>
    %c0_11 = arith.constant 0 : index
    %c0_12 = arith.constant 0 : index
    %c0_13 = arith.constant 0 : index
    %38 = vector.load %arg4[%c0_11, %c0_12, %c0_13] : memref<1x8x512xf32, #tpu.memory_space<vmem>>, vector<1x8x512xf32>
    %39 = vector.shape_cast %38 : vector<1x8x512xf32> to vector<8x512xf32>
    %40 = vector.extract_strided_slice %35 {offsets = [0, 0], sizes = [8, 128], strides = [1, 1]} : vector<8x512xf32> to vector<8x128xf32>
    %41 = vector.extract_strided_slice %35 {offsets = [0, 128], sizes = [8, 128], strides = [1, 1]} : vector<8x512xf32> to vector<8x128xf32>
    %42 = arith.addf %40, %41 : vector<8x128xf32>
    %43 = vector.extract_strided_slice %35 {offsets = [0, 256], sizes = [8, 128], strides = [1, 1]} : vector<8x512xf32> to vector<8x128xf32>
    %44 = arith.addf %42, %43 : vector<8x128xf32>
    %45 = vector.extract_strided_slice %35 {offsets = [0, 384], sizes = [8, 128], strides = [1, 1]} : vector<8x512xf32> to vector<8x128xf32>
    %46 = arith.addf %44, %45 : vector<8x128xf32>
    %c0_14 = arith.constant 0 : index
    %c0_15 = arith.constant 0 : index
    %47 = vector.load %arg6[%c0_14, %c0_15] : memref<40x128xf32, #tpu.memory_space<vmem>>, vector<8x128xf32>
    tpu.vector_store %arg6[%c0_14, %c0_15], %46 {strides = array<i32>} : memref<40x128xf32, #tpu.memory_space<vmem>>, vector<8x128xf32>,
    %48 = vector.extract_strided_slice %37 {offsets = [0, 0], sizes = [8, 128], strides = [1, 1]} : vector<8x512xf32> to vector<8x128xf32>
    %49 = vector.extract_strided_slice %37 {offsets = [0, 128], sizes = [8, 128], strides = [1, 1]} : vector<8x512xf32> to vector<8x128xf32>
    %50 = arith.addf %48, %49 : vector<8x128xf32>
    %51 = vector.extract_strided_slice %37 {offsets = [0, 256], sizes = [8, 128], strides = [1, 1]} : vector<8x512xf32> to vector<8x128xf32>
    %52 = arith.addf %50, %51 : vector<8x128xf32>
    %53 = vector.extract_strided_slice %37 {offsets = [0, 384], sizes = [8, 128], strides = [1, 1]} : vector<8x512xf32> to vector<8x128xf32>
    %54 = arith.addf %52, %53 : vector<8x128xf32>
    %c8 = arith.constant 8 : index
    %c0_16 = arith.constant 0 : index
    %55 = vector.load %arg6[%c8, %c0_16] : memref<40x128xf32, #tpu.memory_space<vmem>>, vector<8x128xf32>
    tpu.vector_store %arg6[%c8, %c0_16], %54 {strides = array<i32>} : memref<40x128xf32, #tpu.memory_space<vmem>>, vector<8x128xf32>,
    %56 = vector.extract_strided_slice %37 {offsets = [0, 0], sizes = [8, 128], strides = [1, 1]} : vector<8x512xf32> to vector<8x128xf32>
    %57 = arith.mulf %56, %56 : vector<8x128xf32>
    %58 = vector.extract_strided_slice %37 {offsets = [0, 128], sizes = [8, 128], strides = [1, 1]} : vector<8x512xf32> to vector<8x128xf32>
    %59 = arith.mulf %58, %58 : vector<8x128xf32>
    %60 = arith.addf %57, %59 : vector<8x128xf32>
    %61 = vector.extract_strided_slice %37 {offsets = [0, 256], sizes = [8, 128], strides = [1, 1]} : vector<8x512xf32> to vector<8x128xf32>
    %62 = arith.mulf %61, %61 : vector<8x128xf32>
    %63 = arith.addf %60, %62 : vector<8x128xf32>
    %64 = vector.extract_strided_slice %37 {offsets = [0, 384], sizes = [8, 128], strides = [1, 1]} : vector<8x512xf32> to vector<8x128xf32>
    %65 = arith.mulf %64, %64 : vector<8x128xf32>
    %66 = arith.addf %63, %65 : vector<8x128xf32>
    %c16 = arith.constant 16 : index
    %c0_17 = arith.constant 0 : index
    %67 = vector.load %arg6[%c16, %c0_17] : memref<40x128xf32, #tpu.memory_space<vmem>>, vector<8x128xf32>
    tpu.vector_store %arg6[%c16, %c0_17], %66 {strides = array<i32>} : memref<40x128xf32, #tpu.memory_space<vmem>>, vector<8x128xf32>,
    %68 = vector.extract_strided_slice %39 {offsets = [0, 0], sizes = [8, 128], strides = [1, 1]} : vector<8x512xf32> to vector<8x128xf32>
    %69 = vector.extract_strided_slice %39 {offsets = [0, 128], sizes = [8, 128], strides = [1, 1]} : vector<8x512xf32> to vector<8x128xf32>
    %70 = arith.addf %68, %69 : vector<8x128xf32>
    %71 = vector.extract_strided_slice %39 {offsets = [0, 256], sizes = [8, 128], strides = [1, 1]} : vector<8x512xf32> to vector<8x128xf32>
    %72 = arith.addf %70, %71 : vector<8x128xf32>
    %73 = vector.extract_strided_slice %39 {offsets = [0, 384], sizes = [8, 128], strides = [1, 1]} : vector<8x512xf32> to vector<8x128xf32>
    %74 = arith.addf %72, %73 : vector<8x128xf32>
    %c24 = arith.constant 24 : index
    %c0_18 = arith.constant 0 : index
    %75 = vector.load %arg6[%c24, %c0_18] : memref<40x128xf32, #tpu.memory_space<vmem>>, vector<8x128xf32>
    tpu.vector_store %arg6[%c24, %c0_18], %74 {strides = array<i32>} : memref<40x128xf32, #tpu.memory_space<vmem>>, vector<8x128xf32>,
    %76 = vector.extract_strided_slice %39 {offsets = [0, 0], sizes = [8, 128], strides = [1, 1]} : vector<8x512xf32> to vector<8x128xf32>
    %77 = arith.mulf %76, %76 : vector<8x128xf32>
    %78 = vector.extract_strided_slice %39 {offsets = [0, 128], sizes = [8, 128], strides = [1, 1]} : vector<8x512xf32> to vector<8x128xf32>
    %79 = arith.mulf %78, %78 : vector<8x128xf32>
    %80 = arith.addf %77, %79 : vector<8x128xf32>
    %81 = vector.extract_strided_slice %39 {offsets = [0, 256], sizes = [8, 128], strides = [1, 1]} : vector<8x512xf32> to vector<8x128xf32>
    %82 = arith.mulf %81, %81 : vector<8x128xf32>
    %83 = arith.addf %80, %82 : vector<8x128xf32>
    %84 = vector.extract_strided_slice %39 {offsets = [0, 384], sizes = [8, 128], strides = [1, 1]} : vector<8x512xf32> to vector<8x128xf32>
    %85 = arith.mulf %84, %84 : vector<8x128xf32>
    %86 = arith.addf %83, %85 : vector<8x128xf32>
    %c32 = arith.constant 32 : index
    %c0_19 = arith.constant 0 : index
    %87 = vector.load %arg6[%c32, %c0_19] : memref<40x128xf32, #tpu.memory_space<vmem>>, vector<8x128xf32>
    tpu.vector_store %arg6[%c32, %c0_19], %86 {strides = array<i32>} : memref<40x128xf32, #tpu.memory_space<vmem>>, vector<8x128xf32>,
    %c0_20 = arith.constant 0 : index
    %c0_21 = arith.constant 0 : index
    %88 = vector.load %arg6[%c0_20, %c0_21] : memref<40x128xf32, #tpu.memory_space<vmem>>, vector<40x128xf32>
    %cst_22 = arith.constant dense<0.000000e+00> : vector<40x128xf32>
    %89 = tpu.matmul %88, %17, %cst_22 {dimension_numbers = #tpu.dot_dimension_numbers<[1], [0], [0], [1], [0, 0, 1, 1], [], []>} : vector<40x128xf32>, vector<128x128xf32>, vector<40x128xf32> -> vector<40x128xf32>
    %c0_23 = arith.constant 0 : index
    %c0_24 = arith.constant 0 : index
    %c0_25 = arith.constant 0 : index
    %90 = vector.load %arg7[%c0_23, %c0_24, %c0_25] : memref<5x8x128xf32, #tpu.memory_space<vmem>>, vector<1x8x128xf32>
    %91 = vector.shape_cast %90 : vector<1x8x128xf32> to vector<8x128xf32>
    %92 = vector.extract_strided_slice %89 {offsets = [0, 0], sizes = [8, 128], strides = [1, 1]} : vector<40x128xf32> to vector<8x128xf32>
    %cst_26 = arith.constant dense<0.000000e+00> : vector<8x128xf32>
    %93 = tpu.matmul %33, %92, %cst_26 {dimension_numbers = #tpu.dot_dimension_numbers<[1], [0], [0], [1], [0, 0, 1, 1], [], []>} : vector<8x8xf32>, vector<8x128xf32>, vector<8x128xf32> -> vector<8x128xf32>
    %94 = arith.addf %91, %93 : vector<8x128xf32>
    %c0_27 = arith.constant 0 : index
    %c0_28 = arith.constant 0 : index
    %c0_29 = arith.constant 0 : index
    %95 = vector.load %arg7[%c0_27, %c0_28, %c0_29] : memref<5x8x128xf32, #tpu.memory_space<vmem>>, vector<1x8x128xf32>
    %96 = vector.shape_cast %95 : vector<1x8x128xf32> to vector<8x128xf32>
    %97 = vector.shape_cast %94 : vector<8x128xf32> to vector<1x8x128xf32>
    tpu.vector_store %arg7[%c0_27, %c0_28, %c0_29], %97 {strides = array<i32>} : memref<5x8x128xf32, #tpu.memory_space<vmem>>, vector<1x8x128xf32>,
    %c1 = arith.constant 1 : index
    %c0_30 = arith.constant 0 : index
    %c0_31 = arith.constant 0 : index
    %98 = vector.load %arg7[%c1, %c0_30, %c0_31] : memref<5x8x128xf32, #tpu.memory_space<vmem>>, vector<1x8x128xf32>
    %99 = vector.shape_cast %98 : vector<1x8x128xf32> to vector<8x128xf32>
    %100 = vector.extract_strided_slice %89 {offsets = [8, 0], sizes = [8, 128], strides = [1, 1]} : vector<40x128xf32> to vector<8x128xf32>
    %cst_32 = arith.constant dense<0.000000e+00> : vector<8x128xf32>
    %101 = tpu.matmul %33, %100, %cst_32 {dimension_numbers = #tpu.dot_dimension_numbers<[1], [0], [0], [1], [0, 0, 1, 1], [], []>} : vector<8x8xf32>, vector<8x128xf32>, vector<8x128xf32> -> vector<8x128xf32>
    %102 = arith.addf %99, %101 : vector<8x128xf32>
    %c1_33 = arith.constant 1 : index
    %c0_34 = arith.constant 0 : index
    %c0_35 = arith.constant 0 : index
    %103 = vector.load %arg7[%c1_33, %c0_34, %c0_35] : memref<5x8x128xf32, #tpu.memory_space<vmem>>, vector<1x8x128xf32>
    %104 = vector.shape_cast %103 : vector<1x8x128xf32> to vector<8x128xf32>
    %105 = vector.shape_cast %102 : vector<8x128xf32> to vector<1x8x128xf32>
    tpu.vector_store %arg7[%c1_33, %c0_34, %c0_35], %105 {strides = array<i32>} : memref<5x8x128xf32, #tpu.memory_space<vmem>>, vector<1x8x128xf32>,
    %c2 = arith.constant 2 : index
    %c0_36 = arith.constant 0 : index
    %c0_37 = arith.constant 0 : index
    %106 = vector.load %arg7[%c2, %c0_36, %c0_37] : memref<5x8x128xf32, #tpu.memory_space<vmem>>, vector<1x8x128xf32>
    %107 = vector.shape_cast %106 : vector<1x8x128xf32> to vector<8x128xf32>
    %108 = vector.extract_strided_slice %89 {offsets = [16, 0], sizes = [8, 128], strides = [1, 1]} : vector<40x128xf32> to vector<8x128xf32>
    %cst_38 = arith.constant dense<0.000000e+00> : vector<8x128xf32>
    %109 = tpu.matmul %33, %108, %cst_38 {dimension_numbers = #tpu.dot_dimension_numbers<[1], [0], [0], [1], [0, 0, 1, 1], [], []>} : vector<8x8xf32>, vector<8x128xf32>, vector<8x128xf32> -> vector<8x128xf32>
    %110 = arith.addf %107, %109 : vector<8x128xf32>
    %c2_39 = arith.constant 2 : index
    %c0_40 = arith.constant 0 : index
    %c0_41 = arith.constant 0 : index
    %111 = vector.load %arg7[%c2_39, %c0_40, %c0_41] : memref<5x8x128xf32, #tpu.memory_space<vmem>>, vector<1x8x128xf32>
    %112 = vector.shape_cast %111 : vector<1x8x128xf32> to vector<8x128xf32>
    %113 = vector.shape_cast %110 : vector<8x128xf32> to vector<1x8x128xf32>
    tpu.vector_store %arg7[%c2_39, %c0_40, %c0_41], %113 {strides = array<i32>} : memref<5x8x128xf32, #tpu.memory_space<vmem>>, vector<1x8x128xf32>,
    %c3 = arith.constant 3 : index
    %c0_42 = arith.constant 0 : index
    %c0_43 = arith.constant 0 : index
    %114 = vector.load %arg7[%c3, %c0_42, %c0_43] : memref<5x8x128xf32, #tpu.memory_space<vmem>>, vector<1x8x128xf32>
    %115 = vector.shape_cast %114 : vector<1x8x128xf32> to vector<8x128xf32>
    %116 = vector.extract_strided_slice %89 {offsets = [24, 0], sizes = [8, 128], strides = [1, 1]} : vector<40x128xf32> to vector<8x128xf32>
    %cst_44 = arith.constant dense<0.000000e+00> : vector<8x128xf32>
    %117 = tpu.matmul %33, %116, %cst_44 {dimension_numbers = #tpu.dot_dimension_numbers<[1], [0], [0], [1], [0, 0, 1, 1], [], []>} : vector<8x8xf32>, vector<8x128xf32>, vector<8x128xf32> -> vector<8x128xf32>
    %118 = arith.addf %115, %117 : vector<8x128xf32>
    %c3_45 = arith.constant 3 : index
    %c0_46 = arith.constant 0 : index
    %c0_47 = arith.constant 0 : index
    %119 = vector.load %arg7[%c3_45, %c0_46, %c0_47] : memref<5x8x128xf32, #tpu.memory_space<vmem>>, vector<1x8x128xf32>
    %120 = vector.shape_cast %119 : vector<1x8x128xf32> to vector<8x128xf32>
    %121 = vector.shape_cast %118 : vector<8x128xf32> to vector<1x8x128xf32>
    tpu.vector_store %arg7[%c3_45, %c0_46, %c0_47], %121 {strides = array<i32>} : memref<5x8x128xf32, #tpu.memory_space<vmem>>, vector<1x8x128xf32>,
    %c4 = arith.constant 4 : index
    %c0_48 = arith.constant 0 : index
    %c0_49 = arith.constant 0 : index
    %122 = vector.load %arg7[%c4, %c0_48, %c0_49] : memref<5x8x128xf32, #tpu.memory_space<vmem>>, vector<1x8x128xf32>
    %123 = vector.shape_cast %122 : vector<1x8x128xf32> to vector<8x128xf32>
    %124 = vector.extract_strided_slice %89 {offsets = [32, 0], sizes = [8, 128], strides = [1, 1]} : vector<40x128xf32> to vector<8x128xf32>
    %cst_50 = arith.constant dense<0.000000e+00> : vector<8x128xf32>
    %125 = tpu.matmul %33, %124, %cst_50 {dimension_numbers = #tpu.dot_dimension_numbers<[1], [0], [0], [1], [0, 0, 1, 1], [], []>} : vector<8x8xf32>, vector<8x128xf32>, vector<8x128xf32> -> vector<8x128xf32>
    %126 = arith.addf %123, %125 : vector<8x128xf32>
    %c4_51 = arith.constant 4 : index
    %c0_52 = arith.constant 0 : index
    %c0_53 = arith.constant 0 : index
    %127 = vector.load %arg7[%c4_51, %c0_52, %c0_53] : memref<5x8x128xf32, #tpu.memory_space<vmem>>, vector<1x8x128xf32>
    %128 = vector.shape_cast %127 : vector<1x8x128xf32> to vector<8x128xf32>
    %129 = vector.shape_cast %126 : vector<8x128xf32> to vector<1x8x128xf32>
    tpu.vector_store %arg7[%c4_51, %c0_52, %c0_53], %129 {strides = array<i32>} : memref<5x8x128xf32, #tpu.memory_space<vmem>>, vector<1x8x128xf32>,
    %c0_i32_54 = arith.constant 0 : i32
    %130 = arith.cmpi eq, %arg1, %c0_i32_54 : i32
    %131 = arith.extui %130 : i1 to i32
    %c0_i32_55 = arith.constant 0 : i32
    %132 = arith.cmpi ne, %131, %c0_i32_55 : i32
    scf.if %132 {
      %c0_56 = arith.constant 0 : index
      %c0_57 = arith.constant 0 : index
      %c0_58 = arith.constant 0 : index
      %133 = vector.load %arg7[%c0_56, %c0_57, %c0_58] : memref<5x8x128xf32, #tpu.memory_space<vmem>>, vector<1x8x128xf32>
      %134 = vector.shape_cast %133 : vector<1x8x128xf32> to vector<8x128xf32>
      %cst_59 = arith.constant 3.906250e-03 : f32
      %135 = vector.broadcast %cst_59 : f32 to vector<8x128xf32>
      %136 = arith.mulf %134, %135 : vector<8x128xf32>
      %c1_60 = arith.constant 1 : index
      %c0_61 = arith.constant 0 : index
      %c0_62 = arith.constant 0 : index
      %137 = vector.load %arg7[%c1_60, %c0_61, %c0_62] : memref<5x8x128xf32, #tpu.memory_space<vmem>>, vector<1x8x128xf32>
      %138 = vector.shape_cast %137 : vector<1x8x128xf32> to vector<8x128xf32>
      %cst_63 = arith.constant 3.906250e-03 : f32
      %139 = vector.broadcast %cst_63 : f32 to vector<8x128xf32>
      %140 = arith.mulf %138, %139 : vector<8x128xf32>
      %c2_64 = arith.constant 2 : index
      %c0_65 = arith.constant 0 : index
      %c0_66 = arith.constant 0 : index
      %141 = vector.load %arg7[%c2_64, %c0_65, %c0_66] : memref<5x8x128xf32, #tpu.memory_space<vmem>>, vector<1x8x128xf32>
      %142 = vector.shape_cast %141 : vector<1x8x128xf32> to vector<8x128xf32>
      %cst_67 = arith.constant 3.906250e-03 : f32
      %143 = vector.broadcast %cst_67 : f32 to vector<8x128xf32>
      %144 = arith.mulf %142, %143 : vector<8x128xf32>
      %c3_68 = arith.constant 3 : index
      %c0_69 = arith.constant 0 : index
      %c0_70 = arith.constant 0 : index
      %145 = vector.load %arg7[%c3_68, %c0_69, %c0_70] : memref<5x8x128xf32, #tpu.memory_space<vmem>>, vector<1x8x128xf32>
      %146 = vector.shape_cast %145 : vector<1x8x128xf32> to vector<8x128xf32>
      %cst_71 = arith.constant 3.906250e-03 : f32
      %147 = vector.broadcast %cst_71 : f32 to vector<8x128xf32>
      %148 = arith.mulf %146, %147 : vector<8x128xf32>
      %c4_72 = arith.constant 4 : index
      %c0_73 = arith.constant 0 : index
      %c0_74 = arith.constant 0 : index
      %149 = vector.load %arg7[%c4_72, %c0_73, %c0_74] : memref<5x8x128xf32, #tpu.memory_space<vmem>>, vector<1x8x128xf32>
      %150 = vector.shape_cast %149 : vector<1x8x128xf32> to vector<8x128xf32>
      %cst_75 = arith.constant 3.906250e-03 : f32
      %151 = vector.broadcast %cst_75 : f32 to vector<8x128xf32>
      %152 = arith.mulf %150, %151 : vector<8x128xf32>
      %153 = arith.mulf %140, %140 : vector<8x128xf32>
      %154 = arith.subf %144, %153 : vector<8x128xf32>
      %cst_76 = arith.constant 0.000000e+00 : f32
      %155 = vector.broadcast %cst_76 : f32 to vector<8x128xf32>
      %156 = arith.maximumf %154, %155 : vector<8x128xf32>
      %157 = math.sqrt %156 : vector<8x128xf32>
      %158 = arith.mulf %148, %148 : vector<8x128xf32>
      %159 = arith.subf %152, %158 : vector<8x128xf32>
      %cst_77 = arith.constant 0.000000e+00 : f32
      %160 = vector.broadcast %cst_77 : f32 to vector<8x128xf32>
      %161 = arith.maximumf %159, %160 : vector<8x128xf32>
      %162 = math.sqrt %161 : vector<8x128xf32>
      %cst_78 = arith.constant 5.000000e-01 : f32
      %163 = vector.broadcast %cst_78 : f32 to vector<8x128xf32>
      %164 = arith.maximumf %136, %163 : vector<8x128xf32>
      %165 = arith.divf %157, %164 : vector<8x128xf32>
      %cst_79 = arith.constant 9.99999996E-13 : f32
      %166 = vector.broadcast %cst_79 : f32 to vector<8x128xf32>
      %167 = arith.addf %165, %166 : vector<8x128xf32>
      %168 = math.log %167 : vector<8x128xf32>
      %cst_80 = arith.constant 5.000000e-01 : f32
      %169 = vector.broadcast %cst_80 : f32 to vector<8x128xf32>
      %170 = arith.cmpf ogt, %136, %169 : vector<8x128xf32>
      %171 = arith.divf %162, %164 : vector<8x128xf32>
      %cst_81 = arith.constant 0.000000e+00 : f32
      %172 = vector.broadcast %cst_81 : f32 to vector<8x128xf32>
      %173 = arith.select %170, %171, %172 : vector<8x128xi1>, vector<8x128xf32>
      %cst_82 = arith.constant 9.99999996E-13 : f32
      %174 = vector.broadcast %cst_82 : f32 to vector<8x128xf32>
      %175 = arith.addf %173, %174 : vector<8x128xf32>
      %176 = math.log %175 : vector<8x128xf32>
      %cst_83 = arith.constant -5.000000e+00 : f32
      %177 = vector.broadcast %cst_83 : f32 to vector<8x128xf32>
      %178 = arith.subf %168, %177 : vector<8x128xf32>
      %cst_84 = arith.constant 1.000000e+00 : f32
      %179 = vector.broadcast %cst_84 : f32 to vector<8x128xf32>
      %180 = arith.mulf %179, %178 : vector<8x128xf32>
      %cst_85 = arith.constant -5.000000e+00 : f32
      %181 = vector.broadcast %cst_85 : f32 to vector<8x128xf32>
      %182 = arith.addf %180, %181 : vector<8x128xf32>
      %cst_86 = arith.constant -5.000000e+00 : f32
      %183 = vector.broadcast %cst_86 : f32 to vector<8x128xf32>
      %184 = arith.cmpf ogt, %176, %183 : vector<8x128xf32>
      %cst_87 = arith.constant -5.000000e+00 : f32
      %185 = vector.broadcast %cst_87 : f32 to vector<8x128xf32>
      %186 = arith.cmpf ole, %168, %185 : vector<8x128xf32>
      %187 = arith.andi %184, %186 : vector<8x128xi1>
      %cst_88 = arith.constant -5.000000e+00 : f32
      %188 = vector.broadcast %cst_88 : f32 to vector<8x128xf32>
      %189 = arith.subf %176, %188 : vector<8x128xf32>
      %cst_89 = arith.constant 0.000000e+00 : f32
      %190 = vector.broadcast %cst_89 : f32 to vector<8x128xf32>
      %191 = arith.select %187, %189, %190 : vector<8x128xi1>, vector<8x128xf32>
      %192 = arith.cmpf ogt, %176, %182 : vector<8x128xf32>
      %cst_90 = arith.constant -5.000000e+00 : f32
      %193 = vector.broadcast %cst_90 : f32 to vector<8x128xf32>
      %194 = arith.cmpf ogt, %168, %193 : vector<8x128xf32>
      %195 = arith.andi %192, %194 : vector<8x128xi1>
      %196 = arith.subf %176, %182 : vector<8x128xf32>
      %197 = arith.select %195, %196, %191 : vector<8x128xi1>, vector<8x128xf32>
      %198 = arith.mulf %197, %152 : vector<8x128xf32>
      %c0_91 = arith.constant 0 : index
      %c0_92 = arith.constant 0 : index
      %c0_93 = arith.constant 0 : index
      %199 = vector.load %arg5[%c0_91, %c0_92, %c0_93] : memref<1x8x128xf32, #tpu.memory_space<vmem>>, vector<1x8x128xf32>
      %200 = vector.shape_cast %199 : vector<1x8x128xf32> to vector<8x128xf32>
      %201 = vector.shape_cast %198 : vector<8x128xf32> to vector<1x8x128xf32>
      tpu.vector_store %arg5[%c0_91, %c0_92, %c0_93], %201 {strides = array<i32>} : memref<1x8x128xf32, #tpu.memory_space<vmem>>, vector<1x8x128xf32>,
    } else {
    }
    return
  }
  func.func @transform_0(%arg0: i32, %arg1: i32) -> (i32, i32, i32) {
    %c0_i32 = arith.constant 0 : i32
    %c0_i32_0 = arith.constant 0 : i32
    return %arg0, %arg1, %c0_i32 : i32, i32, i32
  }
  func.func @transform_1(%arg0: i32, %arg1: i32) -> (i32, i32, i32) {
    %c0_i32 = arith.constant 0 : i32
    %c0_i32_0 = arith.constant 0 : i32
    return %arg0, %arg1, %c0_i32 : i32, i32, i32
  }
  func.func @transform_2(%arg0: i32, %arg1: i32) -> (i32, i32, i32) {
    %c0_i32 = arith.constant 0 : i32
    %c0_i32_0 = arith.constant 0 : i32
    return %arg0, %arg1, %c0_i32 : i32, i32, i32
  }
  func.func @transform_3(%arg0: i32, %arg1: i32) -> (i32, i32, i32) {
    %c0_i32 = arith.constant 0 : i32
    %c0_i32_0 = arith.constant 0 : i32
    %c0_i32_1 = arith.constant 0 : i32
    return %arg0, %c0_i32, %c0_i32_0 : i32, i32, i32
  }
}

module attributes {stable_mosaic.version = 11 : i64} {
  func.func @_lo_kernel(%arg0: i32, %arg1: i32, %arg2: memref<1x8x512xf32, #tpu.memory_space<vmem>>, %arg3: memref<1x8x512xf32, #tpu.memory_space<vmem>>, %arg4: memref<1x8x128xf32, #tpu.memory_space<vmem>>, %arg5: memref<64x128xf32, #tpu.memory_space<vmem>>, %arg6: memref<8x8x128xf32, #tpu.memory_space<vmem>>) attributes {dimension_semantics = [#tpu.dimension_semantics<parallel>, #tpu.dimension_semantics<arbitrary>], iteration_bounds = array<i64: 8, 1>, scalar_prefetch = 0 : i64, scratch_operands = 2 : i64, tpu.core_type = #tpu.core_type<tc>, window_params = [{transform_indices = @transform_0, window_bounds = array<i64: 1, 8, 512>}, {transform_indices = @transform_1, window_bounds = array<i64: 1, 8, 512>}, {transform_indices = @transform_2, window_bounds = array<i64: 1, 8, 128>}]} {
    %c0_i32 = arith.constant 0 : i32
    %0 = arith.cmpi eq, %arg1, %c0_i32 : i32
    %1 = arith.extui %0 : i1 to i32
    %c0_i32_0 = arith.constant 0 : i32
    %2 = arith.cmpi ne, %1, %c0_i32_0 : i32
    scf.if %2 {
      %cst_74 = arith.constant 0.000000e+00 : f32
      %219 = vector.broadcast %cst_74 : f32 to vector<8x8x128xf32>
      %c0_75 = arith.constant 0 : index
      %c0_76 = arith.constant 0 : index
      %c0_77 = arith.constant 0 : index
      %220 = vector.load %arg6[%c0_75, %c0_76, %c0_77] : memref<8x8x128xf32, #tpu.memory_space<vmem>>, vector<8x8x128xf32>
      tpu.vector_store %arg6[%c0_75, %c0_76, %c0_77], %219 {strides = array<i32>} : memref<8x8x128xf32, #tpu.memory_space<vmem>>, vector<8x8x128xf32>,
    } else {
    }
    %3 = tpu.iota {dimensions = array<i32: 0>} : vector<128x128xi32>
    %4 = tpu.iota {dimensions = array<i32: 1>} : vector<128x128xi32>
    %c4_i32 = arith.constant 4 : i32
    %5 = vector.broadcast %c4_i32 : i32 to vector<128x128xi32>
    %6 = arith.muli %4, %5 : vector<128x128xi32>
    %7 = arith.cmpi sge, %3, %6 : vector<128x128xi32>
    %c16_i32 = arith.constant 16 : i32
    %8 = vector.broadcast %c16_i32 : i32 to vector<128x128xi32>
    %9 = arith.addi %6, %8 : vector<128x128xi32>
    %10 = arith.cmpi slt, %3, %9 : vector<128x128xi32>
    %11 = arith.andi %7, %10 : vector<128x128xi1>
    %c5_i32 = arith.constant 5 : i32
    %12 = vector.broadcast %c5_i32 : i32 to vector<128x128xi32>
    %13 = arith.cmpi slt, %4, %12 : vector<128x128xi32>
    %14 = arith.andi %11, %13 : vector<128x128xi1>
    %cst = arith.constant 1.000000e+00 : f32
    %cst_1 = arith.constant 0.000000e+00 : f32
    %15 = vector.broadcast %cst : f32 to vector<128x128xf32>
    %16 = vector.broadcast %cst_1 : f32 to vector<128x128xf32>
    %17 = arith.select %14, %15, %16 : vector<128x128xi1>, vector<128x128xf32>
    %18 = tpu.iota {dimensions = array<i32: 0>} : vector<8x8xi32>
    %19 = tpu.iota {dimensions = array<i32: 1>} : vector<8x8xi32>
    %c8_i32 = arith.constant 8 : i32
    %20 = arith.muli %arg1, %c8_i32 : i32
    %21 = vector.broadcast %20 : i32 to vector<8x8xi32>
    %22 = arith.addi %19, %21 : vector<8x8xi32>
    %23 = arith.cmpi sge, %22, %18 : vector<8x8xi32>
    %c4_i32_2 = arith.constant 4 : i32
    %24 = vector.broadcast %c4_i32_2 : i32 to vector<8x8xi32>
    %25 = arith.addi %18, %24 : vector<8x8xi32>
    %26 = arith.cmpi slt, %22, %25 : vector<8x8xi32>
    %27 = arith.andi %23, %26 : vector<8x8xi1>
    %c5_i32_3 = arith.constant 5 : i32
    %28 = vector.broadcast %c5_i32_3 : i32 to vector<8x8xi32>
    %29 = arith.cmpi slt, %18, %28 : vector<8x8xi32>
    %30 = arith.andi %27, %29 : vector<8x8xi1>
    %cst_4 = arith.constant 1.000000e+00 : f32
    %cst_5 = arith.constant 0.000000e+00 : f32
    %31 = vector.broadcast %cst_4 : f32 to vector<8x8xf32>
    %32 = vector.broadcast %cst_5 : f32 to vector<8x8xf32>
    %33 = arith.select %30, %31, %32 : vector<8x8xi1>, vector<8x8xf32>
    %c0 = arith.constant 0 : index
    %c0_6 = arith.constant 0 : index
    %c0_7 = arith.constant 0 : index
    %34 = vector.load %arg2[%c0, %c0_6, %c0_7] : memref<1x8x512xf32, #tpu.memory_space<vmem>>, vector<1x8x512xf32>
    %35 = vector.shape_cast %34 : vector<1x8x512xf32> to vector<8x512xf32>
    %36 = vector.extract_strided_slice %35 {offsets = [0, 0], sizes = [8, 128], strides = [1, 1]} : vector<8x512xf32> to vector<8x128xf32>
    %37 = vector.extract_strided_slice %35 {offsets = [0, 128], sizes = [8, 128], strides = [1, 1]} : vector<8x512xf32> to vector<8x128xf32>
    %38 = arith.addf %36, %37 : vector<8x128xf32>
    %39 = vector.extract_strided_slice %35 {offsets = [0, 256], sizes = [8, 128], strides = [1, 1]} : vector<8x512xf32> to vector<8x128xf32>
    %40 = arith.addf %38, %39 : vector<8x128xf32>
    %41 = vector.extract_strided_slice %35 {offsets = [0, 384], sizes = [8, 128], strides = [1, 1]} : vector<8x512xf32> to vector<8x128xf32>
    %42 = arith.addf %40, %41 : vector<8x128xf32>
    %c0_8 = arith.constant 0 : index
    %c0_9 = arith.constant 0 : index
    %43 = vector.load %arg5[%c0_8, %c0_9] : memref<64x128xf32, #tpu.memory_space<vmem>>, vector<8x128xf32>
    tpu.vector_store %arg5[%c0_8, %c0_9], %42 {strides = array<i32>} : memref<64x128xf32, #tpu.memory_space<vmem>>, vector<8x128xf32>,
    %44 = vector.extract_strided_slice %35 {offsets = [0, 0], sizes = [8, 128], strides = [1, 1]} : vector<8x512xf32> to vector<8x128xf32>
    %45 = arith.mulf %44, %44 : vector<8x128xf32>
    %46 = vector.extract_strided_slice %35 {offsets = [0, 128], sizes = [8, 128], strides = [1, 1]} : vector<8x512xf32> to vector<8x128xf32>
    %47 = arith.mulf %46, %46 : vector<8x128xf32>
    %48 = arith.addf %45, %47 : vector<8x128xf32>
    %49 = vector.extract_strided_slice %35 {offsets = [0, 256], sizes = [8, 128], strides = [1, 1]} : vector<8x512xf32> to vector<8x128xf32>
    %50 = arith.mulf %49, %49 : vector<8x128xf32>
    %51 = arith.addf %48, %50 : vector<8x128xf32>
    %52 = vector.extract_strided_slice %35 {offsets = [0, 384], sizes = [8, 128], strides = [1, 1]} : vector<8x512xf32> to vector<8x128xf32>
    %53 = arith.mulf %52, %52 : vector<8x128xf32>
    %54 = arith.addf %51, %53 : vector<8x128xf32>
    %c8 = arith.constant 8 : index
    %c0_10 = arith.constant 0 : index
    %55 = vector.load %arg5[%c8, %c0_10] : memref<64x128xf32, #tpu.memory_space<vmem>>, vector<8x128xf32>
    tpu.vector_store %arg5[%c8, %c0_10], %54 {strides = array<i32>} : memref<64x128xf32, #tpu.memory_space<vmem>>, vector<8x128xf32>,
    %56 = vector.extract_strided_slice %35 {offsets = [0, 0], sizes = [8, 128], strides = [1, 1]} : vector<8x512xf32> to vector<8x128xf32>
    %57 = arith.mulf %56, %56 : vector<8x128xf32>
    %58 = arith.mulf %57, %56 : vector<8x128xf32>
    %59 = vector.extract_strided_slice %35 {offsets = [0, 128], sizes = [8, 128], strides = [1, 1]} : vector<8x512xf32> to vector<8x128xf32>
    %60 = arith.mulf %59, %59 : vector<8x128xf32>
    %61 = arith.mulf %60, %59 : vector<8x128xf32>
    %62 = arith.addf %58, %61 : vector<8x128xf32>
    %63 = vector.extract_strided_slice %35 {offsets = [0, 256], sizes = [8, 128], strides = [1, 1]} : vector<8x512xf32> to vector<8x128xf32>
    %64 = arith.mulf %63, %63 : vector<8x128xf32>
    %65 = arith.mulf %64, %63 : vector<8x128xf32>
    %66 = arith.addf %62, %65 : vector<8x128xf32>
    %67 = vector.extract_strided_slice %35 {offsets = [0, 384], sizes = [8, 128], strides = [1, 1]} : vector<8x512xf32> to vector<8x128xf32>
    %68 = arith.mulf %67, %67 : vector<8x128xf32>
    %69 = arith.mulf %68, %67 : vector<8x128xf32>
    %70 = arith.addf %66, %69 : vector<8x128xf32>
    %c16 = arith.constant 16 : index
    %c0_11 = arith.constant 0 : index
    %71 = vector.load %arg5[%c16, %c0_11] : memref<64x128xf32, #tpu.memory_space<vmem>>, vector<8x128xf32>
    tpu.vector_store %arg5[%c16, %c0_11], %70 {strides = array<i32>} : memref<64x128xf32, #tpu.memory_space<vmem>>, vector<8x128xf32>,
    %72 = vector.extract_strided_slice %35 {offsets = [0, 0], sizes = [8, 128], strides = [1, 1]} : vector<8x512xf32> to vector<8x128xf32>
    %73 = arith.mulf %72, %72 : vector<8x128xf32>
    %74 = arith.mulf %73, %72 : vector<8x128xf32>
    %75 = arith.mulf %74, %72 : vector<8x128xf32>
    %76 = vector.extract_strided_slice %35 {offsets = [0, 128], sizes = [8, 128], strides = [1, 1]} : vector<8x512xf32> to vector<8x128xf32>
    %77 = arith.mulf %76, %76 : vector<8x128xf32>
    %78 = arith.mulf %77, %76 : vector<8x128xf32>
    %79 = arith.mulf %78, %76 : vector<8x128xf32>
    %80 = arith.addf %75, %79 : vector<8x128xf32>
    %81 = vector.extract_strided_slice %35 {offsets = [0, 256], sizes = [8, 128], strides = [1, 1]} : vector<8x512xf32> to vector<8x128xf32>
    %82 = arith.mulf %81, %81 : vector<8x128xf32>
    %83 = arith.mulf %82, %81 : vector<8x128xf32>
    %84 = arith.mulf %83, %81 : vector<8x128xf32>
    %85 = arith.addf %80, %84 : vector<8x128xf32>
    %86 = vector.extract_strided_slice %35 {offsets = [0, 384], sizes = [8, 128], strides = [1, 1]} : vector<8x512xf32> to vector<8x128xf32>
    %87 = arith.mulf %86, %86 : vector<8x128xf32>
    %88 = arith.mulf %87, %86 : vector<8x128xf32>
    %89 = arith.mulf %88, %86 : vector<8x128xf32>
    %90 = arith.addf %85, %89 : vector<8x128xf32>
    %c24 = arith.constant 24 : index
    %c0_12 = arith.constant 0 : index
    %91 = vector.load %arg5[%c24, %c0_12] : memref<64x128xf32, #tpu.memory_space<vmem>>, vector<8x128xf32>
    tpu.vector_store %arg5[%c24, %c0_12], %90 {strides = array<i32>} : memref<64x128xf32, #tpu.memory_space<vmem>>, vector<8x128xf32>,
    %c0_13 = arith.constant 0 : index
    %c0_14 = arith.constant 0 : index
    %c0_15 = arith.constant 0 : index
    %92 = vector.load %arg3[%c0_13, %c0_14, %c0_15] : memref<1x8x512xf32, #tpu.memory_space<vmem>>, vector<1x8x512xf32>
    %93 = vector.shape_cast %92 : vector<1x8x512xf32> to vector<8x512xf32>
    %94 = vector.extract_strided_slice %93 {offsets = [0, 0], sizes = [8, 128], strides = [1, 1]} : vector<8x512xf32> to vector<8x128xf32>
    %95 = vector.extract_strided_slice %93 {offsets = [0, 128], sizes = [8, 128], strides = [1, 1]} : vector<8x512xf32> to vector<8x128xf32>
    %96 = arith.addf %94, %95 : vector<8x128xf32>
    %97 = vector.extract_strided_slice %93 {offsets = [0, 256], sizes = [8, 128], strides = [1, 1]} : vector<8x512xf32> to vector<8x128xf32>
    %98 = arith.addf %96, %97 : vector<8x128xf32>
    %99 = vector.extract_strided_slice %93 {offsets = [0, 384], sizes = [8, 128], strides = [1, 1]} : vector<8x512xf32> to vector<8x128xf32>
    %100 = arith.addf %98, %99 : vector<8x128xf32>
    %c32 = arith.constant 32 : index
    %c0_16 = arith.constant 0 : index
    %101 = vector.load %arg5[%c32, %c0_16] : memref<64x128xf32, #tpu.memory_space<vmem>>, vector<8x128xf32>
    tpu.vector_store %arg5[%c32, %c0_16], %100 {strides = array<i32>} : memref<64x128xf32, #tpu.memory_space<vmem>>, vector<8x128xf32>,
    %102 = vector.extract_strided_slice %93 {offsets = [0, 0], sizes = [8, 128], strides = [1, 1]} : vector<8x512xf32> to vector<8x128xf32>
    %103 = arith.mulf %102, %102 : vector<8x128xf32>
    %104 = vector.extract_strided_slice %93 {offsets = [0, 128], sizes = [8, 128], strides = [1, 1]} : vector<8x512xf32> to vector<8x128xf32>
    %105 = arith.mulf %104, %104 : vector<8x128xf32>
    %106 = arith.addf %103, %105 : vector<8x128xf32>
    %107 = vector.extract_strided_slice %93 {offsets = [0, 256], sizes = [8, 128], strides = [1, 1]} : vector<8x512xf32> to vector<8x128xf32>
    %108 = arith.mulf %107, %107 : vector<8x128xf32>
    %109 = arith.addf %106, %108 : vector<8x128xf32>
    %110 = vector.extract_strided_slice %93 {offsets = [0, 384], sizes = [8, 128], strides = [1, 1]} : vector<8x512xf32> to vector<8x128xf32>
    %111 = arith.mulf %110, %110 : vector<8x128xf32>
    %112 = arith.addf %109, %111 : vector<8x128xf32>
    %c40 = arith.constant 40 : index
    %c0_17 = arith.constant 0 : index
    %113 = vector.load %arg5[%c40, %c0_17] : memref<64x128xf32, #tpu.memory_space<vmem>>, vector<8x128xf32>
    tpu.vector_store %arg5[%c40, %c0_17], %112 {strides = array<i32>} : memref<64x128xf32, #tpu.memory_space<vmem>>, vector<8x128xf32>,
    %114 = vector.extract_strided_slice %93 {offsets = [0, 0], sizes = [8, 128], strides = [1, 1]} : vector<8x512xf32> to vector<8x128xf32>
    %115 = arith.mulf %114, %114 : vector<8x128xf32>
    %116 = arith.mulf %115, %114 : vector<8x128xf32>
    %117 = vector.extract_strided_slice %93 {offsets = [0, 128], sizes = [8, 128], strides = [1, 1]} : vector<8x512xf32> to vector<8x128xf32>
    %118 = arith.mulf %117, %117 : vector<8x128xf32>
    %119 = arith.mulf %118, %117 : vector<8x128xf32>
    %120 = arith.addf %116, %119 : vector<8x128xf32>
    %121 = vector.extract_strided_slice %93 {offsets = [0, 256], sizes = [8, 128], strides = [1, 1]} : vector<8x512xf32> to vector<8x128xf32>
    %122 = arith.mulf %121, %121 : vector<8x128xf32>
    %123 = arith.mulf %122, %121 : vector<8x128xf32>
    %124 = arith.addf %120, %123 : vector<8x128xf32>
    %125 = vector.extract_strided_slice %93 {offsets = [0, 384], sizes = [8, 128], strides = [1, 1]} : vector<8x512xf32> to vector<8x128xf32>
    %126 = arith.mulf %125, %125 : vector<8x128xf32>
    %127 = arith.mulf %126, %125 : vector<8x128xf32>
    %128 = arith.addf %124, %127 : vector<8x128xf32>
    %c48 = arith.constant 48 : index
    %c0_18 = arith.constant 0 : index
    %129 = vector.load %arg5[%c48, %c0_18] : memref<64x128xf32, #tpu.memory_space<vmem>>, vector<8x128xf32>
    tpu.vector_store %arg5[%c48, %c0_18], %128 {strides = array<i32>} : memref<64x128xf32, #tpu.memory_space<vmem>>, vector<8x128xf32>,
    %130 = vector.extract_strided_slice %93 {offsets = [0, 0], sizes = [8, 128], strides = [1, 1]} : vector<8x512xf32> to vector<8x128xf32>
    %131 = arith.mulf %130, %130 : vector<8x128xf32>
    %132 = arith.mulf %131, %130 : vector<8x128xf32>
    %133 = arith.mulf %132, %130 : vector<8x128xf32>
    %134 = vector.extract_strided_slice %93 {offsets = [0, 128], sizes = [8, 128], strides = [1, 1]} : vector<8x512xf32> to vector<8x128xf32>
    %135 = arith.mulf %134, %134 : vector<8x128xf32>
    %136 = arith.mulf %135, %134 : vector<8x128xf32>
    %137 = arith.mulf %136, %134 : vector<8x128xf32>
    %138 = arith.addf %133, %137 : vector<8x128xf32>
    %139 = vector.extract_strided_slice %93 {offsets = [0, 256], sizes = [8, 128], strides = [1, 1]} : vector<8x512xf32> to vector<8x128xf32>
    %140 = arith.mulf %139, %139 : vector<8x128xf32>
    %141 = arith.mulf %140, %139 : vector<8x128xf32>
    %142 = arith.mulf %141, %139 : vector<8x128xf32>
    %143 = arith.addf %138, %142 : vector<8x128xf32>
    %144 = vector.extract_strided_slice %93 {offsets = [0, 384], sizes = [8, 128], strides = [1, 1]} : vector<8x512xf32> to vector<8x128xf32>
    %145 = arith.mulf %144, %144 : vector<8x128xf32>
    %146 = arith.mulf %145, %144 : vector<8x128xf32>
    %147 = arith.mulf %146, %144 : vector<8x128xf32>
    %148 = arith.addf %143, %147 : vector<8x128xf32>
    %c56 = arith.constant 56 : index
    %c0_19 = arith.constant 0 : index
    %149 = vector.load %arg5[%c56, %c0_19] : memref<64x128xf32, #tpu.memory_space<vmem>>, vector<8x128xf32>
    tpu.vector_store %arg5[%c56, %c0_19], %148 {strides = array<i32>} : memref<64x128xf32, #tpu.memory_space<vmem>>, vector<8x128xf32>,
    %c0_20 = arith.constant 0 : index
    %c0_21 = arith.constant 0 : index
    %150 = vector.load %arg5[%c0_20, %c0_21] : memref<64x128xf32, #tpu.memory_space<vmem>>, vector<64x128xf32>
    %cst_22 = arith.constant dense<0.000000e+00> : vector<64x128xf32>
    %151 = tpu.matmul %150, %17, %cst_22 {dimension_numbers = #tpu.dot_dimension_numbers<[1], [0], [0], [1], [0, 0, 1, 1], [], []>} : vector<64x128xf32>, vector<128x128xf32>, vector<64x128xf32> -> vector<64x128xf32>
    %c0_23 = arith.constant 0 : index
    %c0_24 = arith.constant 0 : index
    %c0_25 = arith.constant 0 : index
    %152 = vector.load %arg6[%c0_23, %c0_24, %c0_25] : memref<8x8x128xf32, #tpu.memory_space<vmem>>, vector<1x8x128xf32>
    %153 = vector.shape_cast %152 : vector<1x8x128xf32> to vector<8x128xf32>
    %154 = vector.extract_strided_slice %151 {offsets = [0, 0], sizes = [8, 128], strides = [1, 1]} : vector<64x128xf32> to vector<8x128xf32>
    %cst_26 = arith.constant dense<0.000000e+00> : vector<8x128xf32>
    %155 = tpu.matmul %33, %154, %cst_26 {dimension_numbers = #tpu.dot_dimension_numbers<[1], [0], [0], [1], [0, 0, 1, 1], [], []>} : vector<8x8xf32>, vector<8x128xf32>, vector<8x128xf32> -> vector<8x128xf32>
    %156 = arith.addf %153, %155 : vector<8x128xf32>
    %c0_27 = arith.constant 0 : index
    %c0_28 = arith.constant 0 : index
    %c0_29 = arith.constant 0 : index
    %157 = vector.load %arg6[%c0_27, %c0_28, %c0_29] : memref<8x8x128xf32, #tpu.memory_space<vmem>>, vector<1x8x128xf32>
    %158 = vector.shape_cast %157 : vector<1x8x128xf32> to vector<8x128xf32>
    %159 = vector.shape_cast %156 : vector<8x128xf32> to vector<1x8x128xf32>
    tpu.vector_store %arg6[%c0_27, %c0_28, %c0_29], %159 {strides = array<i32>} : memref<8x8x128xf32, #tpu.memory_space<vmem>>, vector<1x8x128xf32>,
    %c1 = arith.constant 1 : index
    %c0_30 = arith.constant 0 : index
    %c0_31 = arith.constant 0 : index
    %160 = vector.load %arg6[%c1, %c0_30, %c0_31] : memref<8x8x128xf32, #tpu.memory_space<vmem>>, vector<1x8x128xf32>
    %161 = vector.shape_cast %160 : vector<1x8x128xf32> to vector<8x128xf32>
    %162 = vector.extract_strided_slice %151 {offsets = [8, 0], sizes = [8, 128], strides = [1, 1]} : vector<64x128xf32> to vector<8x128xf32>
    %cst_32 = arith.constant dense<0.000000e+00> : vector<8x128xf32>
    %163 = tpu.matmul %33, %162, %cst_32 {dimension_numbers = #tpu.dot_dimension_numbers<[1], [0], [0], [1], [0, 0, 1, 1], [], []>} : vector<8x8xf32>, vector<8x128xf32>, vector<8x128xf32> -> vector<8x128xf32>
    %164 = arith.addf %161, %163 : vector<8x128xf32>
    %c1_33 = arith.constant 1 : index
    %c0_34 = arith.constant 0 : index
    %c0_35 = arith.constant 0 : index
    %165 = vector.load %arg6[%c1_33, %c0_34, %c0_35] : memref<8x8x128xf32, #tpu.memory_space<vmem>>, vector<1x8x128xf32>
    %166 = vector.shape_cast %165 : vector<1x8x128xf32> to vector<8x128xf32>
    %167 = vector.shape_cast %164 : vector<8x128xf32> to vector<1x8x128xf32>
    tpu.vector_store %arg6[%c1_33, %c0_34, %c0_35], %167 {strides = array<i32>} : memref<8x8x128xf32, #tpu.memory_space<vmem>>, vector<1x8x128xf32>,
    %c2 = arith.constant 2 : index
    %c0_36 = arith.constant 0 : index
    %c0_37 = arith.constant 0 : index
    %168 = vector.load %arg6[%c2, %c0_36, %c0_37] : memref<8x8x128xf32, #tpu.memory_space<vmem>>, vector<1x8x128xf32>
    %169 = vector.shape_cast %168 : vector<1x8x128xf32> to vector<8x128xf32>
    %170 = vector.extract_strided_slice %151 {offsets = [16, 0], sizes = [8, 128], strides = [1, 1]} : vector<64x128xf32> to vector<8x128xf32>
    %cst_38 = arith.constant dense<0.000000e+00> : vector<8x128xf32>
    %171 = tpu.matmul %33, %170, %cst_38 {dimension_numbers = #tpu.dot_dimension_numbers<[1], [0], [0], [1], [0, 0, 1, 1], [], []>} : vector<8x8xf32>, vector<8x128xf32>, vector<8x128xf32> -> vector<8x128xf32>
    %172 = arith.addf %169, %171 : vector<8x128xf32>
    %c2_39 = arith.constant 2 : index
    %c0_40 = arith.constant 0 : index
    %c0_41 = arith.constant 0 : index
    %173 = vector.load %arg6[%c2_39, %c0_40, %c0_41] : memref<8x8x128xf32, #tpu.memory_space<vmem>>, vector<1x8x128xf32>
    %174 = vector.shape_cast %173 : vector<1x8x128xf32> to vector<8x128xf32>
    %175 = vector.shape_cast %172 : vector<8x128xf32> to vector<1x8x128xf32>
    tpu.vector_store %arg6[%c2_39, %c0_40, %c0_41], %175 {strides = array<i32>} : memref<8x8x128xf32, #tpu.memory_space<vmem>>, vector<1x8x128xf32>,
    %c3 = arith.constant 3 : index
    %c0_42 = arith.constant 0 : index
    %c0_43 = arith.constant 0 : index
    %176 = vector.load %arg6[%c3, %c0_42, %c0_43] : memref<8x8x128xf32, #tpu.memory_space<vmem>>, vector<1x8x128xf32>
    %177 = vector.shape_cast %176 : vector<1x8x128xf32> to vector<8x128xf32>
    %178 = vector.extract_strided_slice %151 {offsets = [24, 0], sizes = [8, 128], strides = [1, 1]} : vector<64x128xf32> to vector<8x128xf32>
    %cst_44 = arith.constant dense<0.000000e+00> : vector<8x128xf32>
    %179 = tpu.matmul %33, %178, %cst_44 {dimension_numbers = #tpu.dot_dimension_numbers<[1], [0], [0], [1], [0, 0, 1, 1], [], []>} : vector<8x8xf32>, vector<8x128xf32>, vector<8x128xf32> -> vector<8x128xf32>
    %180 = arith.addf %177, %179 : vector<8x128xf32>
    %c3_45 = arith.constant 3 : index
    %c0_46 = arith.constant 0 : index
    %c0_47 = arith.constant 0 : index
    %181 = vector.load %arg6[%c3_45, %c0_46, %c0_47] : memref<8x8x128xf32, #tpu.memory_space<vmem>>, vector<1x8x128xf32>
    %182 = vector.shape_cast %181 : vector<1x8x128xf32> to vector<8x128xf32>
    %183 = vector.shape_cast %180 : vector<8x128xf32> to vector<1x8x128xf32>
    tpu.vector_store %arg6[%c3_45, %c0_46, %c0_47], %183 {strides = array<i32>} : memref<8x8x128xf32, #tpu.memory_space<vmem>>, vector<1x8x128xf32>,
    %c4 = arith.constant 4 : index
    %c0_48 = arith.constant 0 : index
    %c0_49 = arith.constant 0 : index
    %184 = vector.load %arg6[%c4, %c0_48, %c0_49] : memref<8x8x128xf32, #tpu.memory_space<vmem>>, vector<1x8x128xf32>
    %185 = vector.shape_cast %184 : vector<1x8x128xf32> to vector<8x128xf32>
    %186 = vector.extract_strided_slice %151 {offsets = [32, 0], sizes = [8, 128], strides = [1, 1]} : vector<64x128xf32> to vector<8x128xf32>
    %cst_50 = arith.constant dense<0.000000e+00> : vector<8x128xf32>
    %187 = tpu.matmul %33, %186, %cst_50 {dimension_numbers = #tpu.dot_dimension_numbers<[1], [0], [0], [1], [0, 0, 1, 1], [], []>} : vector<8x8xf32>, vector<8x128xf32>, vector<8x128xf32> -> vector<8x128xf32>
    %188 = arith.addf %185, %187 : vector<8x128xf32>
    %c4_51 = arith.constant 4 : index
    %c0_52 = arith.constant 0 : index
    %c0_53 = arith.constant 0 : index
    %189 = vector.load %arg6[%c4_51, %c0_52, %c0_53] : memref<8x8x128xf32, #tpu.memory_space<vmem>>, vector<1x8x128xf32>
    %190 = vector.shape_cast %189 : vector<1x8x128xf32> to vector<8x128xf32>
    %191 = vector.shape_cast %188 : vector<8x128xf32> to vector<1x8x128xf32>
    tpu.vector_store %arg6[%c4_51, %c0_52, %c0_53], %191 {strides = array<i32>} : memref<8x8x128xf32, #tpu.memory_space<vmem>>, vector<1x8x128xf32>,
    %c5 = arith.constant 5 : index
    %c0_54 = arith.constant 0 : index
    %c0_55 = arith.constant 0 : index
    %192 = vector.load %arg6[%c5, %c0_54, %c0_55] : memref<8x8x128xf32, #tpu.memory_space<vmem>>, vector<1x8x128xf32>
    %193 = vector.shape_cast %192 : vector<1x8x128xf32> to vector<8x128xf32>
    %194 = vector.extract_strided_slice %151 {offsets = [40, 0], sizes = [8, 128], strides = [1, 1]} : vector<64x128xf32> to vector<8x128xf32>
    %cst_56 = arith.constant dense<0.000000e+00> : vector<8x128xf32>
    %195 = tpu.matmul %33, %194, %cst_56 {dimension_numbers = #tpu.dot_dimension_numbers<[1], [0], [0], [1], [0, 0, 1, 1], [], []>} : vector<8x8xf32>, vector<8x128xf32>, vector<8x128xf32> -> vector<8x128xf32>
    %196 = arith.addf %193, %195 : vector<8x128xf32>
    %c5_57 = arith.constant 5 : index
    %c0_58 = arith.constant 0 : index
    %c0_59 = arith.constant 0 : index
    %197 = vector.load %arg6[%c5_57, %c0_58, %c0_59] : memref<8x8x128xf32, #tpu.memory_space<vmem>>, vector<1x8x128xf32>
    %198 = vector.shape_cast %197 : vector<1x8x128xf32> to vector<8x128xf32>
    %199 = vector.shape_cast %196 : vector<8x128xf32> to vector<1x8x128xf32>
    tpu.vector_store %arg6[%c5_57, %c0_58, %c0_59], %199 {strides = array<i32>} : memref<8x8x128xf32, #tpu.memory_space<vmem>>, vector<1x8x128xf32>,
    %c6 = arith.constant 6 : index
    %c0_60 = arith.constant 0 : index
    %c0_61 = arith.constant 0 : index
    %200 = vector.load %arg6[%c6, %c0_60, %c0_61] : memref<8x8x128xf32, #tpu.memory_space<vmem>>, vector<1x8x128xf32>
    %201 = vector.shape_cast %200 : vector<1x8x128xf32> to vector<8x128xf32>
    %202 = vector.extract_strided_slice %151 {offsets = [48, 0], sizes = [8, 128], strides = [1, 1]} : vector<64x128xf32> to vector<8x128xf32>
    %cst_62 = arith.constant dense<0.000000e+00> : vector<8x128xf32>
    %203 = tpu.matmul %33, %202, %cst_62 {dimension_numbers = #tpu.dot_dimension_numbers<[1], [0], [0], [1], [0, 0, 1, 1], [], []>} : vector<8x8xf32>, vector<8x128xf32>, vector<8x128xf32> -> vector<8x128xf32>
    %204 = arith.addf %201, %203 : vector<8x128xf32>
    %c6_63 = arith.constant 6 : index
    %c0_64 = arith.constant 0 : index
    %c0_65 = arith.constant 0 : index
    %205 = vector.load %arg6[%c6_63, %c0_64, %c0_65] : memref<8x8x128xf32, #tpu.memory_space<vmem>>, vector<1x8x128xf32>
    %206 = vector.shape_cast %205 : vector<1x8x128xf32> to vector<8x128xf32>
    %207 = vector.shape_cast %204 : vector<8x128xf32> to vector<1x8x128xf32>
    tpu.vector_store %arg6[%c6_63, %c0_64, %c0_65], %207 {strides = array<i32>} : memref<8x8x128xf32, #tpu.memory_space<vmem>>, vector<1x8x128xf32>,
    %c7 = arith.constant 7 : index
    %c0_66 = arith.constant 0 : index
    %c0_67 = arith.constant 0 : index
    %208 = vector.load %arg6[%c7, %c0_66, %c0_67] : memref<8x8x128xf32, #tpu.memory_space<vmem>>, vector<1x8x128xf32>
    %209 = vector.shape_cast %208 : vector<1x8x128xf32> to vector<8x128xf32>
    %210 = vector.extract_strided_slice %151 {offsets = [56, 0], sizes = [8, 128], strides = [1, 1]} : vector<64x128xf32> to vector<8x128xf32>
    %cst_68 = arith.constant dense<0.000000e+00> : vector<8x128xf32>
    %211 = tpu.matmul %33, %210, %cst_68 {dimension_numbers = #tpu.dot_dimension_numbers<[1], [0], [0], [1], [0, 0, 1, 1], [], []>} : vector<8x8xf32>, vector<8x128xf32>, vector<8x128xf32> -> vector<8x128xf32>
    %212 = arith.addf %209, %211 : vector<8x128xf32>
    %c7_69 = arith.constant 7 : index
    %c0_70 = arith.constant 0 : index
    %c0_71 = arith.constant 0 : index
    %213 = vector.load %arg6[%c7_69, %c0_70, %c0_71] : memref<8x8x128xf32, #tpu.memory_space<vmem>>, vector<1x8x128xf32>
    %214 = vector.shape_cast %213 : vector<1x8x128xf32> to vector<8x128xf32>
    %215 = vector.shape_cast %212 : vector<8x128xf32> to vector<1x8x128xf32>
    tpu.vector_store %arg6[%c7_69, %c0_70, %c0_71], %215 {strides = array<i32>} : memref<8x8x128xf32, #tpu.memory_space<vmem>>, vector<1x8x128xf32>,
    %c0_i32_72 = arith.constant 0 : i32
    %216 = arith.cmpi eq, %arg1, %c0_i32_72 : i32
    %217 = arith.extui %216 : i1 to i32
    %c0_i32_73 = arith.constant 0 : i32
    %218 = arith.cmpi ne, %217, %c0_i32_73 : i32
    scf.if %218 {
      %c0_74 = arith.constant 0 : index
      %c0_75 = arith.constant 0 : index
      %c0_76 = arith.constant 0 : index
      %219 = vector.load %arg6[%c0_74, %c0_75, %c0_76] : memref<8x8x128xf32, #tpu.memory_space<vmem>>, vector<1x8x128xf32>
      %220 = vector.shape_cast %219 : vector<1x8x128xf32> to vector<8x128xf32>
      %cst_77 = arith.constant 3.906250e-03 : f32
      %221 = vector.broadcast %cst_77 : f32 to vector<8x128xf32>
      %222 = arith.mulf %220, %221 : vector<8x128xf32>
      %c1_78 = arith.constant 1 : index
      %c0_79 = arith.constant 0 : index
      %c0_80 = arith.constant 0 : index
      %223 = vector.load %arg6[%c1_78, %c0_79, %c0_80] : memref<8x8x128xf32, #tpu.memory_space<vmem>>, vector<1x8x128xf32>
      %224 = vector.shape_cast %223 : vector<1x8x128xf32> to vector<8x128xf32>
      %cst_81 = arith.constant 3.906250e-03 : f32
      %225 = vector.broadcast %cst_81 : f32 to vector<8x128xf32>
      %226 = arith.mulf %224, %225 : vector<8x128xf32>
      %c2_82 = arith.constant 2 : index
      %c0_83 = arith.constant 0 : index
      %c0_84 = arith.constant 0 : index
      %227 = vector.load %arg6[%c2_82, %c0_83, %c0_84] : memref<8x8x128xf32, #tpu.memory_space<vmem>>, vector<1x8x128xf32>
      %228 = vector.shape_cast %227 : vector<1x8x128xf32> to vector<8x128xf32>
      %cst_85 = arith.constant 3.906250e-03 : f32
      %229 = vector.broadcast %cst_85 : f32 to vector<8x128xf32>
      %230 = arith.mulf %228, %229 : vector<8x128xf32>
      %c3_86 = arith.constant 3 : index
      %c0_87 = arith.constant 0 : index
      %c0_88 = arith.constant 0 : index
      %231 = vector.load %arg6[%c3_86, %c0_87, %c0_88] : memref<8x8x128xf32, #tpu.memory_space<vmem>>, vector<1x8x128xf32>
      %232 = vector.shape_cast %231 : vector<1x8x128xf32> to vector<8x128xf32>
      %cst_89 = arith.constant 3.906250e-03 : f32
      %233 = vector.broadcast %cst_89 : f32 to vector<8x128xf32>
      %234 = arith.mulf %232, %233 : vector<8x128xf32>
      %235 = arith.mulf %222, %222 : vector<8x128xf32>
      %236 = arith.subf %226, %235 : vector<8x128xf32>
      %cst_90 = arith.constant 0.000000e+00 : f32
      %237 = vector.broadcast %cst_90 : f32 to vector<8x128xf32>
      %238 = arith.maximumf %236, %237 : vector<8x128xf32>
      %239 = math.sqrt %238 : vector<8x128xf32>
      %cst_91 = arith.constant 3.000000e+00 : f32
      %240 = vector.broadcast %cst_91 : f32 to vector<8x128xf32>
      %241 = arith.mulf %240, %222 : vector<8x128xf32>
      %242 = arith.mulf %241, %226 : vector<8x128xf32>
      %243 = arith.subf %230, %242 : vector<8x128xf32>
      %cst_92 = arith.constant 2.000000e+00 : f32
      %244 = vector.broadcast %cst_92 : f32 to vector<8x128xf32>
      %245 = arith.mulf %244, %222 : vector<8x128xf32>
      %246 = arith.mulf %245, %222 : vector<8x128xf32>
      %247 = arith.mulf %246, %222 : vector<8x128xf32>
      %248 = arith.addf %243, %247 : vector<8x128xf32>
      %cst_93 = arith.constant 4.000000e+00 : f32
      %249 = vector.broadcast %cst_93 : f32 to vector<8x128xf32>
      %250 = arith.mulf %249, %222 : vector<8x128xf32>
      %251 = arith.mulf %250, %230 : vector<8x128xf32>
      %252 = arith.subf %234, %251 : vector<8x128xf32>
      %cst_94 = arith.constant 6.000000e+00 : f32
      %253 = vector.broadcast %cst_94 : f32 to vector<8x128xf32>
      %254 = arith.mulf %253, %222 : vector<8x128xf32>
      %255 = arith.mulf %254, %222 : vector<8x128xf32>
      %256 = arith.mulf %255, %226 : vector<8x128xf32>
      %257 = arith.addf %252, %256 : vector<8x128xf32>
      %cst_95 = arith.constant 3.000000e+00 : f32
      %258 = vector.broadcast %cst_95 : f32 to vector<8x128xf32>
      %259 = arith.mulf %258, %222 : vector<8x128xf32>
      %260 = arith.mulf %259, %222 : vector<8x128xf32>
      %261 = arith.mulf %260, %222 : vector<8x128xf32>
      %262 = arith.mulf %261, %222 : vector<8x128xf32>
      %263 = arith.subf %257, %262 : vector<8x128xf32>
      %cst_96 = arith.constant 9.99999996E-13 : f32
      %264 = vector.broadcast %cst_96 : f32 to vector<8x128xf32>
      %265 = arith.cmpf ogt, %238, %264 : vector<8x128xf32>
      %266 = arith.mulf %238, %239 : vector<8x128xf32>
      %cst_97 = arith.constant 9.99999996E-13 : f32
      %267 = vector.broadcast %cst_97 : f32 to vector<8x128xf32>
      %268 = arith.addf %266, %267 : vector<8x128xf32>
      %269 = arith.divf %248, %268 : vector<8x128xf32>
      %cst_98 = arith.constant 0.000000e+00 : f32
      %270 = vector.broadcast %cst_98 : f32 to vector<8x128xf32>
      %271 = arith.select %265, %269, %270 : vector<8x128xi1>, vector<8x128xf32>
      %272 = arith.mulf %238, %238 : vector<8x128xf32>
      %cst_99 = arith.constant 9.99999996E-13 : f32
      %273 = vector.broadcast %cst_99 : f32 to vector<8x128xf32>
      %274 = arith.addf %272, %273 : vector<8x128xf32>
      %275 = arith.divf %263, %274 : vector<8x128xf32>
      %cst_100 = arith.constant 0.000000e+00 : f32
      %276 = vector.broadcast %cst_100 : f32 to vector<8x128xf32>
      %277 = arith.select %265, %275, %276 : vector<8x128xi1>, vector<8x128xf32>
      %c4_101 = arith.constant 4 : index
      %c0_102 = arith.constant 0 : index
      %c0_103 = arith.constant 0 : index
      %278 = vector.load %arg6[%c4_101, %c0_102, %c0_103] : memref<8x8x128xf32, #tpu.memory_space<vmem>>, vector<1x8x128xf32>
      %279 = vector.shape_cast %278 : vector<1x8x128xf32> to vector<8x128xf32>
      %cst_104 = arith.constant 3.906250e-03 : f32
      %280 = vector.broadcast %cst_104 : f32 to vector<8x128xf32>
      %281 = arith.mulf %279, %280 : vector<8x128xf32>
      %c5_105 = arith.constant 5 : index
      %c0_106 = arith.constant 0 : index
      %c0_107 = arith.constant 0 : index
      %282 = vector.load %arg6[%c5_105, %c0_106, %c0_107] : memref<8x8x128xf32, #tpu.memory_space<vmem>>, vector<1x8x128xf32>
      %283 = vector.shape_cast %282 : vector<1x8x128xf32> to vector<8x128xf32>
      %cst_108 = arith.constant 3.906250e-03 : f32
      %284 = vector.broadcast %cst_108 : f32 to vector<8x128xf32>
      %285 = arith.mulf %283, %284 : vector<8x128xf32>
      %c6_109 = arith.constant 6 : index
      %c0_110 = arith.constant 0 : index
      %c0_111 = arith.constant 0 : index
      %286 = vector.load %arg6[%c6_109, %c0_110, %c0_111] : memref<8x8x128xf32, #tpu.memory_space<vmem>>, vector<1x8x128xf32>
      %287 = vector.shape_cast %286 : vector<1x8x128xf32> to vector<8x128xf32>
      %cst_112 = arith.constant 3.906250e-03 : f32
      %288 = vector.broadcast %cst_112 : f32 to vector<8x128xf32>
      %289 = arith.mulf %287, %288 : vector<8x128xf32>
      %c7_113 = arith.constant 7 : index
      %c0_114 = arith.constant 0 : index
      %c0_115 = arith.constant 0 : index
      %290 = vector.load %arg6[%c7_113, %c0_114, %c0_115] : memref<8x8x128xf32, #tpu.memory_space<vmem>>, vector<1x8x128xf32>
      %291 = vector.shape_cast %290 : vector<1x8x128xf32> to vector<8x128xf32>
      %cst_116 = arith.constant 3.906250e-03 : f32
      %292 = vector.broadcast %cst_116 : f32 to vector<8x128xf32>
      %293 = arith.mulf %291, %292 : vector<8x128xf32>
      %294 = arith.mulf %281, %281 : vector<8x128xf32>
      %295 = arith.subf %285, %294 : vector<8x128xf32>
      %cst_117 = arith.constant 0.000000e+00 : f32
      %296 = vector.broadcast %cst_117 : f32 to vector<8x128xf32>
      %297 = arith.maximumf %295, %296 : vector<8x128xf32>
      %298 = math.sqrt %297 : vector<8x128xf32>
      %cst_118 = arith.constant 3.000000e+00 : f32
      %299 = vector.broadcast %cst_118 : f32 to vector<8x128xf32>
      %300 = arith.mulf %299, %281 : vector<8x128xf32>
      %301 = arith.mulf %300, %285 : vector<8x128xf32>
      %302 = arith.subf %289, %301 : vector<8x128xf32>
      %cst_119 = arith.constant 2.000000e+00 : f32
      %303 = vector.broadcast %cst_119 : f32 to vector<8x128xf32>
      %304 = arith.mulf %303, %281 : vector<8x128xf32>
      %305 = arith.mulf %304, %281 : vector<8x128xf32>
      %306 = arith.mulf %305, %281 : vector<8x128xf32>
      %307 = arith.addf %302, %306 : vector<8x128xf32>
      %cst_120 = arith.constant 4.000000e+00 : f32
      %308 = vector.broadcast %cst_120 : f32 to vector<8x128xf32>
      %309 = arith.mulf %308, %281 : vector<8x128xf32>
      %310 = arith.mulf %309, %289 : vector<8x128xf32>
      %311 = arith.subf %293, %310 : vector<8x128xf32>
      %cst_121 = arith.constant 6.000000e+00 : f32
      %312 = vector.broadcast %cst_121 : f32 to vector<8x128xf32>
      %313 = arith.mulf %312, %281 : vector<8x128xf32>
      %314 = arith.mulf %313, %281 : vector<8x128xf32>
      %315 = arith.mulf %314, %285 : vector<8x128xf32>
      %316 = arith.addf %311, %315 : vector<8x128xf32>
      %cst_122 = arith.constant 3.000000e+00 : f32
      %317 = vector.broadcast %cst_122 : f32 to vector<8x128xf32>
      %318 = arith.mulf %317, %281 : vector<8x128xf32>
      %319 = arith.mulf %318, %281 : vector<8x128xf32>
      %320 = arith.mulf %319, %281 : vector<8x128xf32>
      %321 = arith.mulf %320, %281 : vector<8x128xf32>
      %322 = arith.subf %316, %321 : vector<8x128xf32>
      %cst_123 = arith.constant 9.99999996E-13 : f32
      %323 = vector.broadcast %cst_123 : f32 to vector<8x128xf32>
      %324 = arith.cmpf ogt, %297, %323 : vector<8x128xf32>
      %325 = arith.mulf %297, %298 : vector<8x128xf32>
      %cst_124 = arith.constant 9.99999996E-13 : f32
      %326 = vector.broadcast %cst_124 : f32 to vector<8x128xf32>
      %327 = arith.addf %325, %326 : vector<8x128xf32>
      %328 = arith.divf %307, %327 : vector<8x128xf32>
      %cst_125 = arith.constant 0.000000e+00 : f32
      %329 = vector.broadcast %cst_125 : f32 to vector<8x128xf32>
      %330 = arith.select %324, %328, %329 : vector<8x128xi1>, vector<8x128xf32>
      %331 = arith.mulf %297, %297 : vector<8x128xf32>
      %cst_126 = arith.constant 9.99999996E-13 : f32
      %332 = vector.broadcast %cst_126 : f32 to vector<8x128xf32>
      %333 = arith.addf %331, %332 : vector<8x128xf32>
      %334 = arith.divf %322, %333 : vector<8x128xf32>
      %cst_127 = arith.constant 0.000000e+00 : f32
      %335 = vector.broadcast %cst_127 : f32 to vector<8x128xf32>
      %336 = arith.select %324, %334, %335 : vector<8x128xi1>, vector<8x128xf32>
      %337 = arith.subf %239, %298 : vector<8x128xf32>
      %338 = math.absf %337 : vector<8x128xf32>
      %339 = arith.subf %271, %330 : vector<8x128xf32>
      %340 = math.absf %339 : vector<8x128xf32>
      %cst_128 = arith.constant 2.000000e+00 : f32
      %341 = vector.broadcast %cst_128 : f32 to vector<8x128xf32>
      %342 = arith.mulf %341, %340 : vector<8x128xf32>
      %343 = arith.addf %338, %342 : vector<8x128xf32>
      %344 = arith.subf %277, %336 : vector<8x128xf32>
      %345 = math.absf %344 : vector<8x128xf32>
      %346 = arith.addf %343, %345 : vector<8x128xf32>
      %c0_129 = arith.constant 0 : index
      %c0_130 = arith.constant 0 : index
      %c0_131 = arith.constant 0 : index
      %347 = vector.load %arg4[%c0_129, %c0_130, %c0_131] : memref<1x8x128xf32, #tpu.memory_space<vmem>>, vector<1x8x128xf32>
      %348 = vector.shape_cast %347 : vector<1x8x128xf32> to vector<8x128xf32>
      %349 = vector.shape_cast %346 : vector<8x128xf32> to vector<1x8x128xf32>
      tpu.vector_store %arg4[%c0_129, %c0_130, %c0_131], %349 {strides = array<i32>} : memref<1x8x128xf32, #tpu.memory_space<vmem>>, vector<1x8x128xf32>,
    } else {
    }
    return
  }
  func.func @transform_0(%arg0: i32, %arg1: i32) -> (i32, i32, i32) {
    %c0_i32 = arith.constant 0 : i32
    %c0_i32_0 = arith.constant 0 : i32
    return %arg0, %arg1, %c0_i32 : i32, i32, i32
  }
  func.func @transform_1(%arg0: i32, %arg1: i32) -> (i32, i32, i32) {
    %c0_i32 = arith.constant 0 : i32
    %c0_i32_0 = arith.constant 0 : i32
    return %arg0, %arg1, %c0_i32 : i32, i32, i32
  }
  func.func @transform_2(%arg0: i32, %arg1: i32) -> (i32, i32, i32) {
    %c0_i32 = arith.constant 0 : i32
    %c0_i32_0 = arith.constant 0 : i32
    %c0_i32_1 = arith.constant 0 : i32
    return %arg0, %c0_i32, %c0_i32_0 : i32, i32, i32
  }
}

</mosaic_0001>

<bundles_post_ra>
// kernel: mad_forward.7
= control target key start
LH: loop header
LB: loop body
LE: loop exit
PB: predicated region body
PF: predicated region fallthrough
CT: control target
= control target key end

     0   :  { %11 = vsyncpa [#allocation3], 0  ;;  %s2162_s0 = inlined_call_operand.hbm [shape: f32[2,3,32,32], index: 0, kind: input, shape index: {}]   ;;  %s2163_s1 = inlined_call_operand.hbm [shape: f32[2,3,32,32], index: 1, kind: input, shape index: {}]   ;;  %s2164_s2 = inlined_call_operand.vmem [shape: f32[2,32,32], index: 2, kind: output, shape index: {0}]   ;;  %s2165_s3 = inlined_call_operand.vmem [shape: f32[2,32,32], index: 3, kind: output, shape index: {1}]   ;;  %s2166_s4 = inlined_call_operand.vmem [shape: f32[2,32,32], index: 4, kind: output, shape index: {2}]   ;;  %s2167_s5 = inlined_call_operand.vmem [shape: f32[2,32,32], index: 5, kind: output, shape index: {3}]  }
   0x1   :  { %13 = vsyncpa [#allocation3 + $0x1], 0 }
   0x2   :  { %14 = vsyncpa [#allocation5], 0 }
   0x3   :  { %16 = vsyncpa [#allocation5 + $0x1], 0  ;;  %s1616_s18 = smov 0   ;;  %s1618_s19 = smov 0  }
   0x4   :  { %s1620_s20 = smov 0   ;;  %s1622_s21 = smov 0  }
   0x5   :  { %s1624_s22 = smov 0   ;;  %s1626_s23 = smov 0  }
   0x6 LB: > { %s780_s24 = sadd.s32 4294967295, %s1582_s23   ;;  %s34_s25 = sadd.s32 1, %s1578_s22  ;;  %s1582_s23 = sphi %s1626_s23, %s22_s23   ;;  %s1578_s22 = sphi %s1624_s22, %s2174_s22   ;;  %s1574_s21 = sphi %s1622_s21, %s2173_s21   ;;  %s1570_s20 = sphi %s1620_s20, %s2172_s20   ;;  %s1566_s19 = sphi %s1618_s19, %s2171_s19   ;;  %s1562_s18 = sphi %s1616_s18, %s2170_s18  }
   0x7   : > { %p36_p0 = scmp.ge.s32.totalorder %s34_s25, 2  ;;  %s43_s26 = sadd.s32 1, %s1570_s20 }
   0x8   : > { %p50_p1 = scmp.ne.s32.totalorder %s1570_s20, %s1566_s19  ;;  %p51_p2 = scmp.eq.s32.totalorder %s1582_s23, 0 }
   0x9   : > { %s2176_s25 = smov (%p36_p0, %s34_s25), 0  ;;  %p56_p4 = scmp.ne.s32.totalorder %s1566_s19, %s1562_s18 }
   0xa   : > { %p52_p3 = por %p51_p2, %p50_p1  ;;  %s38_s27 = ssub.s32 %s1578_s22, %s2176_s25 }
   0xb   : > { %p57_p5 = scmp.eq.s32.totalorder %s780_s24, 0  ;;  %p41_p6 = scmp.eq.s32.totalorder %s38_s27, 0 }
   0xc   : > { %p1401_p8 = scmp.lt.s32.totalorder %s1582_s23, 2  ;;  %s1664_s30 = sand.u32 1, %s1570_s20  }
   0xd   : > { %p1655_p7 = por %p57_p5, %p56_p4  ;;  %s818_s6 = smul.u32 96, %s1578_s22 }
   0xe   : > { %s1661_s29 = scalar_select %p41_p6, %s1570_s20, %s43_s26  }
   0xf   : > { %s817_s7 = smul.u32 96, %s1664_s30  ;;  %s231_s10 = scalar_lea.hbm %s2162_s0, %s818_s6 }
  0x10   : > { %p1671_p9 = pnand %p1401_p8, %p52_p3  ;;  %s232_s12 = sshll.u32 %s231_s10, 4  ;;  %s233_s12 = int_to_ptr.hbm [resolvable:$true] %s232_s12 }
  0x11   : > { %s224_s13 = scalar_lea.vmem [#allocation2], %s817_s7  ;;  %s221_s15 = scalar_lea.sflag [#allocation3], %s1664_s30 }
  0x12   : > { %s234_s14 = sshll.u32 %s224_s13, 4  ;;  %s1584_s16 = smov 128   ;;  %s235_s14 = int_to_ptr.vmem [resolvable:$true] %s234_s14 }
  0x13   : > { %s1585_s17 = smov 8   ;;  %p786_p10 = scmp.ge.s32.totalorder %s1582_s23, 1 }
  0x14   : > { %1397 = dma.hbm_to_vmem [thread:$0]  (!%p1671_p9), %s233_s12, 1536, %s235_s14, %s221_s15, %s1584_s16, %s1584_s16, %s1585_s17  }
  0x15   : > { %p266_p11 = scmp.lt.s32.totalorder %s1582_s23, 3  ;;  %s255_s26 = scalar_lea.hbm %s2163_s1, %s818_s6 }
  0x16   : > { %s256_s27 = sshll.u32 %s255_s26, 4  ;;  %s248_s8 = scalar_lea.vmem [#allocation4], %s817_s7  ;;  %s257_s27 = int_to_ptr.hbm [resolvable:$true] %s256_s27 }
  0x17   : > { %p267_p12 = pnand %p786_p10, %p266_p11  ;;  %s258_s9 = sshll.u32 %s248_s8, 4  ;;  %s259_s9 = int_to_ptr.vmem [resolvable:$true] %s258_s9 }
  0x18   : > { %s245_s10 = scalar_lea.sflag [#allocation5], %s1664_s30  ;;  %s272_s13 = sand.u32 (!%p267_p12), 1, %s1566_s19  }
  0x19   : > { %1400 = dma.hbm_to_vmem [thread:$0]  (!%p1671_p9), %s257_s27, 1536, %s259_s9, %s245_s10, %s1584_s16, %s1584_s16, %s1585_s17  }
  0x1a   : > { %270 = sbr.rel (%p267_p12) target bundleno = 189 (0xbd), region = 28  ;;  %s273_s14 = scalar_lea.sflag (!%p267_p12), [#allocation3], %s272_s13 }
  0x1b   : > { %s821_s12 = smul.u32 (!%p267_p12), 96, %s272_s13 }
  0x1d   : > { %s1687_s15 = scalar_lea.vmem (!%p267_p12), [#allocation2], %s821_s12 }
  0x1f   : > { %1553 = dma.done.wait (%p1655_p7), %s273_s14, 1536  }
  0x20   : > { %1555 = vsyncadd (%p1655_p7), %s273_s14, 4294965760  ;;  %s283_s6 = scalar_lea.sflag [#allocation5], %s272_s13  ;;  %s1693_s7 = scalar_lea.vmem [#allocation4], %s821_s12 }
  0x21   : > { %1557 = dma.done.wait (%p1655_p7), %s283_s6, 1536  }
  0x22   : > { %1559 = vsyncadd (%p1655_p7), %s283_s6, 4294965760  ;;  %p353_p13 = scmp.lt.s32.totalorder %s1574_s21, 1  ;;  %v392_v0 = vld [vmem:[%s1687_s15] sm:$0xff]  ;;  %v393_v6 = vld [vmem:[%s1687_s15 + $0x8] sm:$0xff]  ;;  %vm430_vm0 = vcmask 261120  }
  0x23   : > { %v795_v1 = vld [vmem:[%s1687_s15 + $0x20] sm:$0xff]  ;;  %v406_v3 = vmul.f32 65.481, %v392_v0  ;;  %v796_v7 = vld [vmem:[%s1687_s15 + $0x28] sm:$0xff]  ;;  %v407_v10 = vmul.f32 65.481, %v393_v6 }
  0x24   : > { %s2178_s21 = smov (!%p353_p13, %s1574_s21), 1  ;;  %v799_v2 = vld [vmem:[%s1687_s15 + $0x40] sm:$0xff]  ;;  %v410_v4 = vmul.f32 128.553, %v795_v1  ;;  %v800_v8 = vld [vmem:[%s1687_s15 + $0x48] sm:$0xff]  ;;  %v394_v13 = vld [vmem:[%s1687_s15 + $0x10] sm:$0xff] }
  0x25   : > { %v418_v5 = vmul.f32 24.966, %v799_v2  ;;  %s1704_s28 = sshll.u32 %s2178_s21, 5  ;;  %v411_v11 = vmul.f32 128.553, %v796_v7  ;;  %v797_v14 = vld [vmem:[%s1687_s15 + $0x30] sm:$0xff] }
  0x26   : > { %v414_v9 = vadd.f32 %v410_v4, %v406_v3  ;;  %v419_v12 = vmul.f32 24.966, %v800_v8  ;;  %v801_v15 = vld [vmem:[%s1687_s15 + $0x50] sm:$0xff]  ;;  %v408_v18 = vmul.f32 65.481, %v394_v13  ;;  %v395_v20 = vld [vmem:[%s1687_s15 + $0x18] sm:$0xff]  ;;  %s1718_s11 = scalar_lea.vmem %s2164_s2, %s1704_s28  ;;  %s1746_s18 = scalar_lea.vmem %s2166_s4, %s1704_s28 }
  0x27   : > { %v415_v17 = vadd.f32 %v411_v11, %v407_v10  ;;  %v412_v19 = vmul.f32 128.553, %v797_v14  ;;  %v798_v21 = vld [vmem:[%s1687_s15 + $0x38] sm:$0xff]  ;;  %v420_v22 = vmul.f32 24.966, %v801_v15  ;;  %v451_v25 = vld [vmem:[%s1693_s7] sm:$0xff]  ;;  %s1915_s27 = scalar_lea.vmem %s2165_s3, %s1704_s28  ;;  %s2103_s10 = scalar_lea.vmem %s2167_s5, %s1704_s28 }
  0x28   : > { %v422_v16 = vadd.f32 %v418_v5, %v414_v9  ;;  %v802_v23 = vld [vmem:[%s1687_s15 + $0x58] sm:$0xff]  ;;  %v409_v24 = vmul.f32 65.481, %v395_v20  ;;  %v413_v29 = vmul.f32 128.553, %v798_v21  ;;  %v803_v30 = vld [vmem:[%s1693_s7 + $0x20] sm:$0xff] }
  0x29   : > { %v423_v27 = vadd.f32 %v419_v12, %v415_v17  ;;  %v416_v28 = vadd.f32 %v412_v19, %v408_v18  ;;  %v807_v31 = vld [vmem:[%s1693_s7 + $0x40] sm:$0xff]  ;;  %v421_v32 = vmul.f32 24.966, %v802_v23  ;;  %v465_v33 = vmul.f32 65.481, %v451_v25 }
  0x2a   : > { %v426_v26 = vadd.f32 16.0, %v422_v16  ;;  %v469_v34 = vmul.f32 128.553, %v803_v30  ;;  %v417_v38 = vadd.f32 %v413_v29, %v409_v24  ;;  %v477_v40 = vmul.f32 24.966, %v807_v31 }
  0x2b   : > { %v427_v36 = vadd.f32 16.0, %v423_v27  ;;  %v424_v37 = vadd.f32 %v420_v22, %v416_v28 }
  0x2c   : > { %431 = vst.msk [vmem:[%s1718_s11] sm:$0xff] %vm430_vm0, %v426_v26  ;;  %v1726_v35 = vadd.f32 1e-12, %v426_v26  ;;  %v473_v39 = vadd.f32 %v469_v34, %v465_v33  ;;  %v425_v44 = vadd.f32 %v421_v32, %v417_v38 }
  0x2d   : > { %432 = vst.msk [vmem:[%s1718_s11 + $0x8] sm:$0xff] %vm430_vm0, %v427_v36  ;;  %v1733_v42 = vadd.f32 1e-12, %v427_v36  ;;  %v428_v43 = vadd.f32 16.0, %v424_v37 }
  0x2e   : > { %v1729_v41 = vand.u32 2147483647, %v1726_v35  ;;  %v481_v45 = vadd.f32 %v477_v40, %v473_v39  ;;  %v429_v48 = vadd.f32 16.0, %v425_v44  ;;  %vm873_vm15 = vcmp.lt.f32.partialorder %v1726_v35, 0 }
  0x2f   : > { %v1736_v46 = vand.u32 2147483647, %v1733_v42  ;;  %433 = vst.msk [vmem:[%s1718_s11 + $0x10] sm:$0xff] %vm430_vm0, %v428_v43  ;;  %v1740_v47 = vadd.f32 1e-12, %v428_v43 }
  0x30   : > { %v832_v49 = vand.u32 8388607, %v1729_v41  ;;  %v1749_v50 = vadd.f32 16.0, %v481_v45  ;;  %434 = vst.msk [vmem:[%s1718_s11 + $0x18] sm:$0xff] %vm430_vm0, %v429_v48  ;;  %v1760_v54 = vadd.f32 1e-12, %v429_v48  ;;  %vm866_vm4 = vweird.f32 %v1729_v41 }
  0x31   : > { %v1752_v51 = vand.u32 2147483647, %v1740_v47  ;;  %v903_v53 = vand.u32 8388607, %v1736_v46  ;;  %v828_v0 = vand.u32 2139095040, %v1729_v41  ;;  %v899_v2 = vand.u32 2139095040, %v1736_v46 }
  0x32   : > { %v833_v52 = vor.u32 8388608, %v832_v49  ;;  %489 = vst.msk [vmem:[%s1746_s18] sm:$0xff] %vm430_vm0, %v1749_v50  ;;  %v1764_v61 = vand.u32 2147483647, %v1760_v54  ;;  %vm865_vm5 = vcmp.lt.f32.partialorder %v1729_v41, 0.0  ;;  %vm864_vm6 = vcmp.eq.f32.partialorder %v1729_v41, 0.0 }
  0x33   : > { %v904_v56 = vor.u32 8388608, %v903_v53  ;;  %v974_v57 = vand.u32 8388607, %v1752_v51  ;;  %v829_v9 = vshrl.u32 %v828_v0, 23  ;;  %v900_v10 = vshrl.u32 %v899_v2, 23 }
  0x34   : > { %v835_v55 = vand.u32 8388607, %v833_v52  ;;  %v1045_v6 = vand.u32 8388607, %v1764_v61  ;;  %v970_v23 = vand.u32 2139095040, %v1752_v51  ;;  %v1041_v30 = vand.u32 2139095040, %v1764_v61 }
  0x35   : > { %v906_v59 = vand.u32 8388607, %v904_v56  ;;  %v975_v60 = vor.u32 8388608, %v974_v57  ;;  %v891_v21 = vadd.s32 4294967169, %v829_v9  ;;  %v962_v22 = vadd.s32 4294967169, %v900_v10 }
  0x36   : > { %v836_v58 = vor.u32 1065353216, %v835_v55  ;;  %v1046_v16 = vor.u32 8388608, %v1045_v6  ;;  %v971_v38 = vshrl.u32 %v970_v23, 23  ;;  %vm863_vm7 = vcmp.eq.f32.partialorder %v1729_v41, 1.0 }
  0x37   : > { %v1766_v63 = vor.u32 1065353216, %v906_v59  ;;  %v977_v3 = vand.u32 8388607, %v975_v60  ;;  %v840_v36 = vadd.s32 1, %v891_v21  ;;  %v911_v44 = vadd.s32 1, %v962_v22 }
  0x38   : > { %vm837_vm1 = vcmp.ge.f32.partialorder %v836_v58, 1.4142135  ;;  %v838_v62 = vmul.f32 0.5, %v836_v58  ;;  %v1048_v31 = vand.u32 8388607, %v1046_v16  ;;  %vm937_vm8 = vweird.f32 %v1736_v46 }
  0x39   : > { %vm908_vm2 = vcmp.ge.f32.partialorder %v1766_v63, 1.4142135  ;;  %v909_v5 = vmul.f32 0.5, %v1766_v63  ;;  %v1778_v8 = vor.u32 1065353216, %v977_v3  ;;  %v841_v59 = vsel %vm837_vm1, %v840_v36, %v891_v21 }
  0x3a   : > { %v839_v1 = vsel %vm837_vm1, %v838_v62, %v836_v58  ;;  %v1798_v53 = vor.u32 1065353216, %v1048_v31  ;;  %vm936_vm9 = vcmp.lt.f32.partialorder %v1736_v46, 0.0  ;;  %vm934_vm11 = vcmp.eq.f32.partialorder %v1736_v46, 1.0 }
  0x3b   : > { %v1771_v4 = vadd.f32 -1.0, %v839_v1  ;;  %v910_v11 = vsel %vm908_vm2, %v909_v5, %v1766_v63  ;;  %v980_v15 = vmul.f32 0.5, %v1778_v8  ;;  %vm979_vm3 = vcmp.ge.f32.partialorder %v1778_v8, 1.4142135 }
  0x3c   : > { %v1783_v14 = vadd.f32 -1.0, %v910_v11  ;;  %v1033_v5 = vadd.s32 4294967169, %v971_v38  ;;  %v1051_v58 = vmul.f32 0.5, %v1798_v53  ;;  %vm1050_vm10 = vcmp.ge.f32.partialorder %v1798_v53, 1.4142135 }
  0x3d   : > { %v843_v7 = vmul.f32 %v1771_v4, %v1771_v4  ;;  %v981_v20 = vsel %vm979_vm3, %v980_v15, %v1778_v8  ;;  %v1042_v15 = vshrl.u32 %v1041_v30, 23  ;;  %vm935_vm12 = vcmp.eq.f32.partialorder %v1736_v46, 0.0 }
  0x3e   : > { %v914_v19 = vmul.f32 %v1783_v14, %v1783_v14  ;;  %v1793_v24 = vadd.f32 -1.0, %v981_v20  ;;  %v982_v23 = vadd.s32 1, %v1033_v5  ;;  %v1052_v63 = vsel %vm1050_vm10, %v1051_v58, %v1798_v53  ;;  %v808_v58 = vld [vmem:[%s1693_s7 + $0x48] sm:$0xff] }
  0x3f   : > { %v844_v12 = vmul.f32 0.12621109, %v843_v7  ;;  %v846_v13 = vmul.f32 -0.20706727, %v843_v7  ;;  %v1818_v30 = vadd.f32 -1.0, %v1052_v63  ;;  %vm1005_vm13 = vcmp.eq.f32.partialorder %v1752_v51, 1.0 }
  0x40   : > { %v915_v27 = vmul.f32 0.12621109, %v914_v19  ;;  %v917_v28 = vmul.f32 -0.20706727, %v914_v19  ;;  %v985_v29 = vmul.f32 %v1793_v24, %v1793_v24  ;;  %v983_v36 = vsel %vm979_vm3, %v982_v23, %v1033_v5  ;;  %v804_v5 = vld [vmem:[%s1693_s7 + $0x28] sm:$0xff]  ;;  %v809_v23 = vld [vmem:[%s1693_s7 + $0x50] sm:$0xff] }
  0x41   : > { %v845_v17 = vadd.f32 0.21545328, %v844_v12  ;;  %v847_v18 = vadd.f32 -0.23896284, %v846_v13  ;;  %v861_v12 = vcvt.s32.f32 %v841_v59  ;;  %vm1006_vm14 = vcmp.eq.f32.partialorder %v1752_v51, 0.0  ;;  %v454_v63 = vld [vmem:[%s1693_s7 + $0x18] sm:$0xff] }
  0x42   : > { %v916_v34 = vadd.f32 0.21545328, %v915_v27  ;;  %v918_v37 = vadd.f32 -0.23896284, %v917_v28  ;;  %v986_v39 = vmul.f32 0.12621109, %v985_v29  ;;  %vm1008_vm3 = vweird.f32 %v1752_v51 }
  0x43   : > { %v848_v25 = vmul.f32 %v845_v17, %v843_v7  ;;  %v850_v26 = vmul.f32 %v847_v18, %v843_v7  ;;  %v988_v52 = vmul.f32 -0.20706727, %v985_v29  ;;  %vm874_vm1 = vcmp.eq.f32.partialorder %v1726_v35, 0 }
  0x44   : > { %v919_v45 = vmul.f32 %v916_v34, %v914_v19  ;;  %v921_v48 = vmul.f32 %v918_v37, %v914_v19  ;;  %v987_v49 = vadd.f32 0.21545328, %v986_v39  ;;  %v1825_v37 = vmul.f32 %v1818_v30, %v1818_v30 }
  0x45   : > { %v849_v32 = vadd.f32 0.28795174, %v848_v25  ;;  %v851_v33 = vadd.f32 -0.3607037, %v850_v26  ;;  %v989_v62 = vadd.f32 -0.23896284, %v988_v52 }
  0x46   : > { %v920_v57 = vadd.f32 0.28795174, %v919_v45  ;;  %v922_v60 = vadd.f32 -0.3607037, %v921_v48  ;;  %v990_v0 = vmul.f32 %v987_v49, %v985_v29  ;;  %v1057_v8 = vmul.f32 0.12621109, %v1825_v37 }
  0x47   : > { %v852_v40 = vmul.f32 %v849_v32, %v843_v7  ;;  %v854_v43 = vmul.f32 %v851_v33, %v843_v7  ;;  %v992_v10 = vmul.f32 %v989_v62, %v985_v29  ;;  %v1003_v45 = vcvt.s32.f32 %v983_v36 }
  0x48   : > { %v923_v3 = vmul.f32 %v920_v57, %v914_v19  ;;  %v925_v6 = vmul.f32 %v922_v60, %v914_v19  ;;  %v991_v9 = vadd.f32 0.28795174, %v990_v0  ;;  %v1104_v48 = vadd.s32 4294967169, %v1042_v15 }
  0x49   : > { %v853_v55 = vadd.f32 0.48090908, %v852_v40  ;;  %v855_v56 = vadd.f32 -0.72134733, %v854_v43  ;;  %v993_v17 = vadd.f32 -0.3607037, %v992_v10 }
  0x4a   : > { %v924_v13 = vadd.f32 0.48090908, %v923_v3  ;;  %v926_v16 = vadd.f32 -0.72134733, %v925_v6  ;;  %v994_v18 = vmul.f32 %v991_v9, %v985_v29  ;;  %v1059_v40 = vmul.f32 -0.20706727, %v1825_v37 }
  0x4b   : > { %v856_v1 = vmul.f32 %v853_v55, %v843_v7  ;;  %v858_v2 = vmul.f32 %v1771_v4, %v855_v56  ;;  %v912_v7 = vsel %vm908_vm2, %v911_v44, %v962_v22  ;;  %v996_v27 = vmul.f32 %v993_v17, %v985_v29 }
  0x4c   : > { %v927_v21 = vmul.f32 %v924_v13, %v914_v19  ;;  %v929_v25 = vmul.f32 %v1783_v14, %v926_v16  ;;  %v995_v26 = vadd.f32 0.48090908, %v994_v18  ;;  %v932_v19 = vcvt.s32.f32 %v912_v7 }
  0x4d   : > { %v857_v11 = vadd.f32 1.442695, %v856_v1  ;;  %v997_v31 = vadd.f32 -0.72134733, %v996_v27  ;;  %v1058_v55 = vadd.f32 0.21545328, %v1057_v8 }
  0x4e   : > { %v928_v28 = vadd.f32 1.442695, %v927_v21  ;;  %v998_v32 = vmul.f32 %v995_v26, %v985_v29  ;;  %v1060_v56 = vadd.f32 -0.23896284, %v1059_v40  ;;  %vm1007_vm2 = vcmp.lt.f32.partialorder %v1752_v51, 0.0  ;;  %v452_v1 = vld [vmem:[%s1693_s7 + $0x8] sm:$0xff] }
  0x4f   : > { %v859_v20 = vadd.f32 %v858_v2, %v857_v11  ;;  %v1000_v38 = vmul.f32 %v1793_v24, %v997_v31  ;;  %v1061_v62 = vmul.f32 %v1058_v55, %v1825_v37  ;;  %v1053_v3 = vadd.s32 1, %v1104_v48  ;;  %v805_v21 = vld [vmem:[%s1693_s7 + $0x30] sm:$0xff]  ;;  %v806_v31 = vld [vmem:[%s1693_s7 + $0x38] sm:$0xff] }
  0x50   : > { %v930_v34 = vadd.f32 %v929_v25, %v928_v28  ;;  %v1063_v0 = vmul.f32 %v1060_v56, %v1825_v37  ;;  %v1871_v13 = vadd.f32 1e-12, %v1749_v50  ;;  %v466_v15 = vmul.f32 65.481, %v452_v1 }
  0x51   : > { %v860_v22 = vmul.f32 %v1771_v4, %v859_v20  ;;  %v999_v4 = vadd.f32 1.442695, %v998_v32  ;;  %v1062_v9 = vadd.f32 0.28795174, %v1061_v62  ;;  %v453_v20 = vld [vmem:[%s1693_s7 + $0x10] sm:$0xff]  ;;  %v1054_v25 = vsel %vm1050_vm10, %v1053_v3, %v1104_v48 }
  0x52   : > { %v931_v39 = vmul.f32 %v1783_v14, %v930_v34  ;;  %v1064_v10 = vadd.f32 -0.3607037, %v1063_v0  ;;  %v470_v26 = vmul.f32 128.553, %v804_v5  ;;  %v478_v27 = vmul.f32 24.966, %v808_v58 }
  0x53   : > { %v862_v33 = vadd.f32 %v861_v12, %v860_v22  ;;  %v1001_v44 = vadd.f32 %v1000_v38, %v999_v4  ;;  %v1065_v17 = vmul.f32 %v1062_v9, %v1825_v37  ;;  %v471_v34 = vmul.f32 128.553, %v805_v21 }
  0x54   : > { %v933_v52 = vadd.f32 %v932_v19, %v931_v39  ;;  %v1067_v18 = vmul.f32 %v1064_v10, %v1825_v37  ;;  %v474_v53 = vadd.f32 %v470_v26, %v466_v15  ;;  %vm1028_vm10 = vcmp.ne.f32.partialorder %v1740_v47, %v1740_v47  ;;  %v810_v39 = vld [vmem:[%s1693_s7 + $0x58] sm:$0xff] }
  0x55   : > { %v867_v29 = vsel %vm866_vm4, %v1729_v41, %v862_v33  ;;  %v1002_v57 = vmul.f32 %v1793_v24, %v1001_v44  ;;  %vm878_vm4 = vcmp.eq.f32.partialorder %v1729_v41, 2139095040  ;;  %v1066_v28 = vadd.f32 0.48090908, %v1065_v17 }
  0x56   : > { %v868_v43 = vsel %vm865_vm5, nan, %v867_v29  ;;  %v938_v60 = vsel %vm937_vm8, %v1736_v46, %v933_v52  ;;  %vm886_vm5 = vcmp.ne.f32.partialorder %v1726_v35, %v1726_v35  ;;  %vm945_vm8 = vcmp.eq.f32.partialorder %v1733_v42, 0 }
  0x57   : > { %v869_v49 = vsel %vm864_vm6, -inf, %v868_v43  ;;  %v939_v24 = vsel %vm936_vm9, nan, %v938_v60  ;;  %v1004_v2 = vadd.f32 %v1003_v45, %v1002_v57  ;;  %vm875_vm6 = vcmp.eq.f32.partialorder %v1726_v35, 1065353216 }
  0x58   : > { %v870_v14 = vsel %vm863_vm7, 0.0, %v869_v49  ;;  %v940_v6 = vsel %vm935_vm12, -inf, %v939_v24  ;;  %vm944_vm7 = vcmp.lt.f32.partialorder %v1733_v42, 0  ;;  %vm949_vm9 = vcmp.eq.f32.partialorder %v1736_v46, 2139095040 }
  0x59   : > { %v871_v59 = vmul.f32 0.73333335, %v870_v14  ;;  %v941_v11 = vsel %vm934_vm11, 0.0, %v940_v6  ;;  %v1009_v12 = vsel %vm1008_vm3, %v1752_v51, %v1004_v2  ;;  %vm957_vm11 = vcmp.ne.f32.partialorder %v1733_v42, %v1733_v42 }
  0x5a   : > { %v942_v7 = vmul.f32 0.73333335, %v941_v11  ;;  %v1010_v16 = vsel %vm1007_vm2, nan, %v1009_v12  ;;  %vm1015_vm12 = vcmp.lt.f32.partialorder %v1740_v47, 0  ;;  %vm946_vm2 = vcmp.eq.f32.partialorder %v1733_v42, 1065353216 }
  0x5b   : > { %1452 = vpow2.f32 %v871_v59  ;;  %v1011_v50 = vsel %vm1006_vm14, -inf, %v1010_v16  ;;  %vm1016_vm3 = vcmp.eq.f32.partialorder %v1740_v47, 0  ;;  %v1068_v19 = vadd.f32 -0.72134733, %v1067_v18 }
  0x5c   : > { %1454 = vpow2.f32 %v942_v7  ;;  %v1012_v22 = vsel %vm1005_vm13, 0.0, %v1011_v50  ;;  %vm1020_vm14 = vcmp.eq.f32.partialorder %v1752_v51, 2139095040  ;;  %v467_v33 = vmul.f32 65.481, %v453_v20 }
  0x5d   : > { %v1013_v32 = vmul.f32 0.73333335, %v1012_v22  ;;  %v1069_v4 = vmul.f32 %v1066_v28, %v1825_v37  ;;  %v1071_v38 = vmul.f32 %v1818_v30, %v1068_v19  ;;  %v479_v29 = vmul.f32 24.966, %v809_v23 }
  0x5e   : > { %v468_v8 = vmul.f32 65.481, %v454_v63  ;;  %vm1017_vm13 = vcmp.eq.f32.partialorder %v1740_v47, 1065353216  ;;  %v482_v43 = vadd.f32 %v478_v27, %v474_v53  ;;  %v475_v44 = vadd.f32 %v471_v34, %v467_v33 }
  0x5f   : > { %1456 = vpow2.f32 %v1013_v32  ;;  %v1070_v48 = vadd.f32 1.442695, %v1069_v4  ;;  %v1074_v37 = vcvt.s32.f32 %v1054_v25  ;;  %v472_v49 = vmul.f32 128.553, %v806_v31 }
  0x60   : > { %v486_v55 = vadd.f32 16.0, %v482_v43  ;;  %v483_v56 = vadd.f32 %v479_v29, %v475_v44  ;;  %v480_v14 = vmul.f32 24.966, %v810_v39  ;;  %v1932_v10 = vand.u32 2147483647, %v1871_v13 }
  0x61   : > { %v1453_v36 = vpop.eup %1452  ;;  %v1072_v60 = vadd.f32 %v1071_v38, %v1070_v48  ;;  %v476_v62 = vadd.f32 %v472_v49, %v468_v8 }
  0x62   : > { %v879_v40 = vsel %vm873_vm15, 2143289344, %v1453_v36  ;;  %v1455_v57 = vpop.eup %1454  ;;  %vm1078_vm15 = vcmp.lt.f32.partialorder %v1764_v61, 0.0  ;;  %490 = vst.msk [vmem:[%s1746_s18 + $0x8] sm:$0xff] %vm430_vm0, %v486_v55  ;;  %v1923_v1 = vadd.f32 1e-12, %v486_v55  ;;  %v487_v24 = vadd.f32 16.0, %v483_v56 }
  0x63   : > { %v880_v45 = vsel %vm874_vm1, 0, %v879_v40  ;;  %v950_v0 = vsel %vm944_vm7, 2143289344, %v1455_v57  ;;  %v1073_v5 = vmul.f32 %v1818_v30, %v1072_v60  ;;  %v484_v6 = vadd.f32 %v480_v14, %v476_v62 }
  0x64   : > { %v885_v52 = vsel %vm878_vm4, 2139095040, %v880_v45  ;;  %v951_v3 = vsel %vm945_vm8, 0, %v950_v0  ;;  %vm1079_vm1 = vweird.f32 %v1764_v61  ;;  %491 = vst.msk [vmem:[%s1746_s18 + $0x10] sm:$0xff] %vm430_vm0, %v487_v24  ;;  %v1936_v58 = vadd.f32 1e-12, %v487_v24 }
  0x65   : > { %v889_v59 = vsel %vm886_vm5, 2143289344, %v885_v52  ;;  %v1457_v9 = vpop.eup %1456  ;;  %v956_v35 = vsel %vm949_vm9, 2139095040, %v951_v3  ;;  %v1075_v11 = vadd.f32 %v1074_v37, %v1073_v5  ;;  %v488_v12 = vadd.f32 16.0, %v484_v6 }
  0x66   : > { %v890_v41 = vsel %vm875_vm6, 1065353216, %v889_v59  ;;  %v960_v30 = vsel %vm957_vm11, 2143289344, %v956_v35  ;;  %v1021_v46 = vsel %vm1015_vm12, 2143289344, %v1457_v9  ;;  %vm1077_vm4 = vcmp.eq.f32.partialorder %v1764_v61, 0.0 }
  0x67   : > { %v443_v2 = vmul.f32 0.02874, %v890_v41  ;;  %v961_v15 = vsel %vm946_vm2, 1065353216, %v960_v30  ;;  %v1022_v7 = vsel %vm1016_vm3, 0, %v1021_v46  ;;  %v1951_v16 = vand.u32 2147483647, %v1923_v1 }
  0x68   : > { %v444_v17 = vmul.f32 0.02874, %v961_v15  ;;  %v1027_v18 = vsel %vm1020_vm14, 2139095040, %v1022_v7  ;;  %vm1076_vm5 = vcmp.eq.f32.partialorder %v1764_v61, 1.0  ;;  %v1080_v42 = vsel %vm1079_vm1, %v1764_v61, %v1075_v11  ;;  %492 = vst.msk [vmem:[%s1746_s18 + $0x18] sm:$0xff] %vm430_vm0, %v488_v12 }
  0x69   : > { %447 = vst.msk [vmem:[%s1915_s27] sm:$0xff] %vm430_vm0, %v443_v2  ;;  %v1031_v20 = vsel %vm1028_vm10, 2143289344, %v1027_v18  ;;  %v1081_v21 = vsel %vm1078_vm15, nan, %v1080_v42  ;;  %v1116_v23 = vand.u32 8388607, %v1932_v10  ;;  %vm1086_vm7 = vcmp.lt.f32.partialorder %v1760_v54, 0 }
  0x6a   : > { %448 = vst.msk [vmem:[%s1915_s27 + $0x8] sm:$0xff] %vm430_vm0, %v444_v17  ;;  %v1032_v51 = vsel %vm1017_vm13, 1065353216, %v1031_v20  ;;  %v1082_v50 = vsel %vm1077_vm4, -inf, %v1081_v21  ;;  %v1972_v25 = vand.u32 2147483647, %v1936_v58  ;;  %vm1087_vm8 = vcmp.eq.f32.partialorder %v1760_v54, 0 }
  0x6b   : > { %v445_v26 = vmul.f32 0.02874, %v1032_v51  ;;  %v1083_v27 = vsel %vm1076_vm5, 0.0, %v1082_v50  ;;  %v1117_v63 = vor.u32 8388608, %v1116_v23  ;;  %v1187_v22 = vand.u32 8388607, %v1951_v16 }
  0x6c   : > { %v1084_v28 = vmul.f32 0.73333335, %v1083_v27  ;;  %v1258_v47 = vand.u32 8388607, %v1972_v25  ;;  %vm1091_vm11 = vcmp.eq.f32.partialorder %v1764_v61, 2139095040  ;;  %vm1099_vm12 = vcmp.ne.f32.partialorder %v1760_v54, %v1760_v54 }
  0x6d   : > { %449 = vst.msk [vmem:[%s1915_s27 + $0x10] sm:$0xff] %vm430_vm0, %v445_v26  ;;  %v1119_v19 = vand.u32 8388607, %v1117_v63  ;;  %v1188_v31 = vor.u32 8388608, %v1187_v22  ;;  %v1996_v40 = vadd.f32 1e-12, %v488_v12  ;;  %vm1150_vm15 = vweird.f32 %v1932_v10 }
  0x6e   : > { %1458 = vpow2.f32 %v1084_v28  ;;  %v1259_v38 = vor.u32 8388608, %v1258_v47  ;;  %v1112_v43 = vand.u32 2139095040, %v1932_v10  ;;  %vm1088_vm2 = vcmp.eq.f32.partialorder %v1760_v54, 1065353216 }
  0x6f   : > { %v1977_v32 = vor.u32 1065353216, %v1119_v19  ;;  %v1190_v53 = vand.u32 8388607, %v1188_v31  ;;  %v1183_v49 = vand.u32 2139095040, %v1951_v16  ;;  %v2011_v54 = vand.u32 2147483647, %v1996_v40 }
  0x70   : > { %v1261_v52 = vand.u32 8388607, %v1259_v38  ;;  %v1113_v60 = vshrl.u32 %v1112_v43, 23  ;;  %v1254_v7 = vand.u32 2139095040, %v1972_v25  ;;  %vm1147_vm14 = vcmp.eq.f32.partialorder %v1932_v10, 1.0 }
  0x71   : > { %vm1121_vm6 = vcmp.ge.f32.partialorder %v1977_v32, 1.4142135  ;;  %v1122_v33 = vmul.f32 0.5, %v1977_v32  ;;  %v1982_v34 = vor.u32 1065353216, %v1190_v53  ;;  %v1184_v9 = vshrl.u32 %v1183_v49, 23 }
  0x72   : > { %v2013_v62 = vor.u32 1065353216, %v1261_v52  ;;  %v1175_v30 = vadd.s32 4294967169, %v1113_v60  ;;  %v1329_v50 = vand.u32 8388607, %v2011_v54  ;;  %v1255_v31 = vshrl.u32 %v1254_v7, 23 }
  0x73   : > { %v1123_v36 = vsel %vm1121_vm6, %v1122_v33, %v1977_v32  ;;  %vm1192_vm9 = vcmp.ge.f32.partialorder %v1982_v34, 1.4142135  ;;  %v1193_v4 = vmul.f32 0.5, %v1982_v34  ;;  %v1246_v51 = vadd.s32 4294967169, %v1184_v9 }
  0x74   : > { %v1459_v29 = vpop.eup %1458  ;;  %v1994_v39 = vadd.f32 -1.0, %v1123_v36  ;;  %vm1263_vm3 = vcmp.ge.f32.partialorder %v2013_v62, 1.4142135  ;;  %v1264_v35 = vmul.f32 0.5, %v2013_v62  ;;  %v1124_v26 = vadd.s32 1, %v1175_v30 }
  0x75   : > { %v1092_v8 = vsel %vm1086_vm7, 2143289344, %v1459_v29  ;;  %v1194_v44 = vsel %vm1192_vm9, %v1193_v4, %v1982_v34  ;;  %v1195_v29 = vadd.s32 1, %v1246_v51  ;;  %vm1148_vm10 = vcmp.eq.f32.partialorder %v1932_v10, 0.0 }
  0x76   : > { %v1093_v45 = vsel %vm1087_vm8, 0, %v1092_v8  ;;  %v1127_v61 = vmul.f32 %v1994_v39, %v1994_v39  ;;  %v2005_v48 = vadd.f32 -1.0, %v1194_v44  ;;  %v1265_v17 = vsel %vm1263_vm3, %v1264_v35, %v2013_v62 }
  0x77   : > { %v1098_v37 = vsel %vm1091_vm11, 2139095040, %v1093_v45  ;;  %v2023_v20 = vadd.f32 -1.0, %v1265_v17  ;;  %v1330_v8 = vor.u32 8388608, %v1329_v50  ;;  %v1125_v43 = vsel %vm1121_vm6, %v1124_v26, %v1175_v30 }
  0x78   : > { %v1102_v55 = vsel %vm1099_vm12, 2143289344, %v1098_v37  ;;  %v1128_v56 = vmul.f32 0.12621109, %v1127_v61  ;;  %v1130_v14 = vmul.f32 -0.20706727, %v1127_v61  ;;  %v1198_v57 = vmul.f32 %v2005_v48, %v2005_v48 }
  0x79   : > { %v1103_v59 = vsel %vm1088_vm2, 1065353216, %v1102_v55  ;;  %v1269_v22 = vmul.f32 %v2023_v20, %v2023_v20  ;;  %vm1149_vm13 = vcmp.lt.f32.partialorder %v1932_v10, 0.0  ;;  %v1145_v60 = vcvt.s32.f32 %v1125_v43 }
  0x7a   : > { %v446_v41 = vmul.f32 0.02874, %v1103_v59  ;;  %v1129_v0 = vadd.f32 0.21545328, %v1128_v56  ;;  %v1131_v24 = vadd.f32 -0.23896284, %v1130_v14  ;;  %v1196_v32 = vsel %vm1192_vm9, %v1195_v29, %v1246_v51 }
  0x7b   : > { %v1199_v2 = vmul.f32 0.12621109, %v1198_v57  ;;  %v1201_v3 = vmul.f32 -0.20706727, %v1198_v57  ;;  %v1270_v33 = vmul.f32 0.12621109, %v1269_v22  ;;  %v1216_v9 = vcvt.s32.f32 %v1196_v32 }
  0x7c   : > { %450 = vst.msk [vmem:[%s1915_s27 + $0x18] sm:$0xff] %vm430_vm0, %v446_v41  ;;  %v1132_v5 = vmul.f32 %v1129_v0, %v1127_v61  ;;  %v1134_v6 = vmul.f32 %v1131_v24, %v1127_v61  ;;  %v1272_v36 = vmul.f32 -0.20706727, %v1269_v22  ;;  %v1317_v56 = vadd.s32 4294967169, %v1255_v31 }
  0x7d   : > { %v1200_v46 = vadd.f32 0.21545328, %v1199_v2  ;;  %v1202_v11 = vadd.f32 -0.23896284, %v1201_v3  ;;  %v1271_v37 = vadd.f32 0.21545328, %v1270_v33  ;;  %vm1221_vm1 = vweird.f32 %v1951_v16 }
  0x7e   : > { %v1133_v12 = vadd.f32 0.28795174, %v1132_v5  ;;  %v1135_v15 = vadd.f32 -0.3607037, %v1134_v6  ;;  %v1273_v52 = vadd.f32 -0.23896284, %v1272_v36  ;;  %vm1292_vm11 = vweird.f32 %v1972_v25 }
  0x7f   : > { %v1203_v18 = vmul.f32 %v1200_v46, %v1198_v57  ;;  %v1205_v42 = vmul.f32 %v1202_v11, %v1198_v57  ;;  %v1274_v14 = vmul.f32 %v1271_v37, %v1269_v22  ;;  %v1332_v2 = vand.u32 8388607, %v1330_v8 }
  0x80   : > { %v1136_v21 = vmul.f32 %v1133_v12, %v1127_v61  ;;  %v1138_v23 = vmul.f32 %v1135_v15, %v1127_v61  ;;  %v1276_v41 = vmul.f32 %v1273_v52, %v1269_v22  ;;  %v1266_v34 = vadd.s32 1, %v1317_v56 }
  0x81   : > { %v1204_v27 = vadd.f32 0.28795174, %v1203_v18  ;;  %v1206_v63 = vadd.f32 -0.3607037, %v1205_v42  ;;  %v1275_v24 = vadd.f32 0.28795174, %v1274_v14 }
  0x82   : > { %v1137_v28 = vadd.f32 0.48090908, %v1136_v21  ;;  %v1139_v19 = vadd.f32 -0.72134733, %v1138_v23  ;;  %v1277_v5 = vadd.f32 -0.3607037, %v1276_v41  ;;  %v1267_v51 = vsel %vm1263_vm3, %v1266_v34, %v1317_v56 }
  0x83   : > { %v1207_v53 = vmul.f32 %v1204_v27, %v1198_v57  ;;  %v1209_v47 = vmul.f32 %v1206_v63, %v1198_v57  ;;  %v1278_v35 = vmul.f32 %v1275_v24, %v1269_v22  ;;  %v2040_v30 = vor.u32 1065353216, %v1332_v2 }
  0x84   : > { %v1140_v4 = vmul.f32 %v1137_v28, %v1127_v61  ;;  %v1142_v38 = vmul.f32 %v1994_v39, %v1139_v19  ;;  %v1280_v11 = vmul.f32 %v1277_v5, %v1269_v22  ;;  %vm1219_vm5 = vcmp.eq.f32.partialorder %v1951_v16, 0.0 }
  0x85   : > { %v1208_v44 = vadd.f32 0.48090908, %v1207_v53  ;;  %v1210_v45 = vadd.f32 -0.72134733, %v1209_v47  ;;  %v1279_v15 = vadd.f32 0.48090908, %v1278_v35  ;;  %v1287_v47 = vcvt.s32.f32 %v1267_v51 }
  0x86   : > { %v1141_v49 = vadd.f32 1.442695, %v1140_v4  ;;  %vm1334_vm4 = vcmp.ge.f32.partialorder %v2040_v30, 1.4142135  ;;  %vm1220_vm6 = vcmp.lt.f32.partialorder %v1951_v16, 0.0  ;;  %vm1218_vm7 = vcmp.eq.f32.partialorder %v1951_v16, 1.0 }
  0x87   : > { %v1211_v55 = vmul.f32 %v1208_v44, %v1198_v57  ;;  %v1213_v61 = vmul.f32 %v2005_v48, %v1210_v45  ;;  %v1325_v57 = vand.u32 2139095040, %v2011_v54  ;;  %v1281_v17 = vadd.f32 -0.72134733, %v1280_v11 }
  0x88   : > { %v1143_v59 = vadd.f32 %v1142_v38, %v1141_v49  ;;  %v1282_v21 = vmul.f32 %v1279_v15, %v1269_v22  ;;  %vm1157_vm8 = vcmp.lt.f32.partialorder %v1871_v13, 0  ;;  %vm1158_vm9 = vcmp.eq.f32.partialorder %v1871_v13, 0 }
  0x89   : > { %v1212_v0 = vadd.f32 1.442695, %v1211_v55  ;;  %v1284_v50 = vmul.f32 %v2023_v20, %v1281_v17  ;;  %v1326_v8 = vshrl.u32 %v1325_v57, 23  ;;  %vm1159_vm12 = vcmp.eq.f32.partialorder %v1871_v13, 1065353216 }
  0x8a   : > { %v1144_v3 = vmul.f32 %v1994_v39, %v1143_v59  ;;  %v1335_v39 = vmul.f32 0.5, %v2040_v30  ;;  %v1283_v22 = vadd.f32 1.442695, %v1282_v21  ;;  %vm1291_vm2 = vcmp.lt.f32.partialorder %v1972_v25, 0.0 }
  0x8b   : > { %v1214_v6 = vadd.f32 %v1213_v61, %v1212_v0  ;;  %vm1162_vm3 = vcmp.eq.f32.partialorder %v1932_v10, 2139095040  ;;  %v1388_v52 = vadd.s32 4294967169, %v1326_v8 }
  0x8c   : > { %v1146_v46 = vadd.f32 %v1145_v60, %v1144_v3  ;;  %v1285_v53 = vadd.f32 %v1284_v50, %v1283_v22 }
  0x8d   : > { %v1215_v12 = vmul.f32 %v2005_v48, %v1214_v6  ;;  %v1336_v48 = vsel %vm1334_vm4, %v1335_v39, %v2040_v30  ;;  %v1337_v57 = vadd.s32 1, %v1388_v52 }
  0x8e   : > { %v1151_v7 = vsel %vm1150_vm15, %v1932_v10, %v1146_v46  ;;  %v2059_v26 = vadd.f32 -1.0, %v1336_v48  ;;  %v1286_v29 = vmul.f32 %v2023_v20, %v1285_v53  ;;  %vm1228_vm15 = vcmp.lt.f32.partialorder %v1923_v1, 0 }
  0x8f   : > { %v1152_v18 = vsel %vm1149_vm13, nan, %v1151_v7  ;;  %v1217_v42 = vadd.f32 %v1216_v9, %v1215_v12  ;;  %vm1289_vm13 = vcmp.eq.f32.partialorder %v1972_v25, 1.0  ;;  %v1338_v7 = vsel %vm1334_vm4, %v1337_v57, %v1388_v52 }
  0x90   : > { %v1153_v23 = vsel %vm1148_vm10, -inf, %v1152_v18  ;;  %v1340_v62 = vmul.f32 %v2059_v26, %v2059_v26  ;;  %v1288_v45 = vadd.f32 %v1287_v47, %v1286_v29  ;;  %vm1170_vm10 = vcmp.ne.f32.partialorder %v1871_v13, %v1871_v13 }
  0x91   : > { %v1154_v27 = vsel %vm1147_vm14, 0.0, %v1153_v23  ;;  %v1222_v63 = vsel %vm1221_vm1, %v1951_v16, %v1217_v42  ;;  %vm1290_vm14 = vcmp.eq.f32.partialorder %v1972_v25, 0.0  ;;  %vm1229_vm1 = vcmp.eq.f32.partialorder %v1923_v1, 0 }
  0x92   : > { %v1155_v28 = vmul.f32 0.73333335, %v1154_v27  ;;  %v1223_v19 = vsel %vm1220_vm6, nan, %v1222_v63  ;;  %v1341_v36 = vmul.f32 0.12621109, %v1340_v62  ;;  %v1293_v20 = vsel %vm1292_vm11, %v1972_v25, %v1288_v45 }
  0x93   : > { %v1224_v31 = vsel %vm1219_vm5, -inf, %v1223_v19  ;;  %v1343_v4 = vmul.f32 -0.20706727, %v1340_v62  ;;  %v1294_v61 = vsel %vm1291_vm2, nan, %v1293_v20  ;;  %vm1233_vm5 = vcmp.eq.f32.partialorder %v1951_v16, 2139095040 }
  0x94   : > { %1460 = vpow2.f32 %v1155_v28  ;;  %v1225_v33 = vsel %vm1218_vm7, 0.0, %v1224_v31  ;;  %v1342_v43 = vadd.f32 0.21545328, %v1341_v36  ;;  %v1295_v60 = vsel %vm1290_vm14, -inf, %v1294_v61 }
  0x95   : > { %v1226_v38 = vmul.f32 0.73333335, %v1225_v33  ;;  %v1344_v44 = vadd.f32 -0.23896284, %v1343_v4  ;;  %v1296_v41 = vsel %vm1289_vm13, 0.0, %v1295_v60  ;;  %vm1241_vm6 = vcmp.ne.f32.partialorder %v1923_v1, %v1923_v1 }
  0x96   : > { %v1345_v37 = vmul.f32 %v1342_v43, %v1340_v62  ;;  %v1297_v5 = vmul.f32 0.73333335, %v1296_v41  ;;  %vm1230_vm7 = vcmp.eq.f32.partialorder %v1923_v1, 1065353216  ;;  %v1358_v21 = vcvt.s32.f32 %v1338_v7 }
  0x97   : > { %1462 = vpow2.f32 %v1226_v38  ;;  %v1347_v49 = vmul.f32 %v1344_v44, %v1340_v62  ;;  %vm1304_vm11 = vcmp.eq.f32.partialorder %v1972_v25, 2139095040  ;;  %vm1312_vm4 = vcmp.ne.f32.partialorder %v1936_v58, %v1936_v58 }
  0x98   : > { %v1346_v56 = vadd.f32 0.28795174, %v1345_v37  ;;  %1464 = vpow2.f32 %v1297_v5  ;;  %vm1363_vm2 = vweird.f32 %v2011_v54  ;;  %vm1361_vm14 = vcmp.eq.f32.partialorder %v2011_v54, 0.0 }
  0x99   : > { %v1348_v14 = vadd.f32 -0.3607037, %v1347_v49  ;;  %vm1370_vm13 = vcmp.lt.f32.partialorder %v1996_v40, 0 }
  0x9a   : > { %v1461_v55 = vpop.eup %1460  ;;  %v1349_v0 = vmul.f32 %v1346_v56, %v1340_v62 }
  0x9b   : > { %v1163_v59 = vsel %vm1157_vm8, 2143289344, %v1461_v55  ;;  %v1351_v24 = vmul.f32 %v1348_v14, %v1340_v62  ;;  %vm1299_vm8 = vcmp.lt.f32.partialorder %v1936_v58, 0 }
  0x9c   : > { %v1164_v32 = vsel %vm1158_vm9, 0, %v1163_v59  ;;  %v1350_v35 = vadd.f32 0.48090908, %v1349_v0  ;;  %vm1300_vm9 = vcmp.eq.f32.partialorder %v1936_v58, 0 }
  0x9d   : > { %v1463_v2 = vpop.eup %1462  ;;  %v1169_v3 = vsel %vm1162_vm3, 2139095040, %v1164_v32  ;;  %v1352_v46 = vadd.f32 -0.72134733, %v1351_v24  ;;  %vm1362_vm3 = vcmp.lt.f32.partialorder %v2011_v54, 0.0 }
  0x9e   : > { %v1173_v6 = vsel %vm1170_vm10, 2143289344, %v1169_v3  ;;  %v1234_v9 = vsel %vm1228_vm15, 2143289344, %v1463_v2  ;;  %v1353_v15 = vmul.f32 %v1350_v35, %v1340_v62  ;;  %v1465_v48 = vpop.eup %1464  ;;  %vm1360_vm10 = vcmp.eq.f32.partialorder %v2011_v54, 1.0 }
  0x9f   : > { %v1174_v10 = vsel %vm1159_vm12, 1065353216, %v1173_v6  ;;  %v1235_v34 = vsel %vm1229_vm1, 0, %v1234_v9  ;;  %v1355_v39 = vmul.f32 %v2059_v26, %v1352_v46  ;;  %v1305_v1 = vsel %vm1299_vm8, 2143289344, %v1465_v48 }
  0xa0   : > { %v501_v11 = vmul.f32 0.02874, %v1174_v10  ;;  %v1240_v12 = vsel %vm1233_vm5, 2139095040, %v1235_v34  ;;  %v1354_v18 = vadd.f32 1.442695, %v1353_v15  ;;  %vm1301_vm12 = vcmp.eq.f32.partialorder %v1936_v58, 1065353216 }
  0xa1   : > { %v1244_v13 = vsel %vm1241_vm6, 2143289344, %v1240_v12  ;;  %v1306_v23 = vsel %vm1300_vm9, 0, %v1305_v1  ;;  %vm1371_vm15 = vcmp.eq.f32.partialorder %v1996_v40, 0  ;;  %vm1375_vm1 = vcmp.eq.f32.partialorder %v2011_v54, 2139095040 }
  0xa2   : > { %505 = vst.msk [vmem:[%s2103_s10] sm:$0xff] %vm430_vm0, %v501_v11  ;;  %v1245_v17 = vsel %vm1230_vm7, 1065353216, %v1244_v13  ;;  %v1356_v16 = vadd.f32 %v1355_v39, %v1354_v18  ;;  %v1311_v51 = vsel %vm1304_vm11, 2139095040, %v1306_v23  ;;  %vm1383_vm5 = vcmp.ne.f32.partialorder %v1996_v40, %v1996_v40 }
  0xa3   : > { %v502_v42 = vmul.f32 0.02874, %v1245_v17  ;;  %v1315_v27 = vsel %vm1312_vm4, 2143289344, %v1311_v51  ;;  %vm1372_vm6 = vcmp.eq.f32.partialorder %v1996_v40, 1065353216 }
  0xa4   : > { %v1357_v30 = vmul.f32 %v2059_v26, %v1356_v16  ;;  %v1316_v25 = vsel %vm1301_vm12, 1065353216, %v1315_v27 }
  0xa5   : > { %506 = vst.msk [vmem:[%s2103_s10 + $0x8] sm:$0xff] %vm430_vm0, %v502_v42  ;;  %v503_v22 = vmul.f32 0.02874, %v1316_v25 }
  0xa6   : > { %v1359_v50 = vadd.f32 %v1358_v21, %v1357_v30 }
  0xa7   : > { %507 = vst.msk [vmem:[%s2103_s10 + $0x10] sm:$0xff] %vm430_vm0, %v503_v22 }
  0xa8   : > { %v1364_v63 = vsel %vm1363_vm2, %v2011_v54, %v1359_v50 }
  0xa9   : > { %v1365_v28 = vsel %vm1362_vm3, nan, %v1364_v63 }
  0xaa   : > { %v1366_v26 = vsel %vm1361_vm14, -inf, %v1365_v28 }
  0xab   : > { %v1367_v58 = vsel %vm1360_vm10, 0.0, %v1366_v26 }
  0xac   : > { %v1368_v19 = vmul.f32 0.73333335, %v1367_v58 }
  0xae   : > { %1466 = vpow2.f32 %v1368_v19 }
  0xb4   : > { %v1467_v62 = vpop.eup %1466 }
  0xb5   : > { %v1376_v31 = vsel %vm1370_vm13, 2143289344, %v1467_v62 }
  0xb6   : > { %v1377_v53 = vsel %vm1371_vm15, 0, %v1376_v31 }
  0xb7   : > { %v1382_v47 = vsel %vm1375_vm1, 2139095040, %v1377_v53 }
  0xb8   : > { %v1386_v33 = vsel %vm1383_vm5, 2143289344, %v1382_v47 }
  0xb9   : > { %v1387_v36 = vsel %vm1372_vm6, 1065353216, %v1386_v33 }
  0xba   : > { %v504_v4 = vmul.f32 0.02874, %v1387_v36 }
  0xbc   : > { %508 = vst.msk [vmem:[%s2103_s10 + $0x18] sm:$0xff] %vm430_vm0, %v504_v4 }
  0xbd PF: > { %s22_s23 = sadd.s32 1, %s1582_s23   ;;  %s2170_s18 = smov %s1566_s19 }
  0xbe   : > { %p19_p0 = scmp.ge.s32.totalorder %s22_s23, 4   ;;  %s2171_s19 = smov %s1570_s20 }
  0xbf   : > { %s2172_s20 = smov %s1661_s29  ;;  %s2173_s21 = smov %s1578_s22 }
  0xc0   : > { %s2174_s22 = smov %s2176_s25  ;;  %21 = sbr.rel (!%p19_p0) target bundleno = 6 (0x6), region = 121 }
  0xc5   :  { %614 = vsyncpa [#allocation3], 1 }
  0xc6   :  { %616 = vsyncpa [#allocation3 + $0x1], 1 }
  0xc7   :  { %617 = vsyncpa [#allocation5], 1 }
  0xc8   :  { %619 = vsyncpa [#allocation5 + $0x1], 1 }

// kernel: mad_forward.13
= control target key start
LH: loop header
LB: loop body
LE: loop exit
PB: predicated region body
PF: predicated region fallthrough
CT: control target
= control target key end

     0   :  { %s900_s12 = smov 0   ;;  %s902_s13 = smov 0   ;;  %s1079_s0 = inlined_call_operand.vmem [shape: f32[2,8,512], index: 0, kind: input, shape index: {}]   ;;  %s1080_s1 = inlined_call_operand.vmem [shape: f32[2,8,512], index: 1, kind: input, shape index: {}]   ;;  %s1081_s2 = inlined_call_operand.vmem [shape: f32[2,8,512], index: 2, kind: input, shape index: {}]   ;;  %s1082_s3 = inlined_call_operand.vmem [shape: f32[2,8,128], index: 3, kind: output, shape index: {}]  }
   0x1   :  { %s904_s14 = smov 0  }
   0x2 LB: > { %s25_s15 = sadd.s32 1, %s872_s13  ;;  %p782_p0 = scmp.ge.s32.totalorder %s876_s14, 1  ;;  %s876_s14 = sphi %s904_s14, %s13_s14   ;;  %s872_s13 = sphi %s902_s13, %s1084_s13   ;;  %s868_s12 = sphi %s900_s12, %s1083_s12  }
   0x3   : > { %p27_p1 = scmp.ge.s32.totalorder %s25_s15, 2  ;;  %p187_p2 = scmp.lt.s32.totalorder %s876_s14, 3 }
   0x5   : > { %s1086_s15 = smov (%p27_p1, %s25_s15), 0  ;;  %p188_p3 = pnand %p782_p0, %p187_p2 }
   0x6   : > { %p232_p4 = scmp.lt.s32.totalorder (!%p188_p3), %s868_s12, 1 }
   0x7   : > { %191 = sbr.rel (%p188_p3) target bundleno = 393 (0x189), region = 32 }
   0xc   : > { %v272_v0 = vlaneseq  ;;  %v878_v10 = vmov 1.0   ;;  %s1088_s12 = smov (!%p232_p4, %s868_s12), 1  ;;  %v879_v57 = vmov 0.0  }
   0xd   : > { %s980_s16 = sshll.u32 %s1088_s12, 5  ;;  %s789_s26 = sshll.u32 %s1088_s12, 3 }
   0xe   : > { %v920_v1 = vshrl.u32 %v272_v0, 7  ;;  %v922_v2 = vand.u32 127, %v272_v0  ;;  %s997_s19 = scalar_lea.vmem %s1079_s0, %s980_s16  ;;  %s249_s22 = scalar_lea.vmem %s1080_s1, %s980_s16 }
   0xf   : > { %v384_v19 = vld [vmem:[%s997_s19] sm:$0xff]  ;;  %v385_v20 = vld [vmem:[%s997_s19 + $0x8] sm:$0xff]  ;;  %v386_v24 = vld [vmem:[%s997_s19 + $0x10] sm:$0xff]  ;;  %s258_s25 = scalar_lea.vmem %s1081_s2, %s980_s16  ;;  %s262_s29 = scalar_lea.vmem %s1082_s3, %s789_s26 }
  0x10   : > { %v288_v3 = vadd.s32 120, %v920_v1  ;;  %v926_v4 = vmul.u32 4, %v922_v2  ;;  %v287_v5 = vadd.s32 112, %v920_v1  ;;  %v286_v7 = vadd.s32 104, %v920_v1  ;;  %v387_v25 = vld [vmem:[%s997_s19 + $0x18] sm:$0xff]  ;;  %v388_v27 = vld [vmem:[%s249_s22] sm:$0xff] }
  0x11   : > { %vm341_vm1 = vcmp.lt.s32.totalorder %v922_v2, 5  ;;  %v285_v8 = vadd.s32 96, %v920_v1  ;;  %v284_v9 = vadd.s32 88, %v920_v1  ;;  %v283_v11 = vadd.s32 80, %v920_v1  ;;  %v389_v28 = vld [vmem:[%s249_s22 + $0x8] sm:$0xff]  ;;  %v390_v31 = vld [vmem:[%s249_s22 + $0x10] sm:$0xff] }
  0x12   : > { %vm307_vm0 = vcmp.ge.s32.totalorder %v288_v3, %v926_v4  ;;  %v931_v6 = vadd.s32 16, %v926_v4  ;;  %vm306_vm3 = vcmp.ge.s32.totalorder %v287_v5, %v926_v4  ;;  %vm305_vm7 = vcmp.ge.s32.totalorder %v286_v7, %v926_v4  ;;  %v391_v35 = vld [vmem:[%s249_s22 + $0x18] sm:$0xff]  ;;  %v392_v41 = vld [vmem:[%s258_s25] sm:$0xff]  ;;  %v393_v42 = vld [vmem:[%s258_s25 + $0x8] sm:$0xff] }
  0x13   : > { %vm304_vm11 = vcmp.ge.s32.totalorder %v285_v8, %v926_v4  ;;  %vm303_vm15 = vcmp.ge.s32.totalorder %v284_v9, %v926_v4  ;;  %v282_v12 = vadd.s32 72, %v920_v1  ;;  %v281_v13 = vadd.s32 64, %v920_v1  ;;  %v394_v45 = vld [vmem:[%s258_s25 + $0x10] sm:$0xff]  ;;  %v395_v49 = vld [vmem:[%s258_s25 + $0x18] sm:$0xff] }
  0x14   : > { %vm324_vm2 = vcmp.lt.s32.totalorder %v288_v3, %v931_v6  ;;  %vm323_vm4 = vcmp.lt.s32.totalorder %v287_v5, %v931_v6  ;;  %vm322_vm8 = vcmp.lt.s32.totalorder %v286_v7, %v931_v6  ;;  %vm321_vm12 = vcmp.lt.s32.totalorder %v285_v8, %v931_v6 }
  0x15   : > { %vm340_vm5 = vmand %vm307_vm0, %vm324_vm2  ;;  %vm320_vm0 = vcmp.lt.s32.totalorder %v284_v9, %v931_v6  ;;  %v280_v14 = vadd.s32 56, %v920_v1  ;;  %v279_v15 = vadd.s32 48, %v920_v1  ;;  %v278_v16 = vadd.s32 40, %v920_v1 }
  0x16   : > { %vm357_vm6 = vmand %vm340_vm5, %vm341_vm1  ;;  %vm319_vm5 = vcmp.lt.s32.totalorder %v283_v11, %v931_v6  ;;  %v277_v17 = vadd.s32 32, %v920_v1  ;;  %v276_v18 = vadd.s32 24, %v920_v1  ;;  %v275_v21 = vadd.s32 16, %v920_v1 }
  0x17   : > { %790 = vmatpush.msk.msra.mxu0 %vm357_vm6, %v878_v10  ;;  %vm339_vm9 = vmand %vm306_vm3, %vm323_vm4  ;;  %vm302_vm4 = vcmp.ge.s32.totalorder %v283_v11, %v926_v4  ;;  %v274_v22 = vadd.s32 8, %v920_v1  ;;  %v396_v23 = vadd.f32 %v385_v20, %v384_v19  ;;  %v400_v30 = vadd.f32 %v389_v28, %v388_v27 }
  0x18   : > { %vm356_vm10 = vmand %vm339_vm9, %vm341_vm1  ;;  %vm318_vm9 = vcmp.lt.s32.totalorder %v282_v12, %v931_v6  ;;  %v404_v33 = vmul.f32 %v388_v27, %v388_v27  ;;  %v405_v34 = vmul.f32 %v389_v28, %v389_v28  ;;  %v407_v38 = vmul.f32 %v390_v31, %v390_v31 }
  0x19   : > { %791 = vmatpush.msk.msra.mxu0 %vm356_vm10, %v878_v10  ;;  %vm338_vm13 = vmand %vm305_vm7, %vm322_vm8  ;;  %vm301_vm8 = vcmp.ge.s32.totalorder %v282_v12, %v926_v4  ;;  %v397_v26 = vadd.f32 %v396_v23, %v386_v24  ;;  %v401_v32 = vadd.f32 %v400_v30, %v390_v31  ;;  %v409_v40 = vmul.f32 %v391_v35, %v391_v35 }
  0x1a   : > { %vm355_vm14 = vmand %vm338_vm13, %vm341_vm1  ;;  %vm317_vm13 = vcmp.lt.s32.totalorder %v281_v13, %v931_v6  ;;  %v406_v37 = vadd.f32 %v405_v34, %v404_v33  ;;  %v412_v44 = vadd.f32 %v393_v42, %v392_v41  ;;  %v416_v47 = vmul.f32 %v392_v41, %v392_v41 }
  0x1b   : > { %792 = vmatpush.msk.msra.mxu0 %vm355_vm14, %v878_v10  ;;  %vm337_vm2 = vmand %vm304_vm11, %vm321_vm12  ;;  %vm300_vm12 = vcmp.ge.s32.totalorder %v281_v13, %v926_v4  ;;  %v398_v29 = vadd.f32 %v397_v26, %v387_v25  ;;  %v402_v36 = vadd.f32 %v401_v32, %v391_v35  ;;  %v417_v48 = vmul.f32 %v393_v42, %v393_v42 }
  0x1c   : > { %vm354_vm3 = vmand %vm337_vm2, %vm341_vm1  ;;  %vm316_vm2 = vcmp.lt.s32.totalorder %v280_v14, %v931_v6  ;;  %v408_v39 = vadd.f32 %v407_v38, %v406_v37  ;;  %v413_v46 = vadd.f32 %v412_v44, %v394_v45  ;;  %v419_v52 = vmul.f32 %v394_v45, %v394_v45 }
  0x1d   : > { %793 = vmatpush.msk.msra.mxu0 %vm354_vm3, %v878_v10  ;;  %vm336_vm6 = vmand %vm303_vm15, %vm320_vm0  ;;  %vm299_vm0 = vcmp.ge.s32.totalorder %v280_v14, %v926_v4  ;;  %v418_v51 = vadd.f32 %v417_v48, %v416_v47  ;;  %v421_v54 = vmul.f32 %v395_v49, %v395_v49  ;;  %v378_v56 = vadd.s32 4, %v920_v1 }
  0x1e   : > { %vm353_vm7 = vmand %vm336_vm6, %vm341_vm1  ;;  %vm315_vm6 = vcmp.lt.s32.totalorder %v279_v15, %v931_v6  ;;  %v410_v43 = vadd.f32 %v409_v40, %v408_v39  ;;  %v414_v50 = vadd.f32 %v413_v46, %v395_v49 }
  0x1f   : > { %794 = vmatpush.msk.msra.mxu0 %vm353_vm7, %v878_v10  ;;  %vm335_vm10 = vmand %vm302_vm4, %vm319_vm5  ;;  %vm298_vm5 = vcmp.ge.s32.totalorder %v279_v15, %v926_v4  ;;  %v420_v53 = vadd.f32 %v419_v52, %v418_v51 }
  0x20   : > { %vm352_vm11 = vmand %vm335_vm10, %vm341_vm1  ;;  %vm314_vm10 = vcmp.lt.s32.totalorder %v278_v16, %v931_v6 }
  0x21   : > { %795 = vmatpush.msk.msra.mxu0 %vm352_vm11, %v878_v10  ;;  %vm334_vm14 = vmand %vm301_vm8, %vm318_vm9  ;;  %vm297_vm9 = vcmp.ge.s32.totalorder %v278_v16, %v926_v4  ;;  %v422_v55 = vadd.f32 %v421_v54, %v420_v53 }
  0x22   : > { %vm351_vm15 = vmand %vm334_vm14, %vm341_vm1  ;;  %vm313_vm14 = vcmp.lt.s32.totalorder %v277_v17, %v931_v6 }
  0x23   : > { %796 = vmatpush.msk.msra.mxu0 %vm351_vm15, %v878_v10  ;;  %vm333_vm3 = vmand %vm300_vm12, %vm317_vm13  ;;  %vm296_vm13 = vcmp.ge.s32.totalorder %v277_v17, %v926_v4 }
  0x24   : > { %vm350_vm4 = vmand %vm333_vm3, %vm341_vm1  ;;  %vm312_vm3 = vcmp.lt.s32.totalorder %v276_v18, %v931_v6 }
  0x25   : > { %797 = vmatpush.msk.msra.mxu0 %vm350_vm4, %v878_v10  ;;  %vm332_vm7 = vmand %vm299_vm0, %vm316_vm2  ;;  %vm295_vm2 = vcmp.ge.s32.totalorder %v276_v18, %v926_v4 }
  0x26   : > { %vm349_vm8 = vmand %vm332_vm7, %vm341_vm1  ;;  %vm311_vm7 = vcmp.lt.s32.totalorder %v275_v21, %v931_v6 }
  0x27   : > { %798 = vmatpush.msk.msra.mxu0 %vm349_vm8, %v878_v10  ;;  %vm331_vm11 = vmand %vm298_vm5, %vm315_vm6  ;;  %vm294_vm6 = vcmp.ge.s32.totalorder %v275_v21, %v926_v4 }
  0x28   : > { %vm348_vm12 = vmand %vm331_vm11, %vm341_vm1  ;;  %vm310_vm11 = vcmp.lt.s32.totalorder %v274_v22, %v931_v6 }
  0x29   : > { %799 = vmatpush.msk.msra.mxu0 %vm348_vm12, %v878_v10  ;;  %vm330_vm15 = vmand %vm297_vm9, %vm314_vm10  ;;  %vm293_vm10 = vcmp.ge.s32.totalorder %v274_v22, %v926_v4 }
  0x2a   : > { %vm347_vm0 = vmand %vm330_vm15, %vm341_vm1  ;;  %vm309_vm15 = vcmp.lt.s32.totalorder %v920_v1, %v931_v6 }
  0x2b   : > { %800 = vmatpush.msk.msra.mxu0 %vm347_vm0, %v878_v10  ;;  %vm329_vm4 = vmand %vm296_vm13, %vm313_vm14  ;;  %vm292_vm14 = vcmp.ge.s32.totalorder %v920_v1, %v926_v4 }
  0x2c   : > { %vm346_vm5 = vmand %vm329_vm4, %vm341_vm1 }
  0x2d   : > { %801 = vmatpush.msk.msra.mxu0 %vm346_vm5, %v878_v10  ;;  %vm328_vm8 = vmand %vm295_vm2, %vm312_vm3  ;;  %vm379_vm5 = vcmp.lt.s32.totalorder %v922_v2, %v378_v56 }
  0x2e   : > { %vm345_vm9 = vmand %vm328_vm8, %vm341_vm1 }
  0x2f   : > { %802 = vmatpush.msk.msra.mxu0 %vm345_vm9, %v878_v10  ;;  %vm327_vm12 = vmand %vm294_vm6, %vm311_vm7  ;;  %vm381_vm7 = vcmp.lt.s32.totalorder %v920_v1, 5  ;;  %vm462_vm9 = vcmask 64512  }
  0x30   : > { %vm344_vm13 = vmand %vm327_vm12, %vm341_vm1 }
  0x31   : > { %803 = vmatpush.msk.msra.mxu0 %vm344_vm13, %v878_v10  ;;  %vm326_vm0 = vmand %vm293_vm10, %vm310_vm11 }
  0x32   : > { %vm343_vm2 = vmand %vm326_vm0, %vm341_vm1 }
  0x33   : > { %804 = vmatpush.msk.msra.mxu0 %vm343_vm2, %v878_v10  ;;  %vm325_vm3 = vmand %vm292_vm14, %vm309_vm15 }
  0x34   : > { %vm342_vm4 = vmand %vm325_vm3, %vm341_vm1  ;;  %vm377_vm1 = vcmp.ge.s32.totalorder %v922_v2, %v920_v1 }
  0x35   : > { %805 = vmatpush.msk.msra.mxu0 %vm342_vm4, %v878_v10  ;;  %vm380_vm6 = vmand %vm377_vm1, %vm379_vm5 }
  0x36   : > { %445 = vmatmul.f32.vlgmr.msra.gmra.mxu0 %v398_v29  ;;  %vm382_vm8 = vmand %vm380_vm6, %vm381_vm7 }
  0x37   : > { %v383_v58 = vsel %vm382_vm8, 1.0, %v879_v57 }
  0x3e   : > { %448 = vmatmul.f32.gmra.mxu0 %v402_v36 }
  0x46   : > { %451 = vmatmul.f32.gmra.mxu0 %v410_v43 }
  0x4e   : > { %454 = vmatmul.f32.gmra.mxu0 %v414_v50 }
  0x56   : > { %457 = vmatmul.f32.gmra.mxu0 %v422_v55 }
  0xb3   : > { %v446_v59 = vpop.f32.mrf.mxu0 }
  0xb4   : > { %481 = vmatpush.msra.mxu1 %v446_v59 }
  0xb5   : > { %806 = vmatmul.msk.f32.vlgmr.msra.gmra.mxu1 %vm462_vm9, %v383_v58 }
  0xbb   : > { %v449_v60 = vpop.f32.mrf.mxu0 }
  0xbc   : > { %505 = vmatpush.msra.mxu2 %v449_v60 }
  0xbd   : > { %807 = vmatmul.msk.f32.vlgmr.msra.gmra.mxu2 %vm462_vm9, %v383_v58 }
  0xc3   : > { %v452_v61 = vpop.f32.mrf.mxu0 }
  0xc4   : > { %529 = vmatpush.msra.mxu3 %v452_v61 }
  0xc5   : > { %808 = vmatmul.msk.f32.vlgmr.msra.gmra.mxu3 %vm462_vm9, %v383_v58 }
  0xcb   : > { %v455_v62 = vpop.f32.mrf.mxu0 }
  0xcc   : > { %553 = vmatpush.msrb.mxu1 %v455_v62 }
  0xcd   : > { %809 = vmatmul.msk.f32.vlgmr.msrb.gmra.mxu1 %vm462_vm9, %v383_v58 }
  0xd3   : > { %v458_v63 = vpop.f32.mrf.mxu0 }
  0xd4   : > { %577 = vmatpush.msrb.mxu2 %v458_v63 }
  0xd5   : > { %810 = vmatmul.msk.f32.vlgmr.msrb.gmra.mxu2 %vm462_vm9, %v383_v58 }
 0x132   : > { %v483_v0 = vpop.f32.mrf.mxu1 }
 0x133   : > { %v1058_v2 = vmul.f32 0.00390625, %v483_v0 }
 0x135   : > { %v627_v4 = vmax.f32 %v1058_v2, 0.5  ;;  %vm646_vm3 = vcmp.gt.f32.partialorder %v1058_v2, 0.5 }
 0x137   : > { %844 = vrcp.f32 %v627_v4  ;;  %vm633_vm10 = vweird.f32 %v627_v4  ;;  %v639_v26 = vand.u32 2147483648, %v627_v4  ;;  %v637_v29 = vand.u32 2147483647, %v627_v4 }
 0x139   : > { %v640_v31 = vor.u32 1.1754944e-38, %v639_v26  ;;  %vm638_vm14 = vcmp.eq.f32.partialorder %v637_v29, 8.507059e+37 }
 0x13d   : > { %v845_v10 = vpop.eup %844 }
 0x13e   : > { %v629_v12 = vmul.f32 %v845_v10, %v627_v4  ;;  %vm634_vm11 = vweird.f32 %v845_v10 }
 0x13f   : > { %vm635_vm12 = vmor %vm633_vm10, %vm634_vm11 }
 0x140   : > { %v507_v1 = vpop.f32.mrf.mxu2  ;;  %v630_v16 = vsub.f32 1.0, %v629_v12 }
 0x141   : > { %v590_v3 = vmul.f32 0.00390625, %v507_v1 }
 0x142   : > { %v631_v22 = vmul.f32 %v845_v10, %v630_v16 }
 0x143   : > { %v597_v5 = vmul.f32 %v590_v3, %v590_v3 }
 0x144   : > { %v632_v28 = vadd.f32 %v845_v10, %v631_v22 }
 0x146   : > { %v636_v34 = vsel %vm635_vm12, %v845_v10, %v632_v28 }
 0x147   : > { %v641_v38 = vsel %vm638_vm14, %v640_v31, %v636_v34 }
 0x148   : > { %v531_v6 = vpop.f32.mrf.mxu3 }
 0x149   : > { %v592_v7 = vmul.f32 0.00390625, %v531_v6 }
 0x14a   : > { %v555_v11 = vpop.f32.mrf.mxu1 }
 0x14b   : > { %v598_v8 = vsub.f32 %v592_v7, %v597_v5  ;;  %v594_v13 = vmul.f32 0.00390625, %v555_v11 }
 0x14d   : > { %v599_v9 = vmax.f32 %v598_v8, 0.0  ;;  %v612_v17 = vmul.f32 %v594_v13, %v594_v13 }
 0x14f   : > { %846 = vrsqrt.f32 %v599_v9  ;;  %vm607_vm13 = vcmp.eq.f32.partialorder %v599_v9, inf  ;;  %v610_v33 = vand.u32 2147483648, %v599_v9  ;;  %vm609_vm15 = vcmp.eq.f32.partialorder %v599_v9, 0.0 }
 0x155   : > { %v847_v14 = vpop.eup %846 }
 0x156   : > { %v601_v15 = vmul.f32 %v847_v14, %v599_v9 }
 0x158   : > { %v579_v18 = vpop.f32.mrf.mxu2  ;;  %v602_v19 = vmul.f32 %v847_v14, %v601_v15 }
 0x159   : > { %v1061_v20 = vmul.f32 0.00390625, %v579_v18 }
 0x15a   : > { %v603_v21 = vmul.f32 0.5, %v602_v19 }
 0x15b   : > { %v613_v23 = vsub.f32 %v1061_v20, %v612_v17 }
 0x15c   : > { %v604_v24 = vsub.f32 1.5, %v603_v21 }
 0x15d   : > { %v614_v25 = vmax.f32 %v613_v23, 0.0 }
 0x15e   : > { %v605_v27 = vmul.f32 %v847_v14, %v604_v24 }
 0x15f   : > { %848 = vrsqrt.f32 %v614_v25  ;;  %vm622_vm0 = vcmp.eq.f32.partialorder %v614_v25, inf  ;;  %v625_v46 = vand.u32 2147483648, %v614_v25  ;;  %vm624_vm2 = vcmp.eq.f32.partialorder %v614_v25, 0.0 }
 0x160   : > { %v606_v30 = vmul.f32 %v605_v27, %v599_v9 }
 0x162   : > { %v608_v32 = vsel %vm607_vm13, %v599_v9, %v606_v30 }
 0x163   : > { %v611_v35 = vsel %vm609_vm15, %v610_v33, %v608_v32 }
 0x164   : > { %v642_v39 = vmul.f32 %v641_v38, %v611_v35 }
 0x165   : > { %v849_v36 = vpop.eup %848 }
 0x166   : > { %v616_v37 = vmul.f32 %v849_v36, %v614_v25  ;;  %v643_v42 = vadd.f32 1e-12, %v642_v39 }
 0x168   : > { %v617_v40 = vmul.f32 %v849_v36, %v616_v37  ;;  %850 = vlog2.f32 %v643_v42 }
 0x16a   : > { %v618_v41 = vmul.f32 0.5, %v617_v40 }
 0x16c   : > { %v619_v43 = vsub.f32 1.5, %v618_v41 }
 0x16e   : > { %v620_v44 = vmul.f32 %v849_v36, %v619_v43  ;;  %v851_v50 = vpop.eup %850 }
 0x16f   : > { %v645_v53 = vmul.f32 0.6931472, %v851_v50 }
 0x170   : > { %v621_v45 = vmul.f32 %v620_v44, %v614_v25 }
 0x171   : > { %v811_v54 = vadd.f32 5.0, %v645_v53  ;;  %vm655_vm4 = vcmp.le.f32.partialorder %v645_v53, -5.0  ;;  %vm660_vm7 = vcmp.gt.f32.partialorder %v645_v53, -5.0 }
 0x172   : > { %v623_v47 = vsel %vm622_vm0, %v614_v25, %v621_v45 }
 0x173   : > { %v626_v48 = vsel %vm624_vm2, %v625_v46, %v623_v47  ;;  %v653_v57 = vadd.f32 -5.0, %v811_v54 }
 0x174   : > { %v647_v49 = vmul.f32 %v641_v38, %v626_v48 }
 0x176   : > { %v648_v51 = vsel %vm646_vm3, %v647_v49, 0.0 }
 0x177   : > { %v649_v52 = vadd.f32 1e-12, %v648_v51 }
 0x179   : > { %852 = vlog2.f32 %v649_v52 }
 0x17f   : > { %v853_v55 = vpop.eup %852 }
 0x180   : > { %v651_v56 = vmul.f32 0.6931472, %v853_v55 }
 0x182   : > { %vm654_vm1 = vcmp.gt.f32.partialorder %v651_v56, -5.0  ;;  %v812_v58 = vadd.f32 5.0, %v651_v56  ;;  %vm659_vm5 = vcmp.gt.f32.partialorder %v651_v56, %v653_v57  ;;  %v662_v59 = vsub.f32 %v651_v56, %v653_v57 }
 0x183   : > { %vm656_vm6 = vmand %vm654_vm1, %vm655_vm4 }
 0x184   : > { %v658_v60 = vsel %vm656_vm6, %v812_v58, 0.0  ;;  %vm661_vm8 = vmand %vm659_vm5, %vm660_vm7 }
 0x185   : > { %v663_v61 = vsel %vm661_vm8, %v662_v59, %v658_v60 }
 0x186   : > { %v664_v62 = vmul.f32 %v663_v61, %v1061_v20 }
 0x188   : > { %665 = vst [vmem:[%s262_s29] sm:$0xff] %v664_v62 }
 0x189 PF: > { %s13_s14 = sadd.s32 1, %s876_s14   ;;  %s1083_s12 = smov %s872_s13 }
 0x18a   : > { %p10_p5 = scmp.ge.s32.totalorder %s13_s14, 4   ;;  %s1084_s13 = smov %s1086_s15 }
 0x18c   :  { %12 = sbr.rel (!%p10_p5) target bundleno = 2 (0x2), region = 80 }

// kernel: mad_forward.8
= control target key start
LH: loop header
LB: loop body
LE: loop exit
PB: predicated region body
PF: predicated region fallthrough
CT: control target
= control target key end

     0   :  { %s1027_s9 = smov 0   ;;  %s1029_s10 = smov 0   ;;  %s1444_s0 = inlined_call_operand.vmem [shape: f32[8,8,512], index: 0, kind: input, shape index: {}]   ;;  %s1445_s1 = inlined_call_operand.vmem [shape: f32[8,8,512], index: 1, kind: input, shape index: {}]   ;;  %s1446_s2 = inlined_call_operand.vmem [shape: f32[8,8,128], index: 2, kind: output, shape index: {}]  }
   0x1   :  { %s1031_s11 = smov 0  }
   0x2 LB: > { %s24_s12 = sadd.s32 1, %s1004_s10  ;;  %p898_p0 = scmp.ge.s32.totalorder %s1008_s11, 1  ;;  %s1008_s11 = sphi %s1031_s11, %s12_s11   ;;  %s1004_s10 = sphi %s1029_s10, %s1454_s10   ;;  %s1000_s9 = sphi %s1027_s9, %s1453_s9  }
   0x3   : > { %p26_p1 = scmp.ge.s32.totalorder %s24_s12, 8  ;;  %p146_p2 = scmp.lt.s32.totalorder %s1008_s11, 9 }
   0x5   : > { %s1456_s12 = smov (%p26_p1, %s24_s12), 0  ;;  %p147_p3 = pnand %p898_p0, %p146_p2 }
   0x6   : > { %p180_p4 = scmp.lt.s32.totalorder (!%p147_p3), %s1000_s9, 7 }
   0x7   : > { %150 = sbr.rel (%p147_p3) target bundleno = 399 (0x18f), region = 28 }
   0xc   : > { %v214_v0 = vlaneseq  ;;  %s1458_s9 = smov (!%p180_p4, %s1000_s9), 7  ;;  %v1010_v10 = vmov 1.0  }
   0xd   : > { %s930_s13 = sshll.u32 %s1458_s9, 5  ;;  %s903_s20 = sshll.u32 %s1458_s9, 3 }
   0xe   : > { %v1045_v1 = vshrl.u32 %v214_v0, 7  ;;  %v1047_v2 = vand.u32 127, %v214_v0  ;;  %s1084_s16 = scalar_lea.vmem %s1444_s0, %s930_s13  ;;  %s1221_s19 = scalar_lea.vmem %s1445_s1, %s930_s13 }
   0xf   : > { %v1096_v13 = vld [vmem:[%s1084_s16] sm:$0xff]  ;;  %v1099_v14 = vld [vmem:[%s1084_s16 + $0x8] sm:$0xff]  ;;  %v1124_v19 = vld [vmem:[%s1084_s16 + $0x10] sm:$0xff]  ;;  %s201_s23 = scalar_lea.vmem %s1446_s2, %s903_s20 }
  0x10   : > { %v230_v3 = vadd.s32 120, %v1045_v1  ;;  %v1051_v4 = vmul.u32 4, %v1047_v2  ;;  %v229_v5 = vadd.s32 112, %v1045_v1  ;;  %v228_v7 = vadd.s32 104, %v1045_v1  ;;  %v329_v25 = vld [vmem:[%s1084_s16 + $0x18] sm:$0xff]  ;;  %v358_v41 = vld [vmem:[%s1221_s19] sm:$0xff] }
  0x11   : > { %vm283_vm1 = vcmp.lt.s32.totalorder %v1047_v2, 5  ;;  %v227_v8 = vadd.s32 96, %v1045_v1  ;;  %v226_v9 = vadd.s32 88, %v1045_v1  ;;  %v225_v11 = vadd.s32 80, %v1045_v1  ;;  %v359_v42 = vld [vmem:[%s1221_s19 + $0x8] sm:$0xff]  ;;  %v360_v47 = vld [vmem:[%s1221_s19 + $0x10] sm:$0xff] }
  0x12   : > { %vm249_vm0 = vcmp.ge.s32.totalorder %v230_v3, %v1051_v4  ;;  %v1058_v6 = vadd.s32 16, %v1051_v4  ;;  %vm248_vm3 = vcmp.ge.s32.totalorder %v229_v5, %v1051_v4  ;;  %vm247_vm7 = vcmp.ge.s32.totalorder %v228_v7, %v1051_v4  ;;  %v361_v52 = vld [vmem:[%s1221_s19 + $0x18] sm:$0xff] }
  0x13   : > { %vm246_vm11 = vcmp.ge.s32.totalorder %v227_v8, %v1051_v4  ;;  %vm245_vm15 = vcmp.ge.s32.totalorder %v226_v9, %v1051_v4  ;;  %v224_v12 = vadd.s32 72, %v1045_v1  ;;  %v223_v15 = vadd.s32 64, %v1045_v1 }
  0x14   : > { %vm266_vm2 = vcmp.lt.s32.totalorder %v230_v3, %v1058_v6  ;;  %vm265_vm4 = vcmp.lt.s32.totalorder %v229_v5, %v1058_v6  ;;  %vm264_vm8 = vcmp.lt.s32.totalorder %v228_v7, %v1058_v6  ;;  %vm263_vm12 = vcmp.lt.s32.totalorder %v227_v8, %v1058_v6 }
  0x15   : > { %vm282_vm5 = vmand %vm249_vm0, %vm266_vm2  ;;  %vm262_vm0 = vcmp.lt.s32.totalorder %v226_v9, %v1058_v6  ;;  %v222_v16 = vadd.s32 56, %v1045_v1  ;;  %v1115_v17 = vmul.f32 %v1096_v13, %v1096_v13  ;;  %v1119_v18 = vmul.f32 %v1099_v14, %v1099_v14 }
  0x16   : > { %vm299_vm6 = vmand %vm282_vm5, %vm283_vm1  ;;  %vm261_vm5 = vcmp.lt.s32.totalorder %v225_v11, %v1058_v6  ;;  %v221_v20 = vadd.s32 48, %v1045_v1  ;;  %v220_v21 = vadd.s32 40, %v1045_v1  ;;  %v1140_v22 = vmul.f32 %v1124_v19, %v1124_v19 }
  0x17   : > { %904 = vmatpush.msk.msra.mxu0 %vm299_vm6, %v1010_v10  ;;  %932 = vmatpush.msk.msra.mxu3 %vm299_vm6, %v1010_v10  ;;  %vm281_vm9 = vmand %vm248_vm3, %vm265_vm4  ;;  %vm244_vm4 = vcmp.ge.s32.totalorder %v225_v11, %v1051_v4  ;;  %v1144_v23 = vmul.f32 %v1115_v17, %v1096_v13  ;;  %v1148_v24 = vmul.f32 %v1119_v18, %v1099_v14  ;;  %v219_v26 = vadd.s32 32, %v1045_v1 }
  0x18   : > { %vm298_vm10 = vmand %vm281_vm9, %vm283_vm1  ;;  %vm260_vm9 = vcmp.lt.s32.totalorder %v224_v12, %v1058_v6  ;;  %v218_v27 = vadd.s32 24, %v1045_v1  ;;  %v1169_v28 = vmul.f32 %v329_v25, %v329_v25  ;;  %v1173_v29 = vmul.f32 %v1140_v22, %v1124_v19 }
  0x19   : > { %905 = vmatpush.msk.msra.mxu0 %vm298_vm10, %v1010_v10  ;;  %933 = vmatpush.msk.msra.mxu3 %vm298_vm10, %v1010_v10  ;;  %vm280_vm13 = vmand %vm247_vm7, %vm264_vm8  ;;  %vm243_vm8 = vcmp.ge.s32.totalorder %v224_v12, %v1051_v4  ;;  %v350_v30 = vmul.f32 %v1144_v23, %v1096_v13  ;;  %v351_v31 = vmul.f32 %v1148_v24, %v1099_v14  ;;  %v217_v32 = vadd.s32 16, %v1045_v1 }
  0x1a   : > { %vm297_vm14 = vmand %vm280_vm13, %vm283_vm1  ;;  %vm259_vm13 = vcmp.lt.s32.totalorder %v223_v15, %v1058_v6  ;;  %v216_v33 = vadd.s32 8, %v1045_v1  ;;  %v330_v34 = vadd.f32 %v1099_v14, %v1096_v13  ;;  %v347_v35 = vmul.f32 %v1169_v28, %v329_v25 }
  0x1b   : > { %906 = vmatpush.msk.msra.mxu0 %vm297_vm14, %v1010_v10  ;;  %934 = vmatpush.msk.msra.mxu3 %vm297_vm14, %v1010_v10  ;;  %vm279_vm2 = vmand %vm246_vm11, %vm263_vm12  ;;  %vm242_vm12 = vcmp.ge.s32.totalorder %v223_v15, %v1051_v4  ;;  %v352_v36 = vadd.f32 %v351_v31, %v350_v30  ;;  %v353_v37 = vmul.f32 %v1173_v29, %v1124_v19  ;;  %v320_v15 = vadd.s32 4, %v1045_v1 }
  0x1c   : > { %vm296_vm3 = vmand %vm279_vm2, %vm283_vm1  ;;  %vm258_vm2 = vcmp.lt.s32.totalorder %v222_v16, %v1058_v6  ;;  %v331_v38 = vadd.f32 %v330_v34, %v1124_v19  ;;  %v355_v40 = vmul.f32 %v347_v35, %v329_v25  ;;  %v336_v45 = vadd.f32 %v1119_v18, %v1115_v17 }
  0x1d   : > { %907 = vmatpush.msk.msra.mxu0 %vm296_vm3, %v1010_v10  ;;  %935 = vmatpush.msk.msra.mxu3 %vm296_vm3, %v1010_v10  ;;  %vm278_vm6 = vmand %vm245_vm15, %vm262_vm0  ;;  %vm241_vm15 = vcmp.ge.s32.totalorder %v222_v16, %v1051_v4  ;;  %v354_v39 = vadd.f32 %v353_v37, %v352_v36  ;;  %v362_v46 = vadd.f32 %v359_v42, %v358_v41  ;;  %v1011_v16 = vmov 0.0  }
  0x1e   : > { %vm295_vm7 = vmand %vm278_vm6, %vm283_vm1  ;;  %vm257_vm6 = vcmp.lt.s32.totalorder %v221_v20, %v1058_v6  ;;  %v332_v43 = vadd.f32 %v331_v38, %v329_v25  ;;  %v366_v48 = vmul.f32 %v358_v41, %v358_v41  ;;  %v338_v49 = vadd.f32 %v1140_v22, %v336_v45 }
  0x1f   : > { %908 = vmatpush.msk.msra.mxu0 %vm295_vm7, %v1010_v10  ;;  %936 = vmatpush.msk.msra.mxu3 %vm295_vm7, %v1010_v10  ;;  %vm277_vm10 = vmand %vm244_vm4, %vm261_vm5  ;;  %vm240_vm5 = vcmp.ge.s32.totalorder %v221_v20, %v1051_v4  ;;  %v356_v44 = vadd.f32 %v355_v40, %v354_v39  ;;  %v363_v50 = vadd.f32 %v362_v46, %v360_v47 }
  0x20   : > { %vm294_vm11 = vmand %vm277_vm10, %vm283_vm1  ;;  %v367_v51 = vmul.f32 %v359_v42, %v359_v42  ;;  %v344_v53 = vadd.f32 %v1148_v24, %v1144_v23  ;;  %v340_v54 = vadd.f32 %v1169_v28, %v338_v49  ;;  %v369_v57 = vmul.f32 %v360_v47, %v360_v47 }
  0x21   : > { %909 = vmatpush.msk.msra.mxu0 %vm294_vm11, %v1010_v10  ;;  %937 = vmatpush.msk.msra.mxu3 %vm294_vm11, %v1010_v10  ;;  %vm276_vm14 = vmand %vm243_vm8, %vm260_vm9  ;;  %vm239_vm8 = vcmp.ge.s32.totalorder %v220_v21, %v1051_v4  ;;  %vm256_vm9 = vcmp.lt.s32.totalorder %v220_v21, %v1058_v6  ;;  %v364_v55 = vadd.f32 %v363_v50, %v361_v52 }
  0x22   : > { %vm293_vm0 = vmand %vm276_vm14, %vm283_vm1  ;;  %vm255_vm14 = vcmp.lt.s32.totalorder %v219_v26, %v1058_v6  ;;  %v368_v56 = vadd.f32 %v367_v51, %v366_v48  ;;  %v346_v58 = vadd.f32 %v1173_v29, %v344_v53  ;;  %v371_v59 = vmul.f32 %v361_v52, %v361_v52 }
  0x23   : > { %910 = vmatpush.msk.msra.mxu0 %vm293_vm0, %v1010_v10  ;;  %938 = vmatpush.msk.msra.mxu3 %vm293_vm0, %v1010_v10  ;;  %vm275_vm3 = vmand %vm242_vm12, %vm259_vm13  ;;  %vm238_vm13 = vcmp.ge.s32.totalorder %v219_v26, %v1051_v4  ;;  %vm237_vm0 = vcmp.ge.s32.totalorder %v218_v27, %v1051_v4  ;;  %v374_v61 = vmul.f32 %v366_v48, %v358_v41 }
  0x24   : > { %vm292_vm4 = vmand %vm275_vm3, %vm283_vm1  ;;  %v370_v60 = vadd.f32 %v369_v57, %v368_v56  ;;  %v375_v62 = vmul.f32 %v367_v51, %v359_v42  ;;  %v348_v63 = vadd.f32 %v347_v35, %v346_v58  ;;  %v379_v5 = vmul.f32 %v371_v59, %v361_v52 }
  0x25   : > { %911 = vmatpush.msk.msra.mxu0 %vm292_vm4, %v1010_v10  ;;  %939 = vmatpush.msk.msra.mxu3 %vm292_vm4, %v1010_v10  ;;  %vm274_vm7 = vmand %vm241_vm15, %vm258_vm2  ;;  %vm254_vm2 = vcmp.lt.s32.totalorder %v218_v27, %v1058_v6  ;;  %v382_v7 = vmul.f32 %v374_v61, %v358_v41 }
  0x26   : > { %vm291_vm10 = vmand %vm274_vm7, %vm283_vm1  ;;  %vm253_vm7 = vcmp.lt.s32.totalorder %v217_v32, %v1058_v6  ;;  %v372_v0 = vadd.f32 %v371_v59, %v370_v60  ;;  %v376_v3 = vadd.f32 %v375_v62, %v374_v61  ;;  %v383_v8 = vmul.f32 %v375_v62, %v359_v42 }
  0x27   : > { %912 = vmatpush.msk.msra.mxu0 %vm291_vm10, %v1010_v10  ;;  %940 = vmatpush.msk.msra.mxu3 %vm291_vm10, %v1010_v10  ;;  %vm273_vm11 = vmand %vm240_vm5, %vm257_vm6  ;;  %vm236_vm6 = vcmp.ge.s32.totalorder %v217_v32, %v1051_v4  ;;  %v387_v13 = vmul.f32 %v379_v5, %v361_v52 }
  0x28   : > { %vm290_vm12 = vmand %vm273_vm11, %vm283_vm1  ;;  %vm252_vm11 = vcmp.lt.s32.totalorder %v216_v33, %v1058_v6 }
  0x29   : > { %913 = vmatpush.msk.msra.mxu0 %vm290_vm12, %v1010_v10  ;;  %941 = vmatpush.msk.msra.mxu3 %vm290_vm12, %v1010_v10  ;;  %vm272_vm15 = vmand %vm239_vm8, %vm256_vm9  ;;  %vm235_vm9 = vcmp.ge.s32.totalorder %v216_v33, %v1051_v4 }
  0x2a   : > { %vm289_vm3 = vmand %vm272_vm15, %vm283_vm1  ;;  %vm251_vm15 = vcmp.lt.s32.totalorder %v1045_v1, %v1058_v6 }
  0x2b   : > { %914 = vmatpush.msk.msra.mxu0 %vm289_vm3, %v1010_v10  ;;  %942 = vmatpush.msk.msra.mxu3 %vm289_vm3, %v1010_v10  ;;  %vm271_vm4 = vmand %vm238_vm13, %vm255_vm14  ;;  %vm234_vm14 = vcmp.ge.s32.totalorder %v1045_v1, %v1051_v4  ;;  %v377_v4 = vmul.f32 %v369_v57, %v360_v47 }
  0x2c   : > { %vm288_vm5 = vmand %vm271_vm4, %vm283_vm1 }
  0x2d   : > { %915 = vmatpush.msk.msra.mxu0 %vm288_vm5, %v1010_v10  ;;  %943 = vmatpush.msk.msra.mxu3 %vm288_vm5, %v1010_v10  ;;  %vm270_vm8 = vmand %vm237_vm0, %vm254_vm2  ;;  %v378_v6 = vadd.f32 %v377_v4, %v376_v3  ;;  %v385_v11 = vmul.f32 %v377_v4, %v360_v47  ;;  %vm321_vm5 = vcmp.lt.s32.totalorder %v1047_v2, %v320_v15 }
  0x2e   : > { %vm287_vm10 = vmand %vm270_vm8, %vm283_vm1 }
  0x2f   : > { %916 = vmatpush.msk.msra.mxu0 %vm287_vm10, %v1010_v10  ;;  %944 = vmatpush.msk.msra.mxu3 %vm287_vm10, %v1010_v10  ;;  %vm269_vm12 = vmand %vm236_vm6, %vm253_vm7  ;;  %v380_v9 = vadd.f32 %v379_v5, %v378_v6  ;;  %vm323_vm7 = vcmp.lt.s32.totalorder %v1045_v1, 5 }
  0x30   : > { %vm286_vm13 = vmand %vm269_vm12, %vm283_vm1 }
  0x31   : > { %917 = vmatpush.msk.msra.mxu0 %vm286_vm13, %v1010_v10  ;;  %945 = vmatpush.msk.msra.mxu3 %vm286_vm13, %v1010_v10  ;;  %vm268_vm0 = vmand %vm235_vm9, %vm252_vm11  ;;  %vm440_vm9 = vcmask 64512  }
  0x32   : > { %vm285_vm2 = vmand %vm268_vm0, %vm283_vm1 }
  0x33   : > { %918 = vmatpush.msk.msra.mxu0 %vm285_vm2, %v1010_v10  ;;  %946 = vmatpush.msk.msra.mxu3 %vm285_vm2, %v1010_v10  ;;  %vm267_vm3 = vmand %vm234_vm14, %vm251_vm15 }
  0x34   : > { %vm284_vm4 = vmand %vm267_vm3, %vm283_vm1  ;;  %vm319_vm1 = vcmp.ge.s32.totalorder %v1047_v2, %v1045_v1 }
  0x35   : > { %919 = vmatpush.msk.msra.mxu0 %vm284_vm4, %v1010_v10  ;;  %947 = vmatpush.msk.msra.mxu3 %vm284_vm4, %v1010_v10  ;;  %v384_v10 = vadd.f32 %v383_v8, %v382_v7  ;;  %vm322_vm6 = vmand %vm319_vm1, %vm321_vm5 }
  0x36   : > { %414 = vmatmul.f32.vlgmr.msra.gmra.mxu0 %v332_v43  ;;  %423 = vmatmul.f32.vlgmr.msra.gmra.mxu3 %v356_v44  ;;  %vm324_vm8 = vmand %vm322_vm6, %vm323_vm7 }
  0x37   : > { %v386_v12 = vadd.f32 %v385_v11, %v384_v10  ;;  %v325_v17 = vsel %vm324_vm8, 1.0, %v1011_v16 }
  0x39   : > { %v388_v14 = vadd.f32 %v387_v13, %v386_v12 }
  0x3e   : > { %417 = vmatmul.f32.gmra.mxu0 %v340_v54  ;;  %426 = vmatmul.f32.gmra.mxu3 %v364_v55 }
  0x46   : > { %420 = vmatmul.f32.gmra.mxu0 %v348_v63  ;;  %429 = vmatmul.f32.gmra.mxu3 %v372_v0 }
  0x4e   : > { %432 = vmatmul.f32.gmra.mxu3 %v380_v9 }
  0x56   : > { %435 = vmatmul.f32.gmra.mxu3 %v388_v14 }
  0xb3   : > { %v415_v18 = vpop.f32.mrf.mxu0 }
  0xb4   : > { %459 = vmatpush.msra.mxu1 %v415_v18 }
  0xb5   : > { %920 = vmatmul.msk.f32.vlgmr.msra.gmra.mxu1 %vm440_vm9, %v325_v17 }
  0xb9   : > { %v424_v19 = vpop.f32.mrf.mxu3 }
  0xbb   : > { %v418_v20 = vpop.f32.mrf.mxu0 }
  0xbc   : > { %483 = vmatpush.msra.mxu2 %v418_v20 }
  0xbd   : > { %921 = vmatmul.msk.f32.vlgmr.msra.gmra.mxu2 %vm440_vm9, %v325_v17 }
  0xc1   : > { %v427_v21 = vpop.f32.mrf.mxu3 }
  0xc2   : > { %555 = vmatpush.msrb.mxu2 %v427_v21 }
  0xc3   : > { %v421_v22 = vpop.f32.mrf.mxu0 }
  0xc4   : > { %507 = vmatpush.msrb.mxu1 %v421_v22 }
  0xc5   : > { %922 = vmatmul.msk.f32.vlgmr.msrb.gmra.mxu1 %vm440_vm9, %v325_v17  ;;  %924 = vmatmul.msk.f32.vlgmr.msrb.gmra.mxu2 %vm440_vm9, %v325_v17 }
  0xc6   : > { %531 = vmatpush.msra.mxu1 %v424_v19 }
  0xc9   : > { %v430_v1 = vpop.f32.mrf.mxu3 }
  0xca   : > { %579 = vmatpush.msra.mxu2 %v430_v1 }
  0xcd   : > { %923 = vmatmul.msk.f32.vlgmr.msra.gmra.mxu1 %vm440_vm9, %v325_v17  ;;  %925 = vmatmul.msk.f32.vlgmr.msra.gmra.mxu2 %vm440_vm9, %v325_v17 }
  0xd1   : > { %v433_v2 = vpop.f32.mrf.mxu3 }
  0xd2   : > { %603 = vmatpush.msrb.mxu1 %v433_v2 }
  0xd5   : > { %926 = vmatmul.msk.f32.vlgmr.msrb.gmra.mxu1 %vm440_vm9, %v325_v17 }
  0xd9   : > { %v436_v23 = vpop.f32.mrf.mxu3 }
  0xda   : > { %627 = vmatpush.msrb.mxu2 %v436_v23 }
  0xdb   : > { %927 = vmatmul.msk.f32.vlgmr.msrb.gmra.mxu2 %vm440_vm9, %v325_v17 }
 0x132   : > { %v461_v24 = vpop.f32.mrf.mxu1 }
 0x133   : > { %v1278_v25 = vmul.f32 0.00390625, %v461_v24 }
 0x135   : > { %v645_v26 = vmul.f32 %v1278_v25, %v1278_v25  ;;  %v663_v58 = vmul.f32 2.0, %v1278_v25  ;;  %v660_v62 = vmul.f32 3.0, %v1278_v25  ;;  %v670_v4 = vmul.f32 6.0, %v1278_v25 }
 0x136   : > { %v667_v7 = vmul.f32 4.0, %v1278_v25 }
 0x137   : > { %v664_v5 = vmul.f32 %v663_v58, %v1278_v25  ;;  %v674_v8 = vmul.f32 %v660_v62, %v1278_v25  ;;  %v671_v16 = vmul.f32 %v670_v4, %v1278_v25 }
 0x139   : > { %v665_v17 = vmul.f32 %v664_v5, %v1278_v25  ;;  %v675_v21 = vmul.f32 %v674_v8, %v1278_v25 }
 0x140   : > { %v485_v27 = vpop.f32.mrf.mxu2 }
 0x141   : > { %v1282_v28 = vmul.f32 0.00390625, %v485_v27 }
 0x142   : > { %v509_v46 = vpop.f32.mrf.mxu1 }
 0x143   : > { %v646_v29 = vsub.f32 %v1282_v28, %v645_v26  ;;  %v642_v9 = vmul.f32 0.00390625, %v509_v46  ;;  %v661_v10 = vmul.f32 %v660_v62, %v1282_v28 }
 0x145   : > { %v1285_v30 = vmax.f32 %v646_v29, 0.0  ;;  %v668_v19 = vmul.f32 %v667_v7, %v642_v9  ;;  %v662_v1 = vsub.f32 %v642_v9, %v661_v10 }
 0x147   : > { %974 = vrsqrt.f32 %v1285_v30  ;;  %v697_v44 = vmul.f32 %v1285_v30, %v1285_v30  ;;  %vm655_vm10 = vcmp.eq.f32.partialorder %v1285_v30, inf  ;;  %v658_v47 = vand.u32 2147483648, %v1285_v30 }
 0x148   : > { %v557_v31 = vpop.f32.mrf.mxu2  ;;  %vm657_vm11 = vcmp.eq.f32.partialorder %v1285_v30, 0.0 }
 0x149   : > { %v1288_v33 = vmul.f32 0.00390625, %v557_v31  ;;  %v1310_v51 = vadd.f32 1e-12, %v697_v44 }
 0x14a   : > { %v533_v59 = vpop.f32.mrf.mxu1 }
 0x14b   : > { %v723_v38 = vmul.f32 %v1288_v33, %v1288_v33  ;;  %v644_v20 = vmul.f32 0.00390625, %v533_v59  ;;  %v738_v24 = vmul.f32 3.0, %v1288_v33  ;;  %v748_v31 = vmul.f32 6.0, %v1288_v33 }
 0x14c   : > { %vm704_vm14 = vweird.f32 %v1310_v51 }
 0x14d   : > { %v975_v32 = vpop.eup %974 }
 0x14e   : > { %v649_v34 = vmul.f32 %v975_v32, %v1285_v30 }
 0x150   : > { %v650_v35 = vmul.f32 %v975_v32, %v649_v34  ;;  %v581_v36 = vpop.f32.mrf.mxu2 }
 0x151   : > { %v1291_v37 = vmul.f32 0.00390625, %v581_v36  ;;  %v669_v36 = vsub.f32 %v644_v20, %v668_v19 }
 0x152   : > { %v651_v39 = vmul.f32 0.5, %v650_v35  ;;  %v605_v23 = vpop.f32.mrf.mxu1  ;;  %v672_v35 = vmul.f32 %v671_v16, %v1282_v28 }
 0x153   : > { %v724_v40 = vsub.f32 %v1291_v37, %v723_v38  ;;  %v1359_v38 = vmul.f32 %v675_v21, %v1278_v25  ;;  %v708_v25 = vand.u32 2147483647, %v1310_v51 }
 0x154   : > { %v652_v41 = vsub.f32 1.5, %v651_v39  ;;  %v1361_v39 = vmul.f32 0.00390625, %v605_v23 }
 0x155   : > { %v1296_v42 = vmax.f32 %v724_v40, 0.0  ;;  %v1363_v40 = vadd.f32 %v665_v17, %v662_v1 }
 0x156   : > { %v653_v43 = vmul.f32 %v975_v32, %v652_v41 }
 0x157   : > { %976 = vrsqrt.f32 %v1296_v42  ;;  %v775_v48 = vmul.f32 %v1296_v42, %v1296_v42  ;;  %vm733_vm12 = vcmp.eq.f32.partialorder %v1296_v42, inf  ;;  %v736_v14 = vand.u32 2147483648, %v1296_v42 }
 0x158   : > { %v654_v45 = vmul.f32 %v653_v43, %v1285_v30  ;;  %978 = vrcp.f32 %v1310_v51  ;;  %vm735_vm13 = vcmp.eq.f32.partialorder %v1296_v42, 0.0  ;;  %v752_v43 = vmul.f32 %v738_v24, %v1288_v33 }
 0x159   : > { %v1314_v53 = vadd.f32 1e-12, %v775_v48  ;;  %v749_v48 = vmul.f32 %v748_v31, %v1288_v33 }
 0x15a   : > { %v656_v49 = vsel %vm655_vm10, %v1285_v30, %v654_v45  ;;  %v745_v45 = vmul.f32 4.0, %v1288_v33  ;;  %v753_v58 = vmul.f32 %v752_v43, %v1288_v33  ;;  %vm709_vm10 = vcmp.eq.f32.partialorder %v708_v25, 8.507059e+37 }
 0x15b   : > { %v1308_v50 = vsel %vm657_vm11, %v658_v47, %v656_v49  ;;  %980 = vrcp.f32 %v1314_v53  ;;  %v710_v47 = vand.u32 2147483648, %v1310_v51  ;;  %v673_v49 = vadd.f32 %v672_v35, %v669_v36 }
 0x15c   : > { %v679_v52 = vmul.f32 %v1308_v50, %v1285_v30  ;;  %vm782_vm4 = vweird.f32 %v1314_v53  ;;  %v788_v7 = vand.u32 2147483648, %v1314_v53  ;;  %v750_v9 = vmul.f32 %v749_v48, %v1291_v37 }
 0x15d   : > { %v977_v54 = vpop.eup %976  ;;  %v711_v1 = vor.u32 1.1754944e-38, %v710_v47 }
 0x15e   : > { %v1316_v55 = vadd.f32 1e-12, %v679_v52  ;;  %v727_v56 = vmul.f32 %v977_v54, %v1296_v42  ;;  %v1323_v61 = vpop.eup %978  ;;  %v629_v34 = vpop.f32.mrf.mxu2  ;;  %v741_v52 = vmul.f32 2.0, %v1288_v33 }
 0x15f   : > { %v700_v11 = vmul.f32 %v1323_v61, %v1310_v51  ;;  %v722_v46 = vmul.f32 0.00390625, %v629_v34  ;;  %vm705_vm15 = vweird.f32 %v1323_v61 }
 0x160   : > { %982 = vrcp.f32 %v1316_v55  ;;  %v728_v57 = vmul.f32 %v977_v54, %v727_v56  ;;  %v692_v4 = vand.u32 2147483648, %v1316_v55  ;;  %vm1388_vm3 = vmor %vm704_vm14, %vm705_vm15  ;;  %vm686_vm1 = vweird.f32 %v1316_v55 }
 0x161   : > { %v1326_v0 = vpop.eup %980  ;;  %v701_v2 = vsub.f32 1.0, %v700_v11  ;;  %v690_v8 = vand.u32 2147483647, %v1316_v55  ;;  %vm678_vm14 = vcmp.gt.f32.partialorder %v1285_v30, 1e-12 }
 0x162   : > { %v729_v60 = vmul.f32 0.5, %v728_v57  ;;  %v778_v15 = vmul.f32 %v1326_v0, %v1314_v53  ;;  %v739_v57 = vmul.f32 %v738_v24, %v1291_v37  ;;  %vm783_vm0 = vweird.f32 %v1326_v0 }
 0x163   : > { %v702_v41 = vmul.f32 %v1323_v61, %v701_v2  ;;  %vm1401_vm5 = vmor %vm782_vm4, %vm783_vm0  ;;  %v742_v37 = vmul.f32 %v741_v52, %v1288_v33  ;;  %v693_v17 = vor.u32 1.1754944e-38, %v692_v4  ;;  %vm691_vm8 = vcmp.eq.f32.partialorder %v690_v8, 8.507059e+37 }
 0x164   : > { %v730_v63 = vsub.f32 1.5, %v729_v60  ;;  %v779_v29 = vsub.f32 1.0, %v778_v15  ;;  %v677_v24 = vsub.f32 %v673_v49, %v1359_v38  ;;  %vm756_vm15 = vcmp.gt.f32.partialorder %v1296_v42, 1e-12 }
 0x165   : > { %v703_v56 = vadd.f32 %v1323_v61, %v702_v41 }
 0x166   : > { %v1328_v3 = vpop.eup %982  ;;  %v731_v6 = vmul.f32 %v977_v54, %v730_v63  ;;  %v780_v28 = vmul.f32 %v1326_v0, %v779_v29  ;;  %v746_v54 = vmul.f32 %v745_v45, %v1361_v39 }
 0x167   : > { %v682_v13 = vmul.f32 %v1328_v3, %v1316_v55  ;;  %vm687_vm2 = vweird.f32 %v1328_v3  ;;  %v740_v55 = vsub.f32 %v1361_v39, %v739_v57 }
 0x168   : > { %v732_v12 = vmul.f32 %v731_v6, %v1296_v42  ;;  %v747_v60 = vsub.f32 %v722_v46, %v746_v54  ;;  %v781_v62 = vadd.f32 %v1326_v0, %v780_v28  ;;  %v786_v6 = vand.u32 2147483647, %v1314_v53  ;;  %vm1405_vm6 = vmor %vm686_vm1, %vm687_vm2 }
 0x169   : > { %v683_v27 = vsub.f32 1.0, %v682_v13  ;;  %v707_v53 = vsel %vm1388_vm3, %v1323_v61, %v703_v56  ;;  %v789_v61 = vor.u32 1.1754944e-38, %v788_v7 }
 0x16a   : > { %v734_v18 = vsel %vm733_vm12, %v1296_v42, %v732_v12  ;;  %v754_v12 = vmul.f32 %v753_v58, %v1288_v33  ;;  %v751_v15 = vadd.f32 %v750_v9, %v747_v60  ;;  %v785_v16 = vsel %vm1401_vm5, %v1326_v0, %v781_v62 }
 0x16b   : > { %v1349_v22 = vsel %vm735_vm13, %v736_v14, %v734_v18  ;;  %v684_v44 = vmul.f32 %v1328_v3, %v683_v27  ;;  %vm787_vm7 = vcmp.eq.f32.partialorder %v786_v6, 8.507059e+37 }
 0x16c   : > { %v757_v26 = vmul.f32 %v1349_v22, %v1296_v42  ;;  %v790_v2 = vsel %vm787_vm7, %v789_v61, %v785_v16  ;;  %v755_v0 = vsub.f32 %v751_v15, %v754_v12  ;;  %v793_v43 = vsub.f32 %v1308_v50, %v1349_v22 }
 0x16d   : > { %v685_v59 = vadd.f32 %v1328_v3, %v684_v44 }
 0x16e   : > { %v1355_v32 = vadd.f32 1e-12, %v757_v26  ;;  %v712_v26 = vsel %vm709_vm10, %v711_v1, %v707_v53  ;;  %v791_v35 = vmul.f32 %v790_v2, %v755_v0  ;;  %v794_v28 = vand.u32 2147483647, %v793_v43 }
 0x16f   : > { %v689_v13 = vsel %vm1405_vm6, %v1328_v3, %v685_v59  ;;  %v743_v3 = vmul.f32 %v742_v37, %v1288_v33  ;;  %v713_v33 = vmul.f32 %v712_v26, %v677_v24 }
 0x170   : > { %984 = vrcp.f32 %v1355_v32  ;;  %v770_v18 = vand.u32 2147483648, %v1355_v32  ;;  %v768_v20 = vand.u32 2147483647, %v1355_v32  ;;  %v694_v21 = vsel %vm691_vm8, %v693_v17, %v689_v13 }
 0x171   : > { %vm764_vm11 = vweird.f32 %v1355_v32  ;;  %v744_v27 = vadd.f32 %v743_v3, %v740_v55  ;;  %v695_v31 = vmul.f32 %v694_v21, %v1363_v40  ;;  %v792_v38 = vsel %vm756_vm15, %v791_v35, 0.0 }
 0x172   : > { %v771_v29 = vor.u32 1.1754944e-38, %v770_v18  ;;  %vm769_vm13 = vcmp.eq.f32.partialorder %v768_v20, 8.507059e+37  ;;  %v714_v45 = vsel %vm678_vm14, %v713_v33, 0.0 }
 0x173   : > { %v799_v46 = vsub.f32 %v714_v45, %v792_v38 }
 0x175   : > { %v800_v48 = vand.u32 2147483647, %v799_v46 }
 0x176   : > { %v985_v63 = vpop.eup %984 }
 0x177   : > { %v760_v10 = vmul.f32 %v985_v63, %v1355_v32  ;;  %vm765_vm9 = vweird.f32 %v985_v63  ;;  %v696_v32 = vsel %vm678_vm14, %v695_v31, 0.0 }
 0x178   : > { %vm766_vm12 = vmor %vm764_vm11, %vm765_vm9 }
 0x179   : > { %v761_v14 = vsub.f32 1.0, %v760_v10 }
 0x17b   : > { %v762_v19 = vmul.f32 %v985_v63, %v761_v14 }
 0x17d   : > { %v763_v23 = vadd.f32 %v985_v63, %v762_v19 }
 0x17f   : > { %v767_v34 = vsel %vm766_vm12, %v985_v63, %v763_v23 }
 0x180   : > { %v772_v36 = vsel %vm769_vm13, %v771_v29, %v767_v34 }
 0x181   : > { %v773_v39 = vmul.f32 %v772_v36, %v744_v27 }
 0x183   : > { %v774_v41 = vsel %vm756_vm15, %v773_v39, 0.0 }
 0x184   : > { %v795_v44 = vsub.f32 %v696_v32, %v774_v41 }
 0x186   : > { %v796_v40 = vand.u32 2147483647, %v795_v44 }
 0x188   : > { %v797_v25 = vmul.f32 2.0, %v796_v40 }
 0x18a   : > { %v798_v47 = vadd.f32 %v797_v25, %v794_v28 }
 0x18c   : > { %v801_v30 = vadd.f32 %v800_v48, %v798_v47 }
 0x18e   : > { %802 = vst [vmem:[%s201_s23] sm:$0xff] %v801_v30 }
 0x18f PF: > { %s12_s11 = sadd.s32 1, %s1008_s11   ;;  %s1453_s9 = smov %s1004_s10 }
 0x190   : > { %p9_p5 = scmp.ge.s32.totalorder %s12_s11, 10   ;;  %s1454_s10 = smov %s1456_s12 }
 0x192   :  { %11 = sbr.rel (!%p9_p5) target bundleno = 2 (0x2), region = 76 }

</bundles_post_ra>
